<compile_context>
chip_gen: v7x
topology: tpu7x:2x2x1
jax: 0.10.0
libtpu: 0.0.40
codegen_flags: <defaults>
</compile_context>

<pallas_src>
import numpy as np
import jax
import jax.numpy as jnp
from jax.experimental import pallas as pl
from jax.experimental.pallas import tpu as pltpu

# ----------------------------- static dimensions ----------------------------

IMG = 28                    # input spatial size
KS = 5                      # conv kernel size
KK = KS * KS                # 25 taps
OH1 = IMG - KS + 1          # 24  conv1 output side
PH1 = OH1 // 2              # 12  pool1 output side
OH2 = PH1 - KS + 1          # 8   conv2 output side
PH2 = OH2 // 2              # 4   pool2 output side
S_A1 = OH1 * OH1            # 576
S_P1 = PH1 * PH1            # 144
S_A2 = OH2 * OH2            # 64
S_P2 = PH2 * PH2            # 16

C1, C2, F1, NCLS = 10, 20, 50, 10   # true channel / feature sizes
C1P, C2P, F1P = 16, 24, 56          # padded to multiples of 8
K1P = 32                            # conv1 contraction dim 25 -> 32


# ----------------------------- fused Pallas kernel ---------------------------

def _fused_cnn_kernel(xp_ref, w1m_ref, b1_ref, s1_ref, gcat_ref, w2p_ref, b2_ref,
                      s2_ref, w1r_ref, fb1_ref, w2fc_ref, fb2_ref, out_ref):
    f32, bf16 = jnp.float32, jnp.bfloat16

    # ---- conv1: (C1P,K1P) @ (K1P,576) on the MXU + bias (lane-dense output) ----
    a1 = jnp.dot(w1m_ref[...], xp_ref[0], preferred_element_type=f32) + b1_ref[...]

    # ---- maxpool 2x2 + relu: 4 corner-selection matmuls + VPU maxes ----
    a1b = a1.astype(bf16)
    c0 = jnp.dot(a1b, s1_ref[0], preferred_element_type=f32)
    c1 = jnp.dot(a1b, s1_ref[1], preferred_element_type=f32)
    c2 = jnp.dot(a1b, s1_ref[2], preferred_element_type=f32)
    c3 = jnp.dot(a1b, s1_ref[3], preferred_element_type=f32)
    p1 = jnp.maximum(jnp.maximum(jnp.maximum(c0, c1), jnp.maximum(c2, c3)), 0.0)

    # ---- conv2: in-kernel im2col (patch gather as matmul) + 25 accumulated taps ----
    p1b = p1.astype(bf16)
    acc2 = jnp.zeros((C2P, S_A2), f32)
    for t in range(KK):                                        # unrolled
        patch = jnp.dot(p1b, gcat_ref[:, t * S_A2:(t + 1) * S_A2],
                        preferred_element_type=f32)            # (C1P, 64)
        acc2 = acc2 + jnp.dot(w2p_ref[t], patch.astype(bf16),
                              preferred_element_type=f32)      # (C2P, 64)
    a2 = acc2 + b2_ref[...]
    # TODO(synk): nn.Dropout2d / F.dropout are identity in inference mode (no RNG mask).

    # ---- maxpool 2x2 + relu ----
    a2b = a2.astype(bf16)
    d0 = jnp.dot(a2b, s2_ref[0], preferred_element_type=f32)
    d1 = jnp.dot(a2b, s2_ref[1], preferred_element_type=f32)
    d2 = jnp.dot(a2b, s2_ref[2], preferred_element_type=f32)
    d3 = jnp.dot(a2b, s2_ref[3], preferred_element_type=f32)
    p2 = jnp.maximum(jnp.maximum(jnp.maximum(d0, d1), jnp.maximum(d2, d3)), 0.0)

    # ---- fc1 + relu: .view(-1, 320) folded into per-channel (1,16)@(16,F1P) matmuls ----
    acc1 = jnp.zeros((1, F1P), f32)
    for c in range(C2P):                                       # unrolled (padded chans are 0)
        acc1 = acc1 + jnp.dot(p2[c:c + 1, :].astype(bf16), w1r_ref[c],
                              preferred_element_type=f32)
    y1 = jnp.maximum(acc1 + fb1_ref[...], 0.0)

    # ---- fc2 + softmax (exp on EUP, approx reciprocal on EUP) ----
    logits = jnp.dot(y1.astype(bf16), w2fc_ref[...],
                     preferred_element_type=f32) + fb2_ref[...]
    m = jnp.max(logits, axis=-1, keepdims=True)
    e = jnp.exp(logits - m)
    denom = jnp.sum(e, axis=-1, keepdims=True)
    out_ref[0] = e * pl.reciprocal(denom, approx=True)


# --------------------- constant 0/1 selection matrices -----------------------

def _selection_constants():
    """Matrices that express pool-corner selection and conv2 patch gather as matmuls."""
    s1 = np.zeros((4, S_A1, S_P1), np.float32)
    for ph in range(PH1):
        for pw in range(PH1):
            for dy in range(2):
                for dx in range(2):
                    s1[dy * 2 + dx, (2 * ph + dy) * OH1 + (2 * pw + dx), ph * PH1 + pw] = 1.0
    g = np.zeros((S_P1, KK * S_A2), np.float32)
    for i in range(KS):
        for j in range(KS):
            for oh in range(OH2):
                for ow in range(OH2):
                    g[(oh + i) * PH1 + (ow + j), (i * KS + j) * S_A2 + oh * OH2 + ow] = 1.0
    s2 = np.zeros((4, S_A2, S_P2), np.float32)
    for ph in range(PH2):
        for pw in range(PH2):
            for dy in range(2):
                for dx in range(2):
                    s2[dy * 2 + dx, (2 * ph + dy) * OH2 + (2 * pw + dx), ph * PH2 + pw] = 1.0
    return (jnp.asarray(s1, jnp.bfloat16), jnp.asarray(g, jnp.bfloat16),
            jnp.asarray(s2, jnp.bfloat16))


# --------------------------- parameter init / packing ------------------------

def init_params(key):
    """Deterministic PyTorch-default-like (uniform +-1/sqrt(fan_in)) init."""
    ks = jax.random.split(key, 8)

    def u(k, shape, fan_in):
        bound = 1.0 / float(fan_in) ** 0.5
        return jax.random.uniform(k, shape, jnp.float32, -bound, bound)

    return {
        "conv1_w": u(ks[0], (C1, 1, KS, KS), 1 * KK),
        "conv1_b": u(ks[1], (C1,), 1 * KK),
        "conv2_w": u(ks[2], (C2, C1, KS, KS), C1 * KK),
        "conv2_b": u(ks[3], (C2,), C1 * KK),
        "fc1_w":   u(ks[4], (F1, C2 * S_P2), C2 * S_P2),
        "fc1_b":   u(ks[5], (F1,), C2 * S_P2),
        "fc2_w":   u(ks[6], (NCLS, F1), F1),
        "fc2_b":   u(ks[7], (NCLS,), F1),
    }


def pack_params(p):
    """One-time packing: pad channel dims to multiples of 8, pre-transpose fc weights,
    cast MXU operands to bf16, and bundle the constant selection matrices."""
    f32, bf16 = jnp.float32, jnp.bfloat16
    s1, gcat, s2 = _selection_constants()

    w1m = jnp.zeros((C1P, K1P), f32).at[:C1, :KK].set(p["conv1_w"].reshape(C1, KK)).astype(bf16)
    b1 = jnp.zeros((C1P, 1), f32).at[:C1, 0].set(p["conv1_b"])

    w2r = jnp.transpose(p["conv2_w"].reshape(C2, C1, KK), (2, 0, 1))      # (25, 20, 10)
    w2p = jnp.zeros((KK, C2P, C1P), f32).at[:, :C2, :C1].set(w2r).astype(bf16)
    b2 = jnp.zeros((C2P, 1), f32).at[:C2, 0].set(p["conv2_b"])

    w1r = jnp.transpose(p["fc1_w"].reshape(F1, C2, S_P2), (1, 2, 0))      # (20, 16, 50)
    w1r = jnp.zeros((C2P, S_P2, F1P), f32).at[:C2, :, :F1].set(w1r).astype(bf16)
    fb1 = jnp.zeros((1, F1P), f32).at[0, :F1].set(p["fc1_b"])

    w2fc = jnp.zeros((F1P, NCLS), f32).at[:F1, :].set(p["fc2_w"].T).astype(bf16)
    fb2 = p["fc2_b"].reshape(1, NCLS).astype(f32)

    return dict(w1m=w1m, b1=b1, s1=s1, gcat=gcat, w2p=w2p, b2=b2, s2=s2,
                w1r=w1r, fb1=fb1, w2fc=w2fc, fb2=fb2)


# -------------------------------- forward -----------------------------------

def _conv1_patches(x):
    """x: (N,1,28,28) f32 -> (N, K1P, 576) bf16 patch matrix (row i*5+j, col oh*24+ow)."""
    N = x.shape[0]
    xs = x[:, 0]
    rows = [xs[:, i:i + OH1, j:j + OH1].reshape(N, 1, S_A1)
            for i in range(KS) for j in range(KS)]
    xp = jnp.concatenate(rows, axis=1)                         # (N, 25, 576)
    xp = jnp.pad(xp, ((0, 0), (0, K1P - KK), (0, 0)))          # pad K 25 -> 32
    return xp.astype(jnp.bfloat16)


def cnn_forward(packed, x):
    N = x.shape[0]
    xp = _conv1_patches(x)
    out = pl.pallas_call(
        _fused_cnn_kernel,
        out_shape=jax.ShapeDtypeStruct((N, 1, NCLS), jnp.float32),
        grid=(N,),
        in_specs=[
            pl.BlockSpec((1, K1P, S_A1), lambda i: (i, 0, 0)),        # per-sample conv1 patches
            pl.BlockSpec((C1P, K1P), lambda i: (0, 0)),               # conv1 weight
            pl.BlockSpec((C1P, 1), lambda i: (0, 0)),                 # conv1 bias
            pl.BlockSpec((4, S_A1, S_P1), lambda i: (0, 0, 0)),       # pool1 corner selectors
            pl.BlockSpec((S_P1, KK * S_A2), lambda i: (0, 0)),        # conv2 patch-gather matrix
            pl.BlockSpec((KK, C2P, C1P), lambda i: (0, 0, 0)),        # conv2 per-tap weights
            pl.BlockSpec((C2P, 1), lambda i: (0, 0)),                 # conv2 bias
            pl.BlockSpec((4, S_A2, S_P2), lambda i: (0, 0, 0)),       # pool2 corner selectors
            pl.BlockSpec((C2P, S_P2, F1P), lambda i: (0, 0, 0)),      # fc1 weight (packed)
            pl.BlockSpec((1, F1P), lambda i: (0, 0)),                 # fc1 bias
            pl.BlockSpec((F1P, NCLS), lambda i: (0, 0)),              # fc2 weight (pre-T)
            pl.BlockSpec((1, NCLS), lambda i: (0, 0)),                # fc2 bias
        ],
        out_specs=pl.BlockSpec((1, 1, NCLS), lambda i: (i, 0, 0)),
        compiler_params=pltpu.CompilerParams(dimension_semantics=("parallel",)),
    )(xp, packed["w1m"], packed["b1"], packed["s1"], packed["gcat"], packed["w2p"],
      packed["b2"], packed["s2"], packed["w1r"], packed["fb1"], packed["w2fc"],
      packed["fb2"])
    return out.reshape(N, NCLS)


# ------------------------ pure-JAX reference (f32) ---------------------------

def reference_forward(p, x):
    dn = ("NCHW", "OIHW", "NCHW")

    def pool_relu(y):
        n, c, h, w = y.shape
        return jnp.maximum(y.reshape(n, c, h // 2, 2, w // 2, 2).max(axis=(3, 5)), 0.0)

    y = jax.lax.conv_general_dilated(x, p["conv1_w"], (1, 1), "VALID",
                                     dimension_numbers=dn)
    y = pool_relu(y + p["conv1_b"][None, :, None, None])
    y = jax.lax.conv_general_dilated(y, p["conv2_w"], (1, 1), "VALID",
                                     dimension_numbers=dn)
    y = pool_relu(y + p["conv2_b"][None, :, None, None])
    y = y.reshape(y.shape[0], C2 * S_P2)
    y = jnp.maximum(y @ p["fc1_w"].T + p["fc1_b"], 0.0)
    logits = y @ p["fc2_w"].T + p["fc2_b"]
    return jax.nn.softmax(logits, axis=1)


# -------------------------------- driver -------------------------------------

if __name__ == "__main__":
    key = jax.random.PRNGKey(0)
    k_params, k_x = jax.random.split(key)
    params = init_params(k_params)
    packed = pack_params(params)
    x = jax.random.normal(k_x, (2, 1, IMG, IMG), dtype=jnp.float32)

    fwd = jax.jit(cnn_forward)
    out = jax.block_until_ready(fwd(packed, x))

    assert out.shape == (2, NCLS), out.shape
    row_sums = jnp.sum(out, axis=1)
    assert bool(jnp.all(jnp.abs(row_sums - 1.0) < 1e-2)), row_sums

    ref = reference_forward(params, x)
    assert bool(jnp.all(jnp.abs(out - ref) < 2e-2)), float(jnp.max(jnp.abs(out - ref)))

    print("KERNEL_OK")
</pallas_src>

<mosaic_0001>
module attributes {stable_mosaic.version = 11 : i64} {
  func.func @_fused_cnn_kernel(%arg0: i32, %arg1: memref<1x32x576xbf16, #tpu.memory_space<vmem>>, %arg2: memref<16x32xbf16, #tpu.memory_space<vmem>>, %arg3: memref<16x1xf32, #tpu.memory_space<vmem>>, %arg4: memref<4x576x144xbf16, #tpu.memory_space<vmem>>, %arg5: memref<144x1600xbf16, #tpu.memory_space<vmem>>, %arg6: memref<25x24x16xbf16, #tpu.memory_space<vmem>>, %arg7: memref<24x1xf32, #tpu.memory_space<vmem>>, %arg8: memref<4x64x16xbf16, #tpu.memory_space<vmem>>, %arg9: memref<24x16x56xbf16, #tpu.memory_space<vmem>>, %arg10: memref<1x56xf32, #tpu.memory_space<vmem>>, %arg11: memref<56x10xbf16, #tpu.memory_space<vmem>>, %arg12: memref<1x10xf32, #tpu.memory_space<vmem>>, %arg13: memref<1x1x10xf32, #tpu.memory_space<vmem>>) attributes {dimension_semantics = [#tpu.dimension_semantics<parallel>], iteration_bounds = array<i64: 2>, scalar_prefetch = 0 : i64, scratch_operands = 0 : i64, tpu.core_type = #tpu.core_type<tc>, window_params = [{transform_indices = @transform_0, window_bounds = array<i64: 1, 32, 576>}, {pipeline_mode = #tpu.pipeline_mode<synchronous>, transform_indices = @transform_1, window_bounds = array<i64: 16, 32>}, {pipeline_mode = #tpu.pipeline_mode<synchronous>, transform_indices = @transform_2, window_bounds = array<i64: 16, 1>}, {pipeline_mode = #tpu.pipeline_mode<synchronous>, transform_indices = @transform_3, window_bounds = array<i64: 4, 576, 144>}, {pipeline_mode = #tpu.pipeline_mode<synchronous>, transform_indices = @transform_4, window_bounds = array<i64: 144, 1600>}, {pipeline_mode = #tpu.pipeline_mode<synchronous>, transform_indices = @transform_5, window_bounds = array<i64: 25, 24, 16>}, {pipeline_mode = #tpu.pipeline_mode<synchronous>, transform_indices = @transform_6, window_bounds = array<i64: 24, 1>}, {pipeline_mode = #tpu.pipeline_mode<synchronous>, transform_indices = @transform_7, window_bounds = array<i64: 4, 64, 16>}, {pipeline_mode = #tpu.pipeline_mode<synchronous>, transform_indices = @transform_8, window_bounds = array<i64: 24, 16, 56>}, {pipeline_mode = #tpu.pipeline_mode<synchronous>, transform_indices = @transform_9, window_bounds = array<i64: 1, 56>}, {pipeline_mode = #tpu.pipeline_mode<synchronous>, transform_indices = @transform_10, window_bounds = array<i64: 56, 10>}, {pipeline_mode = #tpu.pipeline_mode<synchronous>, transform_indices = @transform_11, window_bounds = array<i64: 1, 10>}, {transform_indices = @transform_12, window_bounds = array<i64: 1, 1, 10>}]} {
    %c0 = arith.constant 0 : index
    %c0_0 = arith.constant 0 : index
    %0 = vector.load %arg2[%c0, %c0_0] : memref<16x32xbf16, #tpu.memory_space<vmem>>, vector<16x32xbf16>
    %c0_1 = arith.constant 0 : index
    %c0_2 = arith.constant 0 : index
    %c0_3 = arith.constant 0 : index
    %1 = vector.load %arg1[%c0_1, %c0_2, %c0_3] : memref<1x32x576xbf16, #tpu.memory_space<vmem>>, vector<1x32x576xbf16>
    %2 = vector.shape_cast %1 : vector<1x32x576xbf16> to vector<32x576xbf16>
    %cst = arith.constant dense<0.000000e+00> : vector<16x576xf32>
    %3 = tpu.matmul %0, %2, %cst {dimension_numbers = #tpu.dot_dimension_numbers<[1], [0], [0], [1], [0, 0, 1, 1], [], []>} : vector<16x32xbf16>, vector<32x576xbf16>, vector<16x576xf32> -> vector<16x576xf32>
    %c0_4 = arith.constant 0 : index
    %c0_5 = arith.constant 0 : index
    %4 = vector.load %arg3[%c0_4, %c0_5] : memref<16x1xf32, #tpu.memory_space<vmem>>, vector<16x1xf32>
    %5 = vector.broadcast %4 : vector<16x1xf32> to vector<16x576xf32>
    %6 = arith.addf %3, %5 : vector<16x576xf32>
    %7 = arith.truncf %6 : vector<16x576xf32> to vector<16x576xbf16>
    %c0_6 = arith.constant 0 : index
    %c0_7 = arith.constant 0 : index
    %c0_8 = arith.constant 0 : index
    %8 = vector.load %arg4[%c0_6, %c0_7, %c0_8] : memref<4x576x144xbf16, #tpu.memory_space<vmem>>, vector<1x576x144xbf16>
    %9 = vector.shape_cast %8 : vector<1x576x144xbf16> to vector<576x144xbf16>
    %cst_9 = arith.constant dense<0.000000e+00> : vector<16x144xf32>
    %10 = tpu.matmul %7, %9, %cst_9 {dimension_numbers = #tpu.dot_dimension_numbers<[1], [0], [0], [1], [0, 0, 1, 1], [], []>} : vector<16x576xbf16>, vector<576x144xbf16>, vector<16x144xf32> -> vector<16x144xf32>
    %c1 = arith.constant 1 : index
    %c0_10 = arith.constant 0 : index
    %c0_11 = arith.constant 0 : index
    %11 = vector.load %arg4[%c1, %c0_10, %c0_11] : memref<4x576x144xbf16, #tpu.memory_space<vmem>>, vector<1x576x144xbf16>
    %12 = vector.shape_cast %11 : vector<1x576x144xbf16> to vector<576x144xbf16>
    %cst_12 = arith.constant dense<0.000000e+00> : vector<16x144xf32>
    %13 = tpu.matmul %7, %12, %cst_12 {dimension_numbers = #tpu.dot_dimension_numbers<[1], [0], [0], [1], [0, 0, 1, 1], [], []>} : vector<16x576xbf16>, vector<576x144xbf16>, vector<16x144xf32> -> vector<16x144xf32>
    %c2 = arith.constant 2 : index
    %c0_13 = arith.constant 0 : index
    %c0_14 = arith.constant 0 : index
    %14 = vector.load %arg4[%c2, %c0_13, %c0_14] : memref<4x576x144xbf16, #tpu.memory_space<vmem>>, vector<1x576x144xbf16>
    %15 = vector.shape_cast %14 : vector<1x576x144xbf16> to vector<576x144xbf16>
    %cst_15 = arith.constant dense<0.000000e+00> : vector<16x144xf32>
    %16 = tpu.matmul %7, %15, %cst_15 {dimension_numbers = #tpu.dot_dimension_numbers<[1], [0], [0], [1], [0, 0, 1, 1], [], []>} : vector<16x576xbf16>, vector<576x144xbf16>, vector<16x144xf32> -> vector<16x144xf32>
    %c3 = arith.constant 3 : index
    %c0_16 = arith.constant 0 : index
    %c0_17 = arith.constant 0 : index
    %17 = vector.load %arg4[%c3, %c0_16, %c0_17] : memref<4x576x144xbf16, #tpu.memory_space<vmem>>, vector<1x576x144xbf16>
    %18 = vector.shape_cast %17 : vector<1x576x144xbf16> to vector<576x144xbf16>
    %cst_18 = arith.constant dense<0.000000e+00> : vector<16x144xf32>
    %19 = tpu.matmul %7, %18, %cst_18 {dimension_numbers = #tpu.dot_dimension_numbers<[1], [0], [0], [1], [0, 0, 1, 1], [], []>} : vector<16x576xbf16>, vector<576x144xbf16>, vector<16x144xf32> -> vector<16x144xf32>
    %20 = arith.maximumf %10, %13 : vector<16x144xf32>
    %21 = arith.maximumf %16, %19 : vector<16x144xf32>
    %22 = arith.maximumf %20, %21 : vector<16x144xf32>
    %cst_19 = arith.constant 0.000000e+00 : f32
    %23 = vector.broadcast %cst_19 : f32 to vector<16x144xf32>
    %24 = arith.maximumf %22, %23 : vector<16x144xf32>
    %25 = arith.truncf %24 : vector<16x144xf32> to vector<16x144xbf16>
    %cst_20 = arith.constant 0.000000e+00 : f32
    %26 = vector.broadcast %cst_20 : f32 to vector<24x64xf32>
    %c0_21 = arith.constant 0 : index
    %c0_22 = arith.constant 0 : index
    %27 = vector.load %arg5[%c0_21, %c0_22] : memref<144x1600xbf16, #tpu.memory_space<vmem>>, vector<144x64xbf16>
    %cst_23 = arith.constant dense<0.000000e+00> : vector<16x64xf32>
    %28 = tpu.matmul %25, %27, %cst_23 {dimension_numbers = #tpu.dot_dimension_numbers<[1], [0], [0], [1], [0, 0, 1, 1], [], []>} : vector<16x144xbf16>, vector<144x64xbf16>, vector<16x64xf32> -> vector<16x64xf32>
    %c0_24 = arith.constant 0 : index
    %c0_25 = arith.constant 0 : index
    %c0_26 = arith.constant 0 : index
    %29 = vector.load %arg6[%c0_24, %c0_25, %c0_26] : memref<25x24x16xbf16, #tpu.memory_space<vmem>>, vector<1x24x16xbf16>
    %30 = vector.shape_cast %29 : vector<1x24x16xbf16> to vector<24x16xbf16>
    %31 = arith.truncf %28 : vector<16x64xf32> to vector<16x64xbf16>
    %cst_27 = arith.constant dense<0.000000e+00> : vector<24x64xf32>
    %32 = tpu.matmul %30, %31, %cst_27 {dimension_numbers = #tpu.dot_dimension_numbers<[1], [0], [0], [1], [0, 0, 1, 1], [], []>} : vector<24x16xbf16>, vector<16x64xbf16>, vector<24x64xf32> -> vector<24x64xf32>
    %33 = arith.addf %26, %32 : vector<24x64xf32>
    %c0_28 = arith.constant 0 : index
    %c64 = arith.constant 64 : index
    %34 = vector.load %arg5[%c0_28, %c64] : memref<144x1600xbf16, #tpu.memory_space<vmem>>, vector<144x64xbf16>
    %cst_29 = arith.constant dense<0.000000e+00> : vector<16x64xf32>
    %35 = tpu.matmul %25, %34, %cst_29 {dimension_numbers = #tpu.dot_dimension_numbers<[1], [0], [0], [1], [0, 0, 1, 1], [], []>} : vector<16x144xbf16>, vector<144x64xbf16>, vector<16x64xf32> -> vector<16x64xf32>
    %c1_30 = arith.constant 1 : index
    %c0_31 = arith.constant 0 : index
    %c0_32 = arith.constant 0 : index
    %36 = vector.load %arg6[%c1_30, %c0_31, %c0_32] : memref<25x24x16xbf16, #tpu.memory_space<vmem>>, vector<1x24x16xbf16>
    %37 = vector.shape_cast %36 : vector<1x24x16xbf16> to vector<24x16xbf16>
    %38 = arith.truncf %35 : vector<16x64xf32> to vector<16x64xbf16>
    %cst_33 = arith.constant dense<0.000000e+00> : vector<24x64xf32>
    %39 = tpu.matmul %37, %38, %cst_33 {dimension_numbers = #tpu.dot_dimension_numbers<[1], [0], [0], [1], [0, 0, 1, 1], [], []>} : vector<24x16xbf16>, vector<16x64xbf16>, vector<24x64xf32> -> vector<24x64xf32>
    %40 = arith.addf %33, %39 : vector<24x64xf32>
    %c0_34 = arith.constant 0 : index
    %c128 = arith.constant 128 : index
    %41 = vector.load %arg5[%c0_34, %c128] : memref<144x1600xbf16, #tpu.memory_space<vmem>>, vector<144x64xbf16>
    %cst_35 = arith.constant dense<0.000000e+00> : vector<16x64xf32>
    %42 = tpu.matmul %25, %41, %cst_35 {dimension_numbers = #tpu.dot_dimension_numbers<[1], [0], [0], [1], [0, 0, 1, 1], [], []>} : vector<16x144xbf16>, vector<144x64xbf16>, vector<16x64xf32> -> vector<16x64xf32>
    %c2_36 = arith.constant 2 : index
    %c0_37 = arith.constant 0 : index
    %c0_38 = arith.constant 0 : index
    %43 = vector.load %arg6[%c2_36, %c0_37, %c0_38] : memref<25x24x16xbf16, #tpu.memory_space<vmem>>, vector<1x24x16xbf16>
    %44 = vector.shape_cast %43 : vector<1x24x16xbf16> to vector<24x16xbf16>
    %45 = arith.truncf %42 : vector<16x64xf32> to vector<16x64xbf16>
    %cst_39 = arith.constant dense<0.000000e+00> : vector<24x64xf32>
    %46 = tpu.matmul %44, %45, %cst_39 {dimension_numbers = #tpu.dot_dimension_numbers<[1], [0], [0], [1], [0, 0, 1, 1], [], []>} : vector<24x16xbf16>, vector<16x64xbf16>, vector<24x64xf32> -> vector<24x64xf32>
    %47 = arith.addf %40, %46 : vector<24x64xf32>
    %c0_40 = arith.constant 0 : index
    %c192 = arith.constant 192 : index
    %48 = vector.load %arg5[%c0_40, %c192] : memref<144x1600xbf16, #tpu.memory_space<vmem>>, vector<144x64xbf16>
    %cst_41 = arith.constant dense<0.000000e+00> : vector<16x64xf32>
    %49 = tpu.matmul %25, %48, %cst_41 {dimension_numbers = #tpu.dot_dimension_numbers<[1], [0], [0], [1], [0, 0, 1, 1], [], []>} : vector<16x144xbf16>, vector<144x64xbf16>, vector<16x64xf32> -> vector<16x64xf32>
    %c3_42 = arith.constant 3 : index
    %c0_43 = arith.constant 0 : index
    %c0_44 = arith.constant 0 : index
    %50 = vector.load %arg6[%c3_42, %c0_43, %c0_44] : memref<25x24x16xbf16, #tpu.memory_space<vmem>>, vector<1x24x16xbf16>
    %51 = vector.shape_cast %50 : vector<1x24x16xbf16> to vector<24x16xbf16>
    %52 = arith.truncf %49 : vector<16x64xf32> to vector<16x64xbf16>
    %cst_45 = arith.constant dense<0.000000e+00> : vector<24x64xf32>
    %53 = tpu.matmul %51, %52, %cst_45 {dimension_numbers = #tpu.dot_dimension_numbers<[1], [0], [0], [1], [0, 0, 1, 1], [], []>} : vector<24x16xbf16>, vector<16x64xbf16>, vector<24x64xf32> -> vector<24x64xf32>
    %54 = arith.addf %47, %53 : vector<24x64xf32>
    %c0_46 = arith.constant 0 : index
    %c256 = arith.constant 256 : index
    %55 = vector.load %arg5[%c0_46, %c256] : memref<144x1600xbf16, #tpu.memory_space<vmem>>, vector<144x64xbf16>
    %cst_47 = arith.constant dense<0.000000e+00> : vector<16x64xf32>
    %56 = tpu.matmul %25, %55, %cst_47 {dimension_numbers = #tpu.dot_dimension_numbers<[1], [0], [0], [1], [0, 0, 1, 1], [], []>} : vector<16x144xbf16>, vector<144x64xbf16>, vector<16x64xf32> -> vector<16x64xf32>
    %c4 = arith.constant 4 : index
    %c0_48 = arith.constant 0 : index
    %c0_49 = arith.constant 0 : index
    %57 = vector.load %arg6[%c4, %c0_48, %c0_49] : memref<25x24x16xbf16, #tpu.memory_space<vmem>>, vector<1x24x16xbf16>
    %58 = vector.shape_cast %57 : vector<1x24x16xbf16> to vector<24x16xbf16>
    %59 = arith.truncf %56 : vector<16x64xf32> to vector<16x64xbf16>
    %cst_50 = arith.constant dense<0.000000e+00> : vector<24x64xf32>
    %60 = tpu.matmul %58, %59, %cst_50 {dimension_numbers = #tpu.dot_dimension_numbers<[1], [0], [0], [1], [0, 0, 1, 1], [], []>} : vector<24x16xbf16>, vector<16x64xbf16>, vector<24x64xf32> -> vector<24x64xf32>
    %61 = arith.addf %54, %60 : vector<24x64xf32>
    %c0_51 = arith.constant 0 : index
    %c320 = arith.constant 320 : index
    %62 = vector.load %arg5[%c0_51, %c320] : memref<144x1600xbf16, #tpu.memory_space<vmem>>, vector<144x64xbf16>
    %cst_52 = arith.constant dense<0.000000e+00> : vector<16x64xf32>
    %63 = tpu.matmul %25, %62, %cst_52 {dimension_numbers = #tpu.dot_dimension_numbers<[1], [0], [0], [1], [0, 0, 1, 1], [], []>} : vector<16x144xbf16>, vector<144x64xbf16>, vector<16x64xf32> -> vector<16x64xf32>
    %c5 = arith.constant 5 : index
    %c0_53 = arith.constant 0 : index
    %c0_54 = arith.constant 0 : index
    %64 = vector.load %arg6[%c5, %c0_53, %c0_54] : memref<25x24x16xbf16, #tpu.memory_space<vmem>>, vector<1x24x16xbf16>
    %65 = vector.shape_cast %64 : vector<1x24x16xbf16> to vector<24x16xbf16>
    %66 = arith.truncf %63 : vector<16x64xf32> to vector<16x64xbf16>
    %cst_55 = arith.constant dense<0.000000e+00> : vector<24x64xf32>
    %67 = tpu.matmul %65, %66, %cst_55 {dimension_numbers = #tpu.dot_dimension_numbers<[1], [0], [0], [1], [0, 0, 1, 1], [], []>} : vector<24x16xbf16>, vector<16x64xbf16>, vector<24x64xf32> -> vector<24x64xf32>
    %68 = arith.addf %61, %67 : vector<24x64xf32>
    %c0_56 = arith.constant 0 : index
    %c384 = arith.constant 384 : index
    %69 = vector.load %arg5[%c0_56, %c384] : memref<144x1600xbf16, #tpu.memory_space<vmem>>, vector<144x64xbf16>
    %cst_57 = arith.constant dense<0.000000e+00> : vector<16x64xf32>
    %70 = tpu.matmul %25, %69, %cst_57 {dimension_numbers = #tpu.dot_dimension_numbers<[1], [0], [0], [1], [0, 0, 1, 1], [], []>} : vector<16x144xbf16>, vector<144x64xbf16>, vector<16x64xf32> -> vector<16x64xf32>
    %c6 = arith.constant 6 : index
    %c0_58 = arith.constant 0 : index
    %c0_59 = arith.constant 0 : index
    %71 = vector.load %arg6[%c6, %c0_58, %c0_59] : memref<25x24x16xbf16, #tpu.memory_space<vmem>>, vector<1x24x16xbf16>
    %72 = vector.shape_cast %71 : vector<1x24x16xbf16> to vector<24x16xbf16>
    %73 = arith.truncf %70 : vector<16x64xf32> to vector<16x64xbf16>
    %cst_60 = arith.constant dense<0.000000e+00> : vector<24x64xf32>
    %74 = tpu.matmul %72, %73, %cst_60 {dimension_numbers = #tpu.dot_dimension_numbers<[1], [0], [0], [1], [0, 0, 1, 1], [], []>} : vector<24x16xbf16>, vector<16x64xbf16>, vector<24x64xf32> -> vector<24x64xf32>
    %75 = arith.addf %68, %74 : vector<24x64xf32>
    %c0_61 = arith.constant 0 : index
    %c448 = arith.constant 448 : index
    %76 = vector.load %arg5[%c0_61, %c448] : memref<144x1600xbf16, #tpu.memory_space<vmem>>, vector<144x64xbf16>
    %cst_62 = arith.constant dense<0.000000e+00> : vector<16x64xf32>
    %77 = tpu.matmul %25, %76, %cst_62 {dimension_numbers = #tpu.dot_dimension_numbers<[1], [0], [0], [1], [0, 0, 1, 1], [], []>} : vector<16x144xbf16>, vector<144x64xbf16>, vector<16x64xf32> -> vector<16x64xf32>
    %c7 = arith.constant 7 : index
    %c0_63 = arith.constant 0 : index
    %c0_64 = arith.constant 0 : index
    %78 = vector.load %arg6[%c7, %c0_63, %c0_64] : memref<25x24x16xbf16, #tpu.memory_space<vmem>>, vector<1x24x16xbf16>
    %79 = vector.shape_cast %78 : vector<1x24x16xbf16> to vector<24x16xbf16>
    %80 = arith.truncf %77 : vector<16x64xf32> to vector<16x64xbf16>
    %cst_65 = arith.constant dense<0.000000e+00> : vector<24x64xf32>
    %81 = tpu.matmul %79, %80, %cst_65 {dimension_numbers = #tpu.dot_dimension_numbers<[1], [0], [0], [1], [0, 0, 1, 1], [], []>} : vector<24x16xbf16>, vector<16x64xbf16>, vector<24x64xf32> -> vector<24x64xf32>
    %82 = arith.addf %75, %81 : vector<24x64xf32>
    %c0_66 = arith.constant 0 : index
    %c512 = arith.constant 512 : index
    %83 = vector.load %arg5[%c0_66, %c512] : memref<144x1600xbf16, #tpu.memory_space<vmem>>, vector<144x64xbf16>
    %cst_67 = arith.constant dense<0.000000e+00> : vector<16x64xf32>
    %84 = tpu.matmul %25, %83, %cst_67 {dimension_numbers = #tpu.dot_dimension_numbers<[1], [0], [0], [1], [0, 0, 1, 1], [], []>} : vector<16x144xbf16>, vector<144x64xbf16>, vector<16x64xf32> -> vector<16x64xf32>
    %c8 = arith.constant 8 : index
    %c0_68 = arith.constant 0 : index
    %c0_69 = arith.constant 0 : index
    %85 = vector.load %arg6[%c8, %c0_68, %c0_69] : memref<25x24x16xbf16, #tpu.memory_space<vmem>>, vector<1x24x16xbf16>
    %86 = vector.shape_cast %85 : vector<1x24x16xbf16> to vector<24x16xbf16>
    %87 = arith.truncf %84 : vector<16x64xf32> to vector<16x64xbf16>
    %cst_70 = arith.constant dense<0.000000e+00> : vector<24x64xf32>
    %88 = tpu.matmul %86, %87, %cst_70 {dimension_numbers = #tpu.dot_dimension_numbers<[1], [0], [0], [1], [0, 0, 1, 1], [], []>} : vector<24x16xbf16>, vector<16x64xbf16>, vector<24x64xf32> -> vector<24x64xf32>
    %89 = arith.addf %82, %88 : vector<24x64xf32>
    %c0_71 = arith.constant 0 : index
    %c576 = arith.constant 576 : index
    %90 = vector.load %arg5[%c0_71, %c576] : memref<144x1600xbf16, #tpu.memory_space<vmem>>, vector<144x64xbf16>
    %cst_72 = arith.constant dense<0.000000e+00> : vector<16x64xf32>
    %91 = tpu.matmul %25, %90, %cst_72 {dimension_numbers = #tpu.dot_dimension_numbers<[1], [0], [0], [1], [0, 0, 1, 1], [], []>} : vector<16x144xbf16>, vector<144x64xbf16>, vector<16x64xf32> -> vector<16x64xf32>
    %c9 = arith.constant 9 : index
    %c0_73 = arith.constant 0 : index
    %c0_74 = arith.constant 0 : index
    %92 = vector.load %arg6[%c9, %c0_73, %c0_74] : memref<25x24x16xbf16, #tpu.memory_space<vmem>>, vector<1x24x16xbf16>
    %93 = vector.shape_cast %92 : vector<1x24x16xbf16> to vector<24x16xbf16>
    %94 = arith.truncf %91 : vector<16x64xf32> to vector<16x64xbf16>
    %cst_75 = arith.constant dense<0.000000e+00> : vector<24x64xf32>
    %95 = tpu.matmul %93, %94, %cst_75 {dimension_numbers = #tpu.dot_dimension_numbers<[1], [0], [0], [1], [0, 0, 1, 1], [], []>} : vector<24x16xbf16>, vector<16x64xbf16>, vector<24x64xf32> -> vector<24x64xf32>
    %96 = arith.addf %89, %95 : vector<24x64xf32>
    %c0_76 = arith.constant 0 : index
    %c640 = arith.constant 640 : index
    %97 = vector.load %arg5[%c0_76, %c640] : memref<144x1600xbf16, #tpu.memory_space<vmem>>, vector<144x64xbf16>
    %cst_77 = arith.constant dense<0.000000e+00> : vector<16x64xf32>
    %98 = tpu.matmul %25, %97, %cst_77 {dimension_numbers = #tpu.dot_dimension_numbers<[1], [0], [0], [1], [0, 0, 1, 1], [], []>} : vector<16x144xbf16>, vector<144x64xbf16>, vector<16x64xf32> -> vector<16x64xf32>
    %c10 = arith.constant 10 : index
    %c0_78 = arith.constant 0 : index
    %c0_79 = arith.constant 0 : index
    %99 = vector.load %arg6[%c10, %c0_78, %c0_79] : memref<25x24x16xbf16, #tpu.memory_space<vmem>>, vector<1x24x16xbf16>
    %100 = vector.shape_cast %99 : vector<1x24x16xbf16> to vector<24x16xbf16>
    %101 = arith.truncf %98 : vector<16x64xf32> to vector<16x64xbf16>
    %cst_80 = arith.constant dense<0.000000e+00> : vector<24x64xf32>
    %102 = tpu.matmul %100, %101, %cst_80 {dimension_numbers = #tpu.dot_dimension_numbers<[1], [0], [0], [1], [0, 0, 1, 1], [], []>} : vector<24x16xbf16>, vector<16x64xbf16>, vector<24x64xf32> -> vector<24x64xf32>
    %103 = arith.addf %96, %102 : vector<24x64xf32>
    %c0_81 = arith.constant 0 : index
    %c704 = arith.constant 704 : index
    %104 = vector.load %arg5[%c0_81, %c704] : memref<144x1600xbf16, #tpu.memory_space<vmem>>, vector<144x64xbf16>
    %cst_82 = arith.constant dense<0.000000e+00> : vector<16x64xf32>
    %105 = tpu.matmul %25, %104, %cst_82 {dimension_numbers = #tpu.dot_dimension_numbers<[1], [0], [0], [1], [0, 0, 1, 1], [], []>} : vector<16x144xbf16>, vector<144x64xbf16>, vector<16x64xf32> -> vector<16x64xf32>
    %c11 = arith.constant 11 : index
    %c0_83 = arith.constant 0 : index
    %c0_84 = arith.constant 0 : index
    %106 = vector.load %arg6[%c11, %c0_83, %c0_84] : memref<25x24x16xbf16, #tpu.memory_space<vmem>>, vector<1x24x16xbf16>
    %107 = vector.shape_cast %106 : vector<1x24x16xbf16> to vector<24x16xbf16>
    %108 = arith.truncf %105 : vector<16x64xf32> to vector<16x64xbf16>
    %cst_85 = arith.constant dense<0.000000e+00> : vector<24x64xf32>
    %109 = tpu.matmul %107, %108, %cst_85 {dimension_numbers = #tpu.dot_dimension_numbers<[1], [0], [0], [1], [0, 0, 1, 1], [], []>} : vector<24x16xbf16>, vector<16x64xbf16>, vector<24x64xf32> -> vector<24x64xf32>
    %110 = arith.addf %103, %109 : vector<24x64xf32>
    %c0_86 = arith.constant 0 : index
    %c768 = arith.constant 768 : index
    %111 = vector.load %arg5[%c0_86, %c768] : memref<144x1600xbf16, #tpu.memory_space<vmem>>, vector<144x64xbf16>
    %cst_87 = arith.constant dense<0.000000e+00> : vector<16x64xf32>
    %112 = tpu.matmul %25, %111, %cst_87 {dimension_numbers = #tpu.dot_dimension_numbers<[1], [0], [0], [1], [0, 0, 1, 1], [], []>} : vector<16x144xbf16>, vector<144x64xbf16>, vector<16x64xf32> -> vector<16x64xf32>
    %c12 = arith.constant 12 : index
    %c0_88 = arith.constant 0 : index
    %c0_89 = arith.constant 0 : index
    %113 = vector.load %arg6[%c12, %c0_88, %c0_89] : memref<25x24x16xbf16, #tpu.memory_space<vmem>>, vector<1x24x16xbf16>
    %114 = vector.shape_cast %113 : vector<1x24x16xbf16> to vector<24x16xbf16>
    %115 = arith.truncf %112 : vector<16x64xf32> to vector<16x64xbf16>
    %cst_90 = arith.constant dense<0.000000e+00> : vector<24x64xf32>
    %116 = tpu.matmul %114, %115, %cst_90 {dimension_numbers = #tpu.dot_dimension_numbers<[1], [0], [0], [1], [0, 0, 1, 1], [], []>} : vector<24x16xbf16>, vector<16x64xbf16>, vector<24x64xf32> -> vector<24x64xf32>
    %117 = arith.addf %110, %116 : vector<24x64xf32>
    %c0_91 = arith.constant 0 : index
    %c832 = arith.constant 832 : index
    %118 = vector.load %arg5[%c0_91, %c832] : memref<144x1600xbf16, #tpu.memory_space<vmem>>, vector<144x64xbf16>
    %cst_92 = arith.constant dense<0.000000e+00> : vector<16x64xf32>
    %119 = tpu.matmul %25, %118, %cst_92 {dimension_numbers = #tpu.dot_dimension_numbers<[1], [0], [0], [1], [0, 0, 1, 1], [], []>} : vector<16x144xbf16>, vector<144x64xbf16>, vector<16x64xf32> -> vector<16x64xf32>
    %c13 = arith.constant 13 : index
    %c0_93 = arith.constant 0 : index
    %c0_94 = arith.constant 0 : index
    %120 = vector.load %arg6[%c13, %c0_93, %c0_94] : memref<25x24x16xbf16, #tpu.memory_space<vmem>>, vector<1x24x16xbf16>
    %121 = vector.shape_cast %120 : vector<1x24x16xbf16> to vector<24x16xbf16>
    %122 = arith.truncf %119 : vector<16x64xf32> to vector<16x64xbf16>
    %cst_95 = arith.constant dense<0.000000e+00> : vector<24x64xf32>
    %123 = tpu.matmul %121, %122, %cst_95 {dimension_numbers = #tpu.dot_dimension_numbers<[1], [0], [0], [1], [0, 0, 1, 1], [], []>} : vector<24x16xbf16>, vector<16x64xbf16>, vector<24x64xf32> -> vector<24x64xf32>
    %124 = arith.addf %117, %123 : vector<24x64xf32>
    %c0_96 = arith.constant 0 : index
    %c896 = arith.constant 896 : index
    %125 = vector.load %arg5[%c0_96, %c896] : memref<144x1600xbf16, #tpu.memory_space<vmem>>, vector<144x64xbf16>
    %cst_97 = arith.constant dense<0.000000e+00> : vector<16x64xf32>
    %126 = tpu.matmul %25, %125, %cst_97 {dimension_numbers = #tpu.dot_dimension_numbers<[1], [0], [0], [1], [0, 0, 1, 1], [], []>} : vector<16x144xbf16>, vector<144x64xbf16>, vector<16x64xf32> -> vector<16x64xf32>
    %c14 = arith.constant 14 : index
    %c0_98 = arith.constant 0 : index
    %c0_99 = arith.constant 0 : index
    %127 = vector.load %arg6[%c14, %c0_98, %c0_99] : memref<25x24x16xbf16, #tpu.memory_space<vmem>>, vector<1x24x16xbf16>
    %128 = vector.shape_cast %127 : vector<1x24x16xbf16> to vector<24x16xbf16>
    %129 = arith.truncf %126 : vector<16x64xf32> to vector<16x64xbf16>
    %cst_100 = arith.constant dense<0.000000e+00> : vector<24x64xf32>
    %130 = tpu.matmul %128, %129, %cst_100 {dimension_numbers = #tpu.dot_dimension_numbers<[1], [0], [0], [1], [0, 0, 1, 1], [], []>} : vector<24x16xbf16>, vector<16x64xbf16>, vector<24x64xf32> -> vector<24x64xf32>
    %131 = arith.addf %124, %130 : vector<24x64xf32>
    %c0_101 = arith.constant 0 : index
    %c960 = arith.constant 960 : index
    %132 = vector.load %arg5[%c0_101, %c960] : memref<144x1600xbf16, #tpu.memory_space<vmem>>, vector<144x64xbf16>
    %cst_102 = arith.constant dense<0.000000e+00> : vector<16x64xf32>
    %133 = tpu.matmul %25, %132, %cst_102 {dimension_numbers = #tpu.dot_dimension_numbers<[1], [0], [0], [1], [0, 0, 1, 1], [], []>} : vector<16x144xbf16>, vector<144x64xbf16>, vector<16x64xf32> -> vector<16x64xf32>
    %c15 = arith.constant 15 : index
    %c0_103 = arith.constant 0 : index
    %c0_104 = arith.constant 0 : index
    %134 = vector.load %arg6[%c15, %c0_103, %c0_104] : memref<25x24x16xbf16, #tpu.memory_space<vmem>>, vector<1x24x16xbf16>
    %135 = vector.shape_cast %134 : vector<1x24x16xbf16> to vector<24x16xbf16>
    %136 = arith.truncf %133 : vector<16x64xf32> to vector<16x64xbf16>
    %cst_105 = arith.constant dense<0.000000e+00> : vector<24x64xf32>
    %137 = tpu.matmul %135, %136, %cst_105 {dimension_numbers = #tpu.dot_dimension_numbers<[1], [0], [0], [1], [0, 0, 1, 1], [], []>} : vector<24x16xbf16>, vector<16x64xbf16>, vector<24x64xf32> -> vector<24x64xf32>
    %138 = arith.addf %131, %137 : vector<24x64xf32>
    %c0_106 = arith.constant 0 : index
    %c1024 = arith.constant 1024 : index
    %139 = vector.load %arg5[%c0_106, %c1024] : memref<144x1600xbf16, #tpu.memory_space<vmem>>, vector<144x64xbf16>
    %cst_107 = arith.constant dense<0.000000e+00> : vector<16x64xf32>
    %140 = tpu.matmul %25, %139, %cst_107 {dimension_numbers = #tpu.dot_dimension_numbers<[1], [0], [0], [1], [0, 0, 1, 1], [], []>} : vector<16x144xbf16>, vector<144x64xbf16>, vector<16x64xf32> -> vector<16x64xf32>
    %c16 = arith.constant 16 : index
    %c0_108 = arith.constant 0 : index
    %c0_109 = arith.constant 0 : index
    %141 = vector.load %arg6[%c16, %c0_108, %c0_109] : memref<25x24x16xbf16, #tpu.memory_space<vmem>>, vector<1x24x16xbf16>
    %142 = vector.shape_cast %141 : vector<1x24x16xbf16> to vector<24x16xbf16>
    %143 = arith.truncf %140 : vector<16x64xf32> to vector<16x64xbf16>
    %cst_110 = arith.constant dense<0.000000e+00> : vector<24x64xf32>
    %144 = tpu.matmul %142, %143, %cst_110 {dimension_numbers = #tpu.dot_dimension_numbers<[1], [0], [0], [1], [0, 0, 1, 1], [], []>} : vector<24x16xbf16>, vector<16x64xbf16>, vector<24x64xf32> -> vector<24x64xf32>
    %145 = arith.addf %138, %144 : vector<24x64xf32>
    %c0_111 = arith.constant 0 : index
    %c1088 = arith.constant 1088 : index
    %146 = vector.load %arg5[%c0_111, %c1088] : memref<144x1600xbf16, #tpu.memory_space<vmem>>, vector<144x64xbf16>
    %cst_112 = arith.constant dense<0.000000e+00> : vector<16x64xf32>
    %147 = tpu.matmul %25, %146, %cst_112 {dimension_numbers = #tpu.dot_dimension_numbers<[1], [0], [0], [1], [0, 0, 1, 1], [], []>} : vector<16x144xbf16>, vector<144x64xbf16>, vector<16x64xf32> -> vector<16x64xf32>
    %c17 = arith.constant 17 : index
    %c0_113 = arith.constant 0 : index
    %c0_114 = arith.constant 0 : index
    %148 = vector.load %arg6[%c17, %c0_113, %c0_114] : memref<25x24x16xbf16, #tpu.memory_space<vmem>>, vector<1x24x16xbf16>
    %149 = vector.shape_cast %148 : vector<1x24x16xbf16> to vector<24x16xbf16>
    %150 = arith.truncf %147 : vector<16x64xf32> to vector<16x64xbf16>
    %cst_115 = arith.constant dense<0.000000e+00> : vector<24x64xf32>
    %151 = tpu.matmul %149, %150, %cst_115 {dimension_numbers = #tpu.dot_dimension_numbers<[1], [0], [0], [1], [0, 0, 1, 1], [], []>} : vector<24x16xbf16>, vector<16x64xbf16>, vector<24x64xf32> -> vector<24x64xf32>
    %152 = arith.addf %145, %151 : vector<24x64xf32>
    %c0_116 = arith.constant 0 : index
    %c1152 = arith.constant 1152 : index
    %153 = vector.load %arg5[%c0_116, %c1152] : memref<144x1600xbf16, #tpu.memory_space<vmem>>, vector<144x64xbf16>
    %cst_117 = arith.constant dense<0.000000e+00> : vector<16x64xf32>
    %154 = tpu.matmul %25, %153, %cst_117 {dimension_numbers = #tpu.dot_dimension_numbers<[1], [0], [0], [1], [0, 0, 1, 1], [], []>} : vector<16x144xbf16>, vector<144x64xbf16>, vector<16x64xf32> -> vector<16x64xf32>
    %c18 = arith.constant 18 : index
    %c0_118 = arith.constant 0 : index
    %c0_119 = arith.constant 0 : index
    %155 = vector.load %arg6[%c18, %c0_118, %c0_119] : memref<25x24x16xbf16, #tpu.memory_space<vmem>>, vector<1x24x16xbf16>
    %156 = vector.shape_cast %155 : vector<1x24x16xbf16> to vector<24x16xbf16>
    %157 = arith.truncf %154 : vector<16x64xf32> to vector<16x64xbf16>
    %cst_120 = arith.constant dense<0.000000e+00> : vector<24x64xf32>
    %158 = tpu.matmul %156, %157, %cst_120 {dimension_numbers = #tpu.dot_dimension_numbers<[1], [0], [0], [1], [0, 0, 1, 1], [], []>} : vector<24x16xbf16>, vector<16x64xbf16>, vector<24x64xf32> -> vector<24x64xf32>
    %159 = arith.addf %152, %158 : vector<24x64xf32>
    %c0_121 = arith.constant 0 : index
    %c1216 = arith.constant 1216 : index
    %160 = vector.load %arg5[%c0_121, %c1216] : memref<144x1600xbf16, #tpu.memory_space<vmem>>, vector<144x64xbf16>
    %cst_122 = arith.constant dense<0.000000e+00> : vector<16x64xf32>
    %161 = tpu.matmul %25, %160, %cst_122 {dimension_numbers = #tpu.dot_dimension_numbers<[1], [0], [0], [1], [0, 0, 1, 1], [], []>} : vector<16x144xbf16>, vector<144x64xbf16>, vector<16x64xf32> -> vector<16x64xf32>
    %c19 = arith.constant 19 : index
    %c0_123 = arith.constant 0 : index
    %c0_124 = arith.constant 0 : index
    %162 = vector.load %arg6[%c19, %c0_123, %c0_124] : memref<25x24x16xbf16, #tpu.memory_space<vmem>>, vector<1x24x16xbf16>
    %163 = vector.shape_cast %162 : vector<1x24x16xbf16> to vector<24x16xbf16>
    %164 = arith.truncf %161 : vector<16x64xf32> to vector<16x64xbf16>
    %cst_125 = arith.constant dense<0.000000e+00> : vector<24x64xf32>
    %165 = tpu.matmul %163, %164, %cst_125 {dimension_numbers = #tpu.dot_dimension_numbers<[1], [0], [0], [1], [0, 0, 1, 1], [], []>} : vector<24x16xbf16>, vector<16x64xbf16>, vector<24x64xf32> -> vector<24x64xf32>
    %166 = arith.addf %159, %165 : vector<24x64xf32>
    %c0_126 = arith.constant 0 : index
    %c1280 = arith.constant 1280 : index
    %167 = vector.load %arg5[%c0_126, %c1280] : memref<144x1600xbf16, #tpu.memory_space<vmem>>, vector<144x64xbf16>
    %cst_127 = arith.constant dense<0.000000e+00> : vector<16x64xf32>
    %168 = tpu.matmul %25, %167, %cst_127 {dimension_numbers = #tpu.dot_dimension_numbers<[1], [0], [0], [1], [0, 0, 1, 1], [], []>} : vector<16x144xbf16>, vector<144x64xbf16>, vector<16x64xf32> -> vector<16x64xf32>
    %c20 = arith.constant 20 : index
    %c0_128 = arith.constant 0 : index
    %c0_129 = arith.constant 0 : index
    %169 = vector.load %arg6[%c20, %c0_128, %c0_129] : memref<25x24x16xbf16, #tpu.memory_space<vmem>>, vector<1x24x16xbf16>
    %170 = vector.shape_cast %169 : vector<1x24x16xbf16> to vector<24x16xbf16>
    %171 = arith.truncf %168 : vector<16x64xf32> to vector<16x64xbf16>
    %cst_130 = arith.constant dense<0.000000e+00> : vector<24x64xf32>
    %172 = tpu.matmul %170, %171, %cst_130 {dimension_numbers = #tpu.dot_dimension_numbers<[1], [0], [0], [1], [0, 0, 1, 1], [], []>} : vector<24x16xbf16>, vector<16x64xbf16>, vector<24x64xf32> -> vector<24x64xf32>
    %173 = arith.addf %166, %172 : vector<24x64xf32>
    %c0_131 = arith.constant 0 : index
    %c1344 = arith.constant 1344 : index
    %174 = vector.load %arg5[%c0_131, %c1344] : memref<144x1600xbf16, #tpu.memory_space<vmem>>, vector<144x64xbf16>
    %cst_132 = arith.constant dense<0.000000e+00> : vector<16x64xf32>
    %175 = tpu.matmul %25, %174, %cst_132 {dimension_numbers = #tpu.dot_dimension_numbers<[1], [0], [0], [1], [0, 0, 1, 1], [], []>} : vector<16x144xbf16>, vector<144x64xbf16>, vector<16x64xf32> -> vector<16x64xf32>
    %c21 = arith.constant 21 : index
    %c0_133 = arith.constant 0 : index
    %c0_134 = arith.constant 0 : index
    %176 = vector.load %arg6[%c21, %c0_133, %c0_134] : memref<25x24x16xbf16, #tpu.memory_space<vmem>>, vector<1x24x16xbf16>
    %177 = vector.shape_cast %176 : vector<1x24x16xbf16> to vector<24x16xbf16>
    %178 = arith.truncf %175 : vector<16x64xf32> to vector<16x64xbf16>
    %cst_135 = arith.constant dense<0.000000e+00> : vector<24x64xf32>
    %179 = tpu.matmul %177, %178, %cst_135 {dimension_numbers = #tpu.dot_dimension_numbers<[1], [0], [0], [1], [0, 0, 1, 1], [], []>} : vector<24x16xbf16>, vector<16x64xbf16>, vector<24x64xf32> -> vector<24x64xf32>
    %180 = arith.addf %173, %179 : vector<24x64xf32>
    %c0_136 = arith.constant 0 : index
    %c1408 = arith.constant 1408 : index
    %181 = vector.load %arg5[%c0_136, %c1408] : memref<144x1600xbf16, #tpu.memory_space<vmem>>, vector<144x64xbf16>
    %cst_137 = arith.constant dense<0.000000e+00> : vector<16x64xf32>
    %182 = tpu.matmul %25, %181, %cst_137 {dimension_numbers = #tpu.dot_dimension_numbers<[1], [0], [0], [1], [0, 0, 1, 1], [], []>} : vector<16x144xbf16>, vector<144x64xbf16>, vector<16x64xf32> -> vector<16x64xf32>
    %c22 = arith.constant 22 : index
    %c0_138 = arith.constant 0 : index
    %c0_139 = arith.constant 0 : index
    %183 = vector.load %arg6[%c22, %c0_138, %c0_139] : memref<25x24x16xbf16, #tpu.memory_space<vmem>>, vector<1x24x16xbf16>
    %184 = vector.shape_cast %183 : vector<1x24x16xbf16> to vector<24x16xbf16>
    %185 = arith.truncf %182 : vector<16x64xf32> to vector<16x64xbf16>
    %cst_140 = arith.constant dense<0.000000e+00> : vector<24x64xf32>
    %186 = tpu.matmul %184, %185, %cst_140 {dimension_numbers = #tpu.dot_dimension_numbers<[1], [0], [0], [1], [0, 0, 1, 1], [], []>} : vector<24x16xbf16>, vector<16x64xbf16>, vector<24x64xf32> -> vector<24x64xf32>
    %187 = arith.addf %180, %186 : vector<24x64xf32>
    %c0_141 = arith.constant 0 : index
    %c1472 = arith.constant 1472 : index
    %188 = vector.load %arg5[%c0_141, %c1472] : memref<144x1600xbf16, #tpu.memory_space<vmem>>, vector<144x64xbf16>
    %cst_142 = arith.constant dense<0.000000e+00> : vector<16x64xf32>
    %189 = tpu.matmul %25, %188, %cst_142 {dimension_numbers = #tpu.dot_dimension_numbers<[1], [0], [0], [1], [0, 0, 1, 1], [], []>} : vector<16x144xbf16>, vector<144x64xbf16>, vector<16x64xf32> -> vector<16x64xf32>
    %c23 = arith.constant 23 : index
    %c0_143 = arith.constant 0 : index
    %c0_144 = arith.constant 0 : index
    %190 = vector.load %arg6[%c23, %c0_143, %c0_144] : memref<25x24x16xbf16, #tpu.memory_space<vmem>>, vector<1x24x16xbf16>
    %191 = vector.shape_cast %190 : vector<1x24x16xbf16> to vector<24x16xbf16>
    %192 = arith.truncf %189 : vector<16x64xf32> to vector<16x64xbf16>
    %cst_145 = arith.constant dense<0.000000e+00> : vector<24x64xf32>
    %193 = tpu.matmul %191, %192, %cst_145 {dimension_numbers = #tpu.dot_dimension_numbers<[1], [0], [0], [1], [0, 0, 1, 1], [], []>} : vector<24x16xbf16>, vector<16x64xbf16>, vector<24x64xf32> -> vector<24x64xf32>
    %194 = arith.addf %187, %193 : vector<24x64xf32>
    %c0_146 = arith.constant 0 : index
    %c1536 = arith.constant 1536 : index
    %195 = vector.load %arg5[%c0_146, %c1536] : memref<144x1600xbf16, #tpu.memory_space<vmem>>, vector<144x64xbf16>
    %cst_147 = arith.constant dense<0.000000e+00> : vector<16x64xf32>
    %196 = tpu.matmul %25, %195, %cst_147 {dimension_numbers = #tpu.dot_dimension_numbers<[1], [0], [0], [1], [0, 0, 1, 1], [], []>} : vector<16x144xbf16>, vector<144x64xbf16>, vector<16x64xf32> -> vector<16x64xf32>
    %c24 = arith.constant 24 : index
    %c0_148 = arith.constant 0 : index
    %c0_149 = arith.constant 0 : index
    %197 = vector.load %arg6[%c24, %c0_148, %c0_149] : memref<25x24x16xbf16, #tpu.memory_space<vmem>>, vector<1x24x16xbf16>
    %198 = vector.shape_cast %197 : vector<1x24x16xbf16> to vector<24x16xbf16>
    %199 = arith.truncf %196 : vector<16x64xf32> to vector<16x64xbf16>
    %cst_150 = arith.constant dense<0.000000e+00> : vector<24x64xf32>
    %200 = tpu.matmul %198, %199, %cst_150 {dimension_numbers = #tpu.dot_dimension_numbers<[1], [0], [0], [1], [0, 0, 1, 1], [], []>} : vector<24x16xbf16>, vector<16x64xbf16>, vector<24x64xf32> -> vector<24x64xf32>
    %201 = arith.addf %194, %200 : vector<24x64xf32>
    %c0_151 = arith.constant 0 : index
    %c0_152 = arith.constant 0 : index
    %202 = vector.load %arg7[%c0_151, %c0_152] : memref<24x1xf32, #tpu.memory_space<vmem>>, vector<24x1xf32>
    %203 = vector.broadcast %202 : vector<24x1xf32> to vector<24x64xf32>
    %204 = arith.addf %201, %203 : vector<24x64xf32>
    %205 = arith.truncf %204 : vector<24x64xf32> to vector<24x64xbf16>
    %c0_153 = arith.constant 0 : index
    %c0_154 = arith.constant 0 : index
    %c0_155 = arith.constant 0 : index
    %206 = vector.load %arg8[%c0_153, %c0_154, %c0_155] : memref<4x64x16xbf16, #tpu.memory_space<vmem>>, vector<1x64x16xbf16>
    %207 = vector.shape_cast %206 : vector<1x64x16xbf16> to vector<64x16xbf16>
    %cst_156 = arith.constant dense<0.000000e+00> : vector<24x16xf32>
    %208 = tpu.matmul %205, %207, %cst_156 {dimension_numbers = #tpu.dot_dimension_numbers<[1], [0], [0], [1], [0, 0, 1, 1], [], []>} : vector<24x64xbf16>, vector<64x16xbf16>, vector<24x16xf32> -> vector<24x16xf32>
    %c1_157 = arith.constant 1 : index
    %c0_158 = arith.constant 0 : index
    %c0_159 = arith.constant 0 : index
    %209 = vector.load %arg8[%c1_157, %c0_158, %c0_159] : memref<4x64x16xbf16, #tpu.memory_space<vmem>>, vector<1x64x16xbf16>
    %210 = vector.shape_cast %209 : vector<1x64x16xbf16> to vector<64x16xbf16>
    %cst_160 = arith.constant dense<0.000000e+00> : vector<24x16xf32>
    %211 = tpu.matmul %205, %210, %cst_160 {dimension_numbers = #tpu.dot_dimension_numbers<[1], [0], [0], [1], [0, 0, 1, 1], [], []>} : vector<24x64xbf16>, vector<64x16xbf16>, vector<24x16xf32> -> vector<24x16xf32>
    %c2_161 = arith.constant 2 : index
    %c0_162 = arith.constant 0 : index
    %c0_163 = arith.constant 0 : index
    %212 = vector.load %arg8[%c2_161, %c0_162, %c0_163] : memref<4x64x16xbf16, #tpu.memory_space<vmem>>, vector<1x64x16xbf16>
    %213 = vector.shape_cast %212 : vector<1x64x16xbf16> to vector<64x16xbf16>
    %cst_164 = arith.constant dense<0.000000e+00> : vector<24x16xf32>
    %214 = tpu.matmul %205, %213, %cst_164 {dimension_numbers = #tpu.dot_dimension_numbers<[1], [0], [0], [1], [0, 0, 1, 1], [], []>} : vector<24x64xbf16>, vector<64x16xbf16>, vector<24x16xf32> -> vector<24x16xf32>
    %c3_165 = arith.constant 3 : index
    %c0_166 = arith.constant 0 : index
    %c0_167 = arith.constant 0 : index
    %215 = vector.load %arg8[%c3_165, %c0_166, %c0_167] : memref<4x64x16xbf16, #tpu.memory_space<vmem>>, vector<1x64x16xbf16>
    %216 = vector.shape_cast %215 : vector<1x64x16xbf16> to vector<64x16xbf16>
    %cst_168 = arith.constant dense<0.000000e+00> : vector<24x16xf32>
    %217 = tpu.matmul %205, %216, %cst_168 {dimension_numbers = #tpu.dot_dimension_numbers<[1], [0], [0], [1], [0, 0, 1, 1], [], []>} : vector<24x64xbf16>, vector<64x16xbf16>, vector<24x16xf32> -> vector<24x16xf32>
    %218 = arith.maximumf %208, %211 : vector<24x16xf32>
    %219 = arith.maximumf %214, %217 : vector<24x16xf32>
    %220 = arith.maximumf %218, %219 : vector<24x16xf32>
    %cst_169 = arith.constant 0.000000e+00 : f32
    %221 = vector.broadcast %cst_169 : f32 to vector<24x16xf32>
    %222 = arith.maximumf %220, %221 : vector<24x16xf32>
    %cst_170 = arith.constant 0.000000e+00 : f32
    %223 = vector.broadcast %cst_170 : f32 to vector<1x56xf32>
    %224 = vector.extract_strided_slice %222 {offsets = [0, 0], sizes = [1, 16], strides = [1, 1]} : vector<24x16xf32> to vector<1x16xf32>
    %225 = arith.truncf %224 : vector<1x16xf32> to vector<1x16xbf16>
    %c0_171 = arith.constant 0 : index
    %c0_172 = arith.constant 0 : index
    %c0_173 = arith.constant 0 : index
    %226 = vector.load %arg9[%c0_171, %c0_172, %c0_173] : memref<24x16x56xbf16, #tpu.memory_space<vmem>>, vector<1x16x56xbf16>
    %227 = vector.shape_cast %226 : vector<1x16x56xbf16> to vector<16x56xbf16>
    %cst_174 = arith.constant dense<0.000000e+00> : vector<1x56xf32>
    %228 = tpu.matmul %225, %227, %cst_174 {dimension_numbers = #tpu.dot_dimension_numbers<[1], [0], [0], [1], [0, 0, 1, 1], [], []>} : vector<1x16xbf16>, vector<16x56xbf16>, vector<1x56xf32> -> vector<1x56xf32>
    %229 = arith.addf %223, %228 : vector<1x56xf32>
    %230 = vector.extract_strided_slice %222 {offsets = [1, 0], sizes = [1, 16], strides = [1, 1]} : vector<24x16xf32> to vector<1x16xf32>
    %231 = arith.truncf %230 : vector<1x16xf32> to vector<1x16xbf16>
    %c1_175 = arith.constant 1 : index
    %c0_176 = arith.constant 0 : index
    %c0_177 = arith.constant 0 : index
    %232 = vector.load %arg9[%c1_175, %c0_176, %c0_177] : memref<24x16x56xbf16, #tpu.memory_space<vmem>>, vector<1x16x56xbf16>
    %233 = vector.shape_cast %232 : vector<1x16x56xbf16> to vector<16x56xbf16>
    %cst_178 = arith.constant dense<0.000000e+00> : vector<1x56xf32>
    %234 = tpu.matmul %231, %233, %cst_178 {dimension_numbers = #tpu.dot_dimension_numbers<[1], [0], [0], [1], [0, 0, 1, 1], [], []>} : vector<1x16xbf16>, vector<16x56xbf16>, vector<1x56xf32> -> vector<1x56xf32>
    %235 = arith.addf %229, %234 : vector<1x56xf32>
    %236 = vector.extract_strided_slice %222 {offsets = [2, 0], sizes = [1, 16], strides = [1, 1]} : vector<24x16xf32> to vector<1x16xf32>
    %237 = arith.truncf %236 : vector<1x16xf32> to vector<1x16xbf16>
    %c2_179 = arith.constant 2 : index
    %c0_180 = arith.constant 0 : index
    %c0_181 = arith.constant 0 : index
    %238 = vector.load %arg9[%c2_179, %c0_180, %c0_181] : memref<24x16x56xbf16, #tpu.memory_space<vmem>>, vector<1x16x56xbf16>
    %239 = vector.shape_cast %238 : vector<1x16x56xbf16> to vector<16x56xbf16>
    %cst_182 = arith.constant dense<0.000000e+00> : vector<1x56xf32>
    %240 = tpu.matmul %237, %239, %cst_182 {dimension_numbers = #tpu.dot_dimension_numbers<[1], [0], [0], [1], [0, 0, 1, 1], [], []>} : vector<1x16xbf16>, vector<16x56xbf16>, vector<1x56xf32> -> vector<1x56xf32>
    %241 = arith.addf %235, %240 : vector<1x56xf32>
    %242 = vector.extract_strided_slice %222 {offsets = [3, 0], sizes = [1, 16], strides = [1, 1]} : vector<24x16xf32> to vector<1x16xf32>
    %243 = arith.truncf %242 : vector<1x16xf32> to vector<1x16xbf16>
    %c3_183 = arith.constant 3 : index
    %c0_184 = arith.constant 0 : index
    %c0_185 = arith.constant 0 : index
    %244 = vector.load %arg9[%c3_183, %c0_184, %c0_185] : memref<24x16x56xbf16, #tpu.memory_space<vmem>>, vector<1x16x56xbf16>
    %245 = vector.shape_cast %244 : vector<1x16x56xbf16> to vector<16x56xbf16>
    %cst_186 = arith.constant dense<0.000000e+00> : vector<1x56xf32>
    %246 = tpu.matmul %243, %245, %cst_186 {dimension_numbers = #tpu.dot_dimension_numbers<[1], [0], [0], [1], [0, 0, 1, 1], [], []>} : vector<1x16xbf16>, vector<16x56xbf16>, vector<1x56xf32> -> vector<1x56xf32>
    %247 = arith.addf %241, %246 : vector<1x56xf32>
    %248 = vector.extract_strided_slice %222 {offsets = [4, 0], sizes = [1, 16], strides = [1, 1]} : vector<24x16xf32> to vector<1x16xf32>
    %249 = arith.truncf %248 : vector<1x16xf32> to vector<1x16xbf16>
    %c4_187 = arith.constant 4 : index
    %c0_188 = arith.constant 0 : index
    %c0_189 = arith.constant 0 : index
    %250 = vector.load %arg9[%c4_187, %c0_188, %c0_189] : memref<24x16x56xbf16, #tpu.memory_space<vmem>>, vector<1x16x56xbf16>
    %251 = vector.shape_cast %250 : vector<1x16x56xbf16> to vector<16x56xbf16>
    %cst_190 = arith.constant dense<0.000000e+00> : vector<1x56xf32>
    %252 = tpu.matmul %249, %251, %cst_190 {dimension_numbers = #tpu.dot_dimension_numbers<[1], [0], [0], [1], [0, 0, 1, 1], [], []>} : vector<1x16xbf16>, vector<16x56xbf16>, vector<1x56xf32> -> vector<1x56xf32>
    %253 = arith.addf %247, %252 : vector<1x56xf32>
    %254 = vector.extract_strided_slice %222 {offsets = [5, 0], sizes = [1, 16], strides = [1, 1]} : vector<24x16xf32> to vector<1x16xf32>
    %255 = arith.truncf %254 : vector<1x16xf32> to vector<1x16xbf16>
    %c5_191 = arith.constant 5 : index
    %c0_192 = arith.constant 0 : index
    %c0_193 = arith.constant 0 : index
    %256 = vector.load %arg9[%c5_191, %c0_192, %c0_193] : memref<24x16x56xbf16, #tpu.memory_space<vmem>>, vector<1x16x56xbf16>
    %257 = vector.shape_cast %256 : vector<1x16x56xbf16> to vector<16x56xbf16>
    %cst_194 = arith.constant dense<0.000000e+00> : vector<1x56xf32>
    %258 = tpu.matmul %255, %257, %cst_194 {dimension_numbers = #tpu.dot_dimension_numbers<[1], [0], [0], [1], [0, 0, 1, 1], [], []>} : vector<1x16xbf16>, vector<16x56xbf16>, vector<1x56xf32> -> vector<1x56xf32>
    %259 = arith.addf %253, %258 : vector<1x56xf32>
    %260 = vector.extract_strided_slice %222 {offsets = [6, 0], sizes = [1, 16], strides = [1, 1]} : vector<24x16xf32> to vector<1x16xf32>
    %261 = arith.truncf %260 : vector<1x16xf32> to vector<1x16xbf16>
    %c6_195 = arith.constant 6 : index
    %c0_196 = arith.constant 0 : index
    %c0_197 = arith.constant 0 : index
    %262 = vector.load %arg9[%c6_195, %c0_196, %c0_197] : memref<24x16x56xbf16, #tpu.memory_space<vmem>>, vector<1x16x56xbf16>
    %263 = vector.shape_cast %262 : vector<1x16x56xbf16> to vector<16x56xbf16>
    %cst_198 = arith.constant dense<0.000000e+00> : vector<1x56xf32>
    %264 = tpu.matmul %261, %263, %cst_198 {dimension_numbers = #tpu.dot_dimension_numbers<[1], [0], [0], [1], [0, 0, 1, 1], [], []>} : vector<1x16xbf16>, vector<16x56xbf16>, vector<1x56xf32> -> vector<1x56xf32>
    %265 = arith.addf %259, %264 : vector<1x56xf32>
    %266 = vector.extract_strided_slice %222 {offsets = [7, 0], sizes = [1, 16], strides = [1, 1]} : vector<24x16xf32> to vector<1x16xf32>
    %267 = arith.truncf %266 : vector<1x16xf32> to vector<1x16xbf16>
    %c7_199 = arith.constant 7 : index
    %c0_200 = arith.constant 0 : index
    %c0_201 = arith.constant 0 : index
    %268 = vector.load %arg9[%c7_199, %c0_200, %c0_201] : memref<24x16x56xbf16, #tpu.memory_space<vmem>>, vector<1x16x56xbf16>
    %269 = vector.shape_cast %268 : vector<1x16x56xbf16> to vector<16x56xbf16>
    %cst_202 = arith.constant dense<0.000000e+00> : vector<1x56xf32>
    %270 = tpu.matmul %267, %269, %cst_202 {dimension_numbers = #tpu.dot_dimension_numbers<[1], [0], [0], [1], [0, 0, 1, 1], [], []>} : vector<1x16xbf16>, vector<16x56xbf16>, vector<1x56xf32> -> vector<1x56xf32>
    %271 = arith.addf %265, %270 : vector<1x56xf32>
    %272 = vector.extract_strided_slice %222 {offsets = [8, 0], sizes = [1, 16], strides = [1, 1]} : vector<24x16xf32> to vector<1x16xf32>
    %273 = arith.truncf %272 : vector<1x16xf32> to vector<1x16xbf16>
    %c8_203 = arith.constant 8 : index
    %c0_204 = arith.constant 0 : index
    %c0_205 = arith.constant 0 : index
    %274 = vector.load %arg9[%c8_203, %c0_204, %c0_205] : memref<24x16x56xbf16, #tpu.memory_space<vmem>>, vector<1x16x56xbf16>
    %275 = vector.shape_cast %274 : vector<1x16x56xbf16> to vector<16x56xbf16>
    %cst_206 = arith.constant dense<0.000000e+00> : vector<1x56xf32>
    %276 = tpu.matmul %273, %275, %cst_206 {dimension_numbers = #tpu.dot_dimension_numbers<[1], [0], [0], [1], [0, 0, 1, 1], [], []>} : vector<1x16xbf16>, vector<16x56xbf16>, vector<1x56xf32> -> vector<1x56xf32>
    %277 = arith.addf %271, %276 : vector<1x56xf32>
    %278 = vector.extract_strided_slice %222 {offsets = [9, 0], sizes = [1, 16], strides = [1, 1]} : vector<24x16xf32> to vector<1x16xf32>
    %279 = arith.truncf %278 : vector<1x16xf32> to vector<1x16xbf16>
    %c9_207 = arith.constant 9 : index
    %c0_208 = arith.constant 0 : index
    %c0_209 = arith.constant 0 : index
    %280 = vector.load %arg9[%c9_207, %c0_208, %c0_209] : memref<24x16x56xbf16, #tpu.memory_space<vmem>>, vector<1x16x56xbf16>
    %281 = vector.shape_cast %280 : vector<1x16x56xbf16> to vector<16x56xbf16>
    %cst_210 = arith.constant dense<0.000000e+00> : vector<1x56xf32>
    %282 = tpu.matmul %279, %281, %cst_210 {dimension_numbers = #tpu.dot_dimension_numbers<[1], [0], [0], [1], [0, 0, 1, 1], [], []>} : vector<1x16xbf16>, vector<16x56xbf16>, vector<1x56xf32> -> vector<1x56xf32>
    %283 = arith.addf %277, %282 : vector<1x56xf32>
    %284 = vector.extract_strided_slice %222 {offsets = [10, 0], sizes = [1, 16], strides = [1, 1]} : vector<24x16xf32> to vector<1x16xf32>
    %285 = arith.truncf %284 : vector<1x16xf32> to vector<1x16xbf16>
    %c10_211 = arith.constant 10 : index
    %c0_212 = arith.constant 0 : index
    %c0_213 = arith.constant 0 : index
    %286 = vector.load %arg9[%c10_211, %c0_212, %c0_213] : memref<24x16x56xbf16, #tpu.memory_space<vmem>>, vector<1x16x56xbf16>
    %287 = vector.shape_cast %286 : vector<1x16x56xbf16> to vector<16x56xbf16>
    %cst_214 = arith.constant dense<0.000000e+00> : vector<1x56xf32>
    %288 = tpu.matmul %285, %287, %cst_214 {dimension_numbers = #tpu.dot_dimension_numbers<[1], [0], [0], [1], [0, 0, 1, 1], [], []>} : vector<1x16xbf16>, vector<16x56xbf16>, vector<1x56xf32> -> vector<1x56xf32>
    %289 = arith.addf %283, %288 : vector<1x56xf32>
    %290 = vector.extract_strided_slice %222 {offsets = [11, 0], sizes = [1, 16], strides = [1, 1]} : vector<24x16xf32> to vector<1x16xf32>
    %291 = arith.truncf %290 : vector<1x16xf32> to vector<1x16xbf16>
    %c11_215 = arith.constant 11 : index
    %c0_216 = arith.constant 0 : index
    %c0_217 = arith.constant 0 : index
    %292 = vector.load %arg9[%c11_215, %c0_216, %c0_217] : memref<24x16x56xbf16, #tpu.memory_space<vmem>>, vector<1x16x56xbf16>
    %293 = vector.shape_cast %292 : vector<1x16x56xbf16> to vector<16x56xbf16>
    %cst_218 = arith.constant dense<0.000000e+00> : vector<1x56xf32>
    %294 = tpu.matmul %291, %293, %cst_218 {dimension_numbers = #tpu.dot_dimension_numbers<[1], [0], [0], [1], [0, 0, 1, 1], [], []>} : vector<1x16xbf16>, vector<16x56xbf16>, vector<1x56xf32> -> vector<1x56xf32>
    %295 = arith.addf %289, %294 : vector<1x56xf32>
    %296 = vector.extract_strided_slice %222 {offsets = [12, 0], sizes = [1, 16], strides = [1, 1]} : vector<24x16xf32> to vector<1x16xf32>
    %297 = arith.truncf %296 : vector<1x16xf32> to vector<1x16xbf16>
    %c12_219 = arith.constant 12 : index
    %c0_220 = arith.constant 0 : index
    %c0_221 = arith.constant 0 : index
    %298 = vector.load %arg9[%c12_219, %c0_220, %c0_221] : memref<24x16x56xbf16, #tpu.memory_space<vmem>>, vector<1x16x56xbf16>
    %299 = vector.shape_cast %298 : vector<1x16x56xbf16> to vector<16x56xbf16>
    %cst_222 = arith.constant dense<0.000000e+00> : vector<1x56xf32>
    %300 = tpu.matmul %297, %299, %cst_222 {dimension_numbers = #tpu.dot_dimension_numbers<[1], [0], [0], [1], [0, 0, 1, 1], [], []>} : vector<1x16xbf16>, vector<16x56xbf16>, vector<1x56xf32> -> vector<1x56xf32>
    %301 = arith.addf %295, %300 : vector<1x56xf32>
    %302 = vector.extract_strided_slice %222 {offsets = [13, 0], sizes = [1, 16], strides = [1, 1]} : vector<24x16xf32> to vector<1x16xf32>
    %303 = arith.truncf %302 : vector<1x16xf32> to vector<1x16xbf16>
    %c13_223 = arith.constant 13 : index
    %c0_224 = arith.constant 0 : index
    %c0_225 = arith.constant 0 : index
    %304 = vector.load %arg9[%c13_223, %c0_224, %c0_225] : memref<24x16x56xbf16, #tpu.memory_space<vmem>>, vector<1x16x56xbf16>
    %305 = vector.shape_cast %304 : vector<1x16x56xbf16> to vector<16x56xbf16>
    %cst_226 = arith.constant dense<0.000000e+00> : vector<1x56xf32>
    %306 = tpu.matmul %303, %305, %cst_226 {dimension_numbers = #tpu.dot_dimension_numbers<[1], [0], [0], [1], [0, 0, 1, 1], [], []>} : vector<1x16xbf16>, vector<16x56xbf16>, vector<1x56xf32> -> vector<1x56xf32>
    %307 = arith.addf %301, %306 : vector<1x56xf32>
    %308 = vector.extract_strided_slice %222 {offsets = [14, 0], sizes = [1, 16], strides = [1, 1]} : vector<24x16xf32> to vector<1x16xf32>
    %309 = arith.truncf %308 : vector<1x16xf32> to vector<1x16xbf16>
    %c14_227 = arith.constant 14 : index
    %c0_228 = arith.constant 0 : index
    %c0_229 = arith.constant 0 : index
    %310 = vector.load %arg9[%c14_227, %c0_228, %c0_229] : memref<24x16x56xbf16, #tpu.memory_space<vmem>>, vector<1x16x56xbf16>
    %311 = vector.shape_cast %310 : vector<1x16x56xbf16> to vector<16x56xbf16>
    %cst_230 = arith.constant dense<0.000000e+00> : vector<1x56xf32>
    %312 = tpu.matmul %309, %311, %cst_230 {dimension_numbers = #tpu.dot_dimension_numbers<[1], [0], [0], [1], [0, 0, 1, 1], [], []>} : vector<1x16xbf16>, vector<16x56xbf16>, vector<1x56xf32> -> vector<1x56xf32>
    %313 = arith.addf %307, %312 : vector<1x56xf32>
    %314 = vector.extract_strided_slice %222 {offsets = [15, 0], sizes = [1, 16], strides = [1, 1]} : vector<24x16xf32> to vector<1x16xf32>
    %315 = arith.truncf %314 : vector<1x16xf32> to vector<1x16xbf16>
    %c15_231 = arith.constant 15 : index
    %c0_232 = arith.constant 0 : index
    %c0_233 = arith.constant 0 : index
    %316 = vector.load %arg9[%c15_231, %c0_232, %c0_233] : memref<24x16x56xbf16, #tpu.memory_space<vmem>>, vector<1x16x56xbf16>
    %317 = vector.shape_cast %316 : vector<1x16x56xbf16> to vector<16x56xbf16>
    %cst_234 = arith.constant dense<0.000000e+00> : vector<1x56xf32>
    %318 = tpu.matmul %315, %317, %cst_234 {dimension_numbers = #tpu.dot_dimension_numbers<[1], [0], [0], [1], [0, 0, 1, 1], [], []>} : vector<1x16xbf16>, vector<16x56xbf16>, vector<1x56xf32> -> vector<1x56xf32>
    %319 = arith.addf %313, %318 : vector<1x56xf32>
    %320 = vector.extract_strided_slice %222 {offsets = [16, 0], sizes = [1, 16], strides = [1, 1]} : vector<24x16xf32> to vector<1x16xf32>
    %321 = arith.truncf %320 : vector<1x16xf32> to vector<1x16xbf16>
    %c16_235 = arith.constant 16 : index
    %c0_236 = arith.constant 0 : index
    %c0_237 = arith.constant 0 : index
    %322 = vector.load %arg9[%c16_235, %c0_236, %c0_237] : memref<24x16x56xbf16, #tpu.memory_space<vmem>>, vector<1x16x56xbf16>
    %323 = vector.shape_cast %322 : vector<1x16x56xbf16> to vector<16x56xbf16>
    %cst_238 = arith.constant dense<0.000000e+00> : vector<1x56xf32>
    %324 = tpu.matmul %321, %323, %cst_238 {dimension_numbers = #tpu.dot_dimension_numbers<[1], [0], [0], [1], [0, 0, 1, 1], [], []>} : vector<1x16xbf16>, vector<16x56xbf16>, vector<1x56xf32> -> vector<1x56xf32>
    %325 = arith.addf %319, %324 : vector<1x56xf32>
    %326 = vector.extract_strided_slice %222 {offsets = [17, 0], sizes = [1, 16], strides = [1, 1]} : vector<24x16xf32> to vector<1x16xf32>
    %327 = arith.truncf %326 : vector<1x16xf32> to vector<1x16xbf16>
    %c17_239 = arith.constant 17 : index
    %c0_240 = arith.constant 0 : index
    %c0_241 = arith.constant 0 : index
    %328 = vector.load %arg9[%c17_239, %c0_240, %c0_241] : memref<24x16x56xbf16, #tpu.memory_space<vmem>>, vector<1x16x56xbf16>
    %329 = vector.shape_cast %328 : vector<1x16x56xbf16> to vector<16x56xbf16>
    %cst_242 = arith.constant dense<0.000000e+00> : vector<1x56xf32>
    %330 = tpu.matmul %327, %329, %cst_242 {dimension_numbers = #tpu.dot_dimension_numbers<[1], [0], [0], [1], [0, 0, 1, 1], [], []>} : vector<1x16xbf16>, vector<16x56xbf16>, vector<1x56xf32> -> vector<1x56xf32>
    %331 = arith.addf %325, %330 : vector<1x56xf32>
    %332 = vector.extract_strided_slice %222 {offsets = [18, 0], sizes = [1, 16], strides = [1, 1]} : vector<24x16xf32> to vector<1x16xf32>
    %333 = arith.truncf %332 : vector<1x16xf32> to vector<1x16xbf16>
    %c18_243 = arith.constant 18 : index
    %c0_244 = arith.constant 0 : index
    %c0_245 = arith.constant 0 : index
    %334 = vector.load %arg9[%c18_243, %c0_244, %c0_245] : memref<24x16x56xbf16, #tpu.memory_space<vmem>>, vector<1x16x56xbf16>
    %335 = vector.shape_cast %334 : vector<1x16x56xbf16> to vector<16x56xbf16>
    %cst_246 = arith.constant dense<0.000000e+00> : vector<1x56xf32>
    %336 = tpu.matmul %333, %335, %cst_246 {dimension_numbers = #tpu.dot_dimension_numbers<[1], [0], [0], [1], [0, 0, 1, 1], [], []>} : vector<1x16xbf16>, vector<16x56xbf16>, vector<1x56xf32> -> vector<1x56xf32>
    %337 = arith.addf %331, %336 : vector<1x56xf32>
    %338 = vector.extract_strided_slice %222 {offsets = [19, 0], sizes = [1, 16], strides = [1, 1]} : vector<24x16xf32> to vector<1x16xf32>
    %339 = arith.truncf %338 : vector<1x16xf32> to vector<1x16xbf16>
    %c19_247 = arith.constant 19 : index
    %c0_248 = arith.constant 0 : index
    %c0_249 = arith.constant 0 : index
    %340 = vector.load %arg9[%c19_247, %c0_248, %c0_249] : memref<24x16x56xbf16, #tpu.memory_space<vmem>>, vector<1x16x56xbf16>
    %341 = vector.shape_cast %340 : vector<1x16x56xbf16> to vector<16x56xbf16>
    %cst_250 = arith.constant dense<0.000000e+00> : vector<1x56xf32>
    %342 = tpu.matmul %339, %341, %cst_250 {dimension_numbers = #tpu.dot_dimension_numbers<[1], [0], [0], [1], [0, 0, 1, 1], [], []>} : vector<1x16xbf16>, vector<16x56xbf16>, vector<1x56xf32> -> vector<1x56xf32>
    %343 = arith.addf %337, %342 : vector<1x56xf32>
    %344 = vector.extract_strided_slice %222 {offsets = [20, 0], sizes = [1, 16], strides = [1, 1]} : vector<24x16xf32> to vector<1x16xf32>
    %345 = arith.truncf %344 : vector<1x16xf32> to vector<1x16xbf16>
    %c20_251 = arith.constant 20 : index
    %c0_252 = arith.constant 0 : index
    %c0_253 = arith.constant 0 : index
    %346 = vector.load %arg9[%c20_251, %c0_252, %c0_253] : memref<24x16x56xbf16, #tpu.memory_space<vmem>>, vector<1x16x56xbf16>
    %347 = vector.shape_cast %346 : vector<1x16x56xbf16> to vector<16x56xbf16>
    %cst_254 = arith.constant dense<0.000000e+00> : vector<1x56xf32>
    %348 = tpu.matmul %345, %347, %cst_254 {dimension_numbers = #tpu.dot_dimension_numbers<[1], [0], [0], [1], [0, 0, 1, 1], [], []>} : vector<1x16xbf16>, vector<16x56xbf16>, vector<1x56xf32> -> vector<1x56xf32>
    %349 = arith.addf %343, %348 : vector<1x56xf32>
    %350 = vector.extract_strided_slice %222 {offsets = [21, 0], sizes = [1, 16], strides = [1, 1]} : vector<24x16xf32> to vector<1x16xf32>
    %351 = arith.truncf %350 : vector<1x16xf32> to vector<1x16xbf16>
    %c21_255 = arith.constant 21 : index
    %c0_256 = arith.constant 0 : index
    %c0_257 = arith.constant 0 : index
    %352 = vector.load %arg9[%c21_255, %c0_256, %c0_257] : memref<24x16x56xbf16, #tpu.memory_space<vmem>>, vector<1x16x56xbf16>
    %353 = vector.shape_cast %352 : vector<1x16x56xbf16> to vector<16x56xbf16>
    %cst_258 = arith.constant dense<0.000000e+00> : vector<1x56xf32>
    %354 = tpu.matmul %351, %353, %cst_258 {dimension_numbers = #tpu.dot_dimension_numbers<[1], [0], [0], [1], [0, 0, 1, 1], [], []>} : vector<1x16xbf16>, vector<16x56xbf16>, vector<1x56xf32> -> vector<1x56xf32>
    %355 = arith.addf %349, %354 : vector<1x56xf32>
    %356 = vector.extract_strided_slice %222 {offsets = [22, 0], sizes = [1, 16], strides = [1, 1]} : vector<24x16xf32> to vector<1x16xf32>
    %357 = arith.truncf %356 : vector<1x16xf32> to vector<1x16xbf16>
    %c22_259 = arith.constant 22 : index
    %c0_260 = arith.constant 0 : index
    %c0_261 = arith.constant 0 : index
    %358 = vector.load %arg9[%c22_259, %c0_260, %c0_261] : memref<24x16x56xbf16, #tpu.memory_space<vmem>>, vector<1x16x56xbf16>
    %359 = vector.shape_cast %358 : vector<1x16x56xbf16> to vector<16x56xbf16>
    %cst_262 = arith.constant dense<0.000000e+00> : vector<1x56xf32>
    %360 = tpu.matmul %357, %359, %cst_262 {dimension_numbers = #tpu.dot_dimension_numbers<[1], [0], [0], [1], [0, 0, 1, 1], [], []>} : vector<1x16xbf16>, vector<16x56xbf16>, vector<1x56xf32> -> vector<1x56xf32>
    %361 = arith.addf %355, %360 : vector<1x56xf32>
    %362 = vector.extract_strided_slice %222 {offsets = [23, 0], sizes = [1, 16], strides = [1, 1]} : vector<24x16xf32> to vector<1x16xf32>
    %363 = arith.truncf %362 : vector<1x16xf32> to vector<1x16xbf16>
    %c23_263 = arith.constant 23 : index
    %c0_264 = arith.constant 0 : index
    %c0_265 = arith.constant 0 : index
    %364 = vector.load %arg9[%c23_263, %c0_264, %c0_265] : memref<24x16x56xbf16, #tpu.memory_space<vmem>>, vector<1x16x56xbf16>
    %365 = vector.shape_cast %364 : vector<1x16x56xbf16> to vector<16x56xbf16>
    %cst_266 = arith.constant dense<0.000000e+00> : vector<1x56xf32>
    %366 = tpu.matmul %363, %365, %cst_266 {dimension_numbers = #tpu.dot_dimension_numbers<[1], [0], [0], [1], [0, 0, 1, 1], [], []>} : vector<1x16xbf16>, vector<16x56xbf16>, vector<1x56xf32> -> vector<1x56xf32>
    %367 = arith.addf %361, %366 : vector<1x56xf32>
    %c0_267 = arith.constant 0 : index
    %c0_268 = arith.constant 0 : index
    %368 = vector.load %arg10[%c0_267, %c0_268] : memref<1x56xf32, #tpu.memory_space<vmem>>, vector<1x56xf32>
    %369 = arith.addf %367, %368 : vector<1x56xf32>
    %cst_269 = arith.constant 0.000000e+00 : f32
    %370 = vector.broadcast %cst_269 : f32 to vector<1x56xf32>
    %371 = arith.maximumf %369, %370 : vector<1x56xf32>
    %372 = arith.truncf %371 : vector<1x56xf32> to vector<1x56xbf16>
    %c0_270 = arith.constant 0 : index
    %c0_271 = arith.constant 0 : index
    %373 = vector.load %arg11[%c0_270, %c0_271] : memref<56x10xbf16, #tpu.memory_space<vmem>>, vector<56x10xbf16>
    %cst_272 = arith.constant dense<0.000000e+00> : vector<1x10xf32>
    %374 = tpu.matmul %372, %373, %cst_272 {dimension_numbers = #tpu.dot_dimension_numbers<[1], [0], [0], [1], [0, 0, 1, 1], [], []>} : vector<1x56xbf16>, vector<56x10xbf16>, vector<1x10xf32> -> vector<1x10xf32>
    %c0_273 = arith.constant 0 : index
    %c0_274 = arith.constant 0 : index
    %375 = vector.load %arg12[%c0_273, %c0_274] : memref<1x10xf32, #tpu.memory_space<vmem>>, vector<1x10xf32>
    %376 = arith.addf %374, %375 : vector<1x10xf32>
    %cst_275 = arith.constant dense<0xFF800000> : vector<1xf32>
    %377 = vector.multi_reduction <maximumf>, %376, %cst_275 [1] : vector<1x10xf32> to vector<1xf32>
    %378 = vector.shape_cast %377 : vector<1xf32> to vector<1x1xf32>
    %379 = vector.broadcast %378 : vector<1x1xf32> to vector<1x10xf32>
    %380 = arith.subf %376, %379 : vector<1x10xf32>
    %381 = math.exp %380 : vector<1x10xf32>
    %cst_276 = arith.constant dense<0.000000e+00> : vector<1xf32>
    %382 = vector.multi_reduction <add>, %381, %cst_276 [1] : vector<1x10xf32> to vector<1xf32>
    %383 = vector.shape_cast %382 : vector<1xf32> to vector<1x1xf32>
    %384 = tpu.reciprocal %383 {approx = true} : vector<1x1xf32> -> vector<1x1xf32>
    %385 = vector.broadcast %384 : vector<1x1xf32> to vector<1x10xf32>
    %386 = arith.mulf %381, %385 : vector<1x10xf32>
    %c0_277 = arith.constant 0 : index
    %c0_278 = arith.constant 0 : index
    %c0_279 = arith.constant 0 : index
    %387 = vector.load %arg13[%c0_277, %c0_278, %c0_279] : memref<1x1x10xf32, #tpu.memory_space<vmem>>, vector<1x1x10xf32>
    %388 = vector.shape_cast %387 : vector<1x1x10xf32> to vector<1x10xf32>
    %389 = vector.shape_cast %386 : vector<1x10xf32> to vector<1x1x10xf32>
    tpu.vector_store %arg13[%c0_277, %c0_278, %c0_279], %389 {strides = array<i32>} : memref<1x1x10xf32, #tpu.memory_space<vmem>>, vector<1x1x10xf32>,
    return
  }
  func.func @transform_0(%arg0: i32) -> (i32, i32, i32) {
    %c0_i32 = arith.constant 0 : i32
    %c0_i32_0 = arith.constant 0 : i32
    %c0_i32_1 = arith.constant 0 : i32
    return %arg0, %c0_i32, %c0_i32_0 : i32, i32, i32
  }
  func.func @transform_1(%arg0: i32) -> (i32, i32) {
    %c0_i32 = arith.constant 0 : i32
    %c0_i32_0 = arith.constant 0 : i32
    %c0_i32_1 = arith.constant 0 : i32
    return %c0_i32, %c0_i32_0 : i32, i32
  }
  func.func @transform_2(%arg0: i32) -> (i32, i32) {
    %c0_i32 = arith.constant 0 : i32
    %c0_i32_0 = arith.constant 0 : i32
    %c0_i32_1 = arith.constant 0 : i32
    return %c0_i32, %c0_i32_0 : i32, i32
  }
  func.func @transform_3(%arg0: i32) -> (i32, i32, i32) {
    %c0_i32 = arith.constant 0 : i32
    %c0_i32_0 = arith.constant 0 : i32
    %c0_i32_1 = arith.constant 0 : i32
    %c0_i32_2 = arith.constant 0 : i32
    return %c0_i32, %c0_i32_0, %c0_i32_1 : i32, i32, i32
  }
  func.func @transform_4(%arg0: i32) -> (i32, i32) {
    %c0_i32 = arith.constant 0 : i32
    %c0_i32_0 = arith.constant 0 : i32
    %c0_i32_1 = arith.constant 0 : i32
    return %c0_i32, %c0_i32_0 : i32, i32
  }
  func.func @transform_5(%arg0: i32) -> (i32, i32, i32) {
    %c0_i32 = arith.constant 0 : i32
    %c0_i32_0 = arith.constant 0 : i32
    %c0_i32_1 = arith.constant 0 : i32
    %c0_i32_2 = arith.constant 0 : i32
    return %c0_i32, %c0_i32_0, %c0_i32_1 : i32, i32, i32
  }
  func.func @transform_6(%arg0: i32) -> (i32, i32) {
    %c0_i32 = arith.constant 0 : i32
    %c0_i32_0 = arith.constant 0 : i32
    %c0_i32_1 = arith.constant 0 : i32
    return %c0_i32, %c0_i32_0 : i32, i32
  }
  func.func @transform_7(%arg0: i32) -> (i32, i32, i32) {
    %c0_i32 = arith.constant 0 : i32
    %c0_i32_0 = arith.constant 0 : i32
    %c0_i32_1 = arith.constant 0 : i32
    %c0_i32_2 = arith.constant 0 : i32
    return %c0_i32, %c0_i32_0, %c0_i32_1 : i32, i32, i32
  }
  func.func @transform_8(%arg0: i32) -> (i32, i32, i32) {
    %c0_i32 = arith.constant 0 : i32
    %c0_i32_0 = arith.constant 0 : i32
    %c0_i32_1 = arith.constant 0 : i32
    %c0_i32_2 = arith.constant 0 : i32
    return %c0_i32, %c0_i32_0, %c0_i32_1 : i32, i32, i32
  }
  func.func @transform_9(%arg0: i32) -> (i32, i32) {
    %c0_i32 = arith.constant 0 : i32
    %c0_i32_0 = arith.constant 0 : i32
    %c0_i32_1 = arith.constant 0 : i32
    return %c0_i32, %c0_i32_0 : i32, i32
  }
  func.func @transform_10(%arg0: i32) -> (i32, i32) {
    %c0_i32 = arith.constant 0 : i32
    %c0_i32_0 = arith.constant 0 : i32
    %c0_i32_1 = arith.constant 0 : i32
    return %c0_i32, %c0_i32_0 : i32, i32
  }
  func.func @transform_11(%arg0: i32) -> (i32, i32) {
    %c0_i32 = arith.constant 0 : i32
    %c0_i32_0 = arith.constant 0 : i32
    %c0_i32_1 = arith.constant 0 : i32
    return %c0_i32, %c0_i32_0 : i32, i32
  }
  func.func @transform_12(%arg0: i32) -> (i32, i32, i32) {
    %c0_i32 = arith.constant 0 : i32
    %c0_i32_0 = arith.constant 0 : i32
    %c0_i32_1 = arith.constant 0 : i32
    return %arg0, %c0_i32, %c0_i32_0 : i32, i32, i32
  }
}

</mosaic_0001>

<bundles_post_ra>
// kernel: cnn_forward.1
= control target key start
LH: loop header
LB: loop body
LE: loop exit
PB: predicated region body
PF: predicated region fallthrough
CT: control target
= control target key end

     0   :  { %s13651_s0 = inlined_call_operand.vmem [shape: bf16[2,32,576], index: 0, kind: input, shape index: {}]   ;;  %s13652_s1 = inlined_call_operand.vmem [shape: bf16[16,32], index: 1, kind: input, shape index: {}]   ;;  %s13653_s2 = inlined_call_operand.vmem [shape: f32[16,1], index: 2, kind: input, shape index: {}]   ;;  %s13654_s3 = inlined_call_operand.vmem [shape: bf16[4,576,144], index: 3, kind: input, shape index: {}]   ;;  %s13655_s4 = inlined_call_operand.vmem [shape: bf16[144,1600], index: 4, kind: input, shape index: {}]   ;;  %s13656_s5 = inlined_call_operand.vmem [shape: bf16[25,24,16], index: 5, kind: input, shape index: {}]   ;;  %s13657_s6 = inlined_call_operand.vmem [shape: f32[24,1], index: 6, kind: input, shape index: {}]   ;;  %s13658_s7 = inlined_call_operand.vmem [shape: bf16[4,64,16], index: 7, kind: input, shape index: {}]   ;;  %s13659_s8 = inlined_call_operand.vmem [shape: bf16[24,16,56], index: 8, kind: input, shape index: {}]   ;;  %s13660_s9 = inlined_call_operand.vmem [shape: f32[1,56], index: 9, kind: input, shape index: {}]   ;;  %s13661_s10 = inlined_call_operand.vmem [shape: bf16[56,10], index: 10, kind: input, shape index: {}]   ;;  %s13662_s11 = inlined_call_operand.vmem [shape: f32[1,10], index: 11, kind: input, shape index: {}]   ;;  %s13663_s12 = inlined_call_operand.hbm [shape: f32[2,1,10], index: 12, kind: output, shape index: {}]  }
   0x1   :  { %13666 = sst [smem:[#allocation5_spill]] %s13651_s0 }
   0x2   :  { %13667 = sst [smem:[#allocation6_spill]] %s13652_s1 }
   0x3   :  { %13668 = sst [smem:[#allocation7_spill]] %s13653_s2 }
   0x4   :  { %17 = vsyncpa [#allocation3], 0 }
   0x5   :  { %19 = vsyncpa [#allocation3 + $0x1], 0  ;;  %s11192_s21 = smov 0   ;;  %s11194_s22 = smov 0  }
   0x6   :  { %s11196_s23 = smov 0   ;;  %s11198_s24 = smov 0  }
   0x7 LB: > { %s11213_s25 = sadd.s32 4294967295, %s11120_s24   ;;  %s8757_s26 = sadd.s32 4294967294, %s11120_s24   ;;  %s11120_s24 = sphi %s11198_s24, %s13678_s24   ;;  %s11116_s23 = sphi %s11196_s23, %s13677_s23   ;;  %s11112_s22 = sphi %s11194_s22, %s13676_s22   ;;  %s11108_s21 = sphi %s11192_s21, %s13675_s21  }
   0x8   : > { %s11217_s27 = sadd.s32 1, %s11120_s24   ;;  %s289_s28 = sadd.s32 1, %s11116_s23 }
   0x9   : > { %s286_s29 = ssub.s32 %s11120_s24, %s11217_s27  ;;  %p299_p0 = scmp.ne.s32.totalorder %s11116_s23, %s11112_s22 }
   0xa   : > { %p287_p1 = scmp.eq.s32.totalorder %s286_s29, 0  ;;  %p300_p2 = scmp.eq.s32.totalorder %s11213_s25, 1 }
   0xb   : > { %p305_p3 = scmp.ne.s32.totalorder %s11112_s22, %s11108_s21  ;;  %p306_p4 = scmp.eq.s32.totalorder %s8757_s26, 1 }
   0xc   : > { %s11228_s30 = scalar_select %p287_p1, %s11116_s23, %s289_s28  }
   0xd   : > { %p11230_p5 = por %p300_p2, %p299_p0  ;;  %p11234_p6 = por %p306_p4, %p305_p3 }
   0xe   : > { %p8760_p7 = scmp.ge.s32.totalorder %s11120_s24, 1  ;;  %p365_p8 = scmp.lt.s32.totalorder %s11120_s24, 3 }
  0x10   : > { %p366_p9 = pnand %p8760_p7, %p365_p8 }
  0x11   : > { %s13671_s2 = sld [smem:[#allocation7_spill]] (!%p366_p9)  ;;  %v11122_v1 = vmov (!%p366_p9), 0   ;;  %v11123_v2 = vmov (!%p366_p9), 0.0   ;;  %p406_p10 = scmp.lt.s32.totalorder (!%p366_p9), %s11213_s25, 1  ;;  %vm11124_vm0 = vmmov (!%p366_p9), 0   ;;  %vm495_vm1 = vcmask (!%p366_p9), 261120  }
  0x12   : > { %369 = sbr.rel (%p366_p9) target bundleno = 8152 (0x1fd8), region = 68  ;;  %10341 = vset.pattern.permute.xlu0 (!%p366_p9), %v11122_v1  ;;  %9903 = vmatprep.subr.bf16.mxu0 (!%p366_p9), %v11123_v2  ;;  %v10343_v4 = vld [vmem:[%s13655_s4 + $0xd0] ss:$52 sps:$4 sm:$0xff] (!%p366_p9)   ;;  %s13672_s0 = sld [smem:[#allocation5_spill]] (!%p366_p9)  ;;  %v10348_v6 = vld [vmem:[%s13655_s4 + $0x1a0] ss:$52 sps:$4 sm:$0xff] (!%p366_p9)  }
  0x13   : > { %531 = vmatprep.mubr.bf16.mxu1 (!%p366_p9), %v11122_v1  ;;  %10342 = vset.pattern.permute.xlu1 (!%p366_p9), %v11122_v1  ;;  %s13673_s1 = sld [smem:[#allocation6_spill]] (!%p366_p9)  ;;  %v10354_v14 = vld [vmem:[%s13655_s4 + $0x270] ss:$52 sps:$4 sm:$0xff] (!%p366_p9)   ;;  %v10358_v17 = vld [vmem:[%s13655_s4 + $0x340] ss:$52 sps:$4 sm:$0xff] (!%p366_p9)   ;;  %vm1063_vm2 = vcmask (!%p366_p9), 523264  }
  0x14   : > { %9907 = vmatprep.mubr.msk.bf16.mxu0 (!%p366_p9), %vm11124_vm0, %v11123_v2  ;;  %v10362_v19 = vld [vmem:[%s13655_s4 + $0x6c] ss:$52 sps:$4 sm:$0xff] (!%p366_p9)   ;;  %v10363_v20 = vld [vmem:[%s13655_s4 + $0x13c] ss:$52 sps:$4 sm:$0xff] (!%p366_p9)   ;;  %v10371_v36 = vld [vmem:[%s13655_s4 + $0x74] ss:$52 sps:$4 sm:$0xff] (!%p366_p9)  }
  0x15   : > { %v10364_v21 = vld [vmem:[%s13655_s4 + $0x20c] ss:$52 sps:$4 sm:$0xff] (!%p366_p9)   ;;  %v10365_v22 = vld [vmem:[%s13655_s4 + $0x2dc] ss:$52 sps:$4 sm:$0xff] (!%p366_p9)   ;;  %v10372_v41 = vld [vmem:[%s13655_s4 + $0x144] ss:$52 sps:$4 sm:$0xff] (!%p366_p9)  }
  0x16   : > { %v10366_v23 = vld [vmem:[%s13655_s4 + $0x8] ss:$52 sps:$4 sm:$0xff] (!%p366_p9)   ;;  %v10367_v24 = vld [vmem:[%s13655_s4 + $0xd8] ss:$52 sps:$4 sm:$0xff] (!%p366_p9)   ;;  %v10375_v56 = vld [vmem:[%s13655_s4 + $0x10] ss:$52 sps:$4 sm:$0xff] (!%p366_p9)  }
  0x17   : > { %v426_v0 = vld [vmem:[%s13671_s2] sm:$0xff] (!%p366_p9)  ;;  %v427_v3 = vld [vmem:[%s13671_s2 + $0x8] sm:$0xff] (!%p366_p9)  ;;  %s13664_s2 = smov (!%p366_p9), 64   ;;  %v10406_v32 = vld [vmem:[%s13654_s3 + $0x10] ss:$8 sps:$4 sm:$0xff] (!%p366_p9)   ;;  %vm2972_vm3 = vcmask (!%p366_p9), 130048  }
  0x18   : > { %430 = vperm.xlu0 (!%p366_p9), %10341, %v426_v0   ;;  %v10368_v25 = vld [vmem:[%s13655_s4 + $0x1a8] ss:$52 sps:$4 sm:$0xff] (!%p366_p9)   ;;  %v10369_v26 = vld [vmem:[%s13655_s4 + $0x278] ss:$52 sps:$4 sm:$0xff] (!%p366_p9)   ;;  %v10376_v62 = vld [vmem:[%s13655_s4 + $0xe0] ss:$52 sps:$4 sm:$0xff] (!%p366_p9)  }
  0x19   : > { %s407_s19 = scalar_select %p406_p10, %s11213_s25, 1  ;;  %v10353_v12 = vld [vmem:[%s13673_s1] sm:$0xff]   ;;  %v10370_v31 = vld [vmem:[%s13655_s4 + $0x348] ss:$52 sps:$4 sm:$0xff]   ;;  %v10409_v34 = vld [vmem:[%s13654_s3 + $0x250] ss:$8 sps:$4 sm:$0xff]  }
  0x1a   : > { %v10399_v27 = vld [vmem:[%s13654_s3] ss:$8 sps:$4 sm:$0xff]   ;;  %v10401_v28 = vld [vmem:[%s13654_s3 + $0x4] ss:$8 sps:$4 sm:$0xff]   ;;  %v10408_v33 = vld [vmem:[%s13654_s3 + $0x14] ss:$8 sps:$4 sm:$0xff]  }
  0x1b   : > { %s10297_s20 = smul.u32 80, %s407_s19  ;;  %v10402_v29 = vld [vmem:[%s13654_s3 + $0x240] ss:$8 sps:$4 sm:$0xff]   ;;  %v10404_v30 = vld [vmem:[%s13654_s3 + $0x244] ss:$8 sps:$4 sm:$0xff]   ;;  %s13674_s1 = smov 64  }
  0x1c   : > { %435 = vperm.xlu0 %10341, %v427_v3   ;;  %v10411_v35 = vld [vmem:[%s13654_s3 + $0x254] ss:$8 sps:$4 sm:$0xff]   ;;  %v10413_v37 = vld [vmem:[%s13654_s3 + $0x20] ss:$8 sps:$4 sm:$0xff]   ;;  %v10415_v38 = vld [vmem:[%s13654_s3 + $0x24] ss:$8 sps:$4 sm:$0xff]  }
  0x1d   : > { %s410_s16 = scalar_lea.vmem %s13672_s0, %s10297_s20  ;;  %v10416_v39 = vld [vmem:[%s13654_s3 + $0x260] ss:$8 sps:$4 sm:$0xff]   ;;  %v10418_v40 = vld [vmem:[%s13654_s3 + $0x264] ss:$8 sps:$4 sm:$0xff]   ;;  %v10420_v42 = vld [vmem:[%s13654_s3 + $0x30] ss:$8 sps:$4 sm:$0xff]  }
  0x1e   : > { %v10344_v5 = vld [vmem:[%s410_s16 + $0x4] ss:$20 sps:$4 sm:$0xff]   ;;  %v10347_v8 = vld [vmem:[%s410_s16] ss:$20 sps:$4 sm:$0xff]   ;;  %v10352_v11 = vld [vmem:[%s410_s16 + $0x28] ss:$20 sps:$4 sm:$0xff]  }
  0x1f   : > { %v10346_v7 = vld [vmem:[%s410_s16 + $0x10] ss:$20 sps:$4 sm:$0xff]   ;;  %499 = vmatprep.subr.bf16.mxu1 %v10344_v5  ;;  %v10349_v9 = vld [vmem:[%s410_s16 + $0x2c] ss:$20 sps:$4 sm:$0xff]   ;;  %v10355_v15 = vld [vmem:[%s410_s16 + $0x8] ss:$20 sps:$4 sm:$0xff]  }
  0x20   : > { %3025 = vrot.lane.b32.xlu0 %v10343_v4, %s13664_s2  ;;  %9904 = vmatpush3.bf16.msra.mxu0 %v10346_v7  ;;  %v10351_v10 = vld [vmem:[%s410_s16 + $0x38] ss:$20 sps:$4 sm:$0xff]   ;;  %v10361_v16 = vld [vmem:[%s410_s16 + $0x34] ss:$20 sps:$4 sm:$0xff]   ;;  %v10359_v18 = vld [vmem:[%s410_s16 + $0x30] ss:$20 sps:$4 sm:$0xff]  }
  0x21   : > { %500 = vmatpush1.bf16.msra.mxu1 %v10347_v8  ;;  %9905 = vmatprep.subr.bf16.mxu0 %v11123_v2  ;;  %v10357_v13 = vld [vmem:[%s410_s16 + $0xc] ss:$20 sps:$4 sm:$0xff]   ;;  %v10422_v43 = vld [vmem:[%s13654_s3 + $0x34] ss:$8 sps:$4 sm:$0xff]   ;;  %v10423_v44 = vld [vmem:[%s13654_s3 + $0x270] ss:$8 sps:$4 sm:$0xff]  }
  0x22   : > { %501 = vmatprep.subr.bf16.mxu1 %v10349_v9  ;;  %v10425_v45 = vld [vmem:[%s13654_s3 + $0x274] ss:$8 sps:$4 sm:$0xff]   ;;  %v10429_v47 = vld [vmem:[%s13654_s3 + $0x44] ss:$8 sps:$4 sm:$0xff]   ;;  %v10427_v48 = vld [vmem:[%s13654_s3 + $0x40] ss:$8 sps:$4 sm:$0xff]  }
  0x23   : > { %v10373_v46 = vld [vmem:[%s13655_s4 + $0x214] ss:$52 sps:$4 sm:$0xff]   ;;  %v10432_v49 = vld [vmem:[%s13654_s3 + $0x284] ss:$8 sps:$4 sm:$0xff]   ;;  %v10434_v53 = vld [vmem:[%s13654_s3 + $0x50] ss:$8 sps:$4 sm:$0xff]  }
  0x24   : > { %3029 = vrot.lane.b32.xlu0 %v10348_v6, %s13664_s2  ;;  %9906 = vmatpush3.bf16.msra.mxu0 %v10351_v10  ;;  %v10430_v50 = vld [vmem:[%s13654_s3 + $0x280] ss:$8 sps:$4 sm:$0xff]   ;;  %v10374_v51 = vld [vmem:[%s13655_s4 + $0x2e4] ss:$52 sps:$4 sm:$0xff]   ;;  %v10436_v52 = vld [vmem:[%s13654_s3 + $0x54] ss:$8 sps:$4 sm:$0xff]  }
  0x25   : > { %502 = vmatpush1.bf16.msra.mxu1 %v10352_v11  ;;  %1629 = vmatprep.subr.bf16.mxu0 %v10404_v30  ;;  %v10439_v54 = vld [vmem:[%s13654_s3 + $0x294] ss:$8 sps:$4 sm:$0xff]   ;;  %v10437_v55 = vld [vmem:[%s13654_s3 + $0x290] ss:$8 sps:$4 sm:$0xff]   ;;  %v10443_v57 = vld [vmem:[%s13654_s3 + $0x64] ss:$8 sps:$4 sm:$0xff]  }
  0x26   : > { %542 = vmatprep.subr.bf16.mxu1 %v10357_v13  ;;  %v10441_v58 = vld [vmem:[%s13654_s3 + $0x60] ss:$8 sps:$4 sm:$0xff]   ;;  %v10446_v59 = vld [vmem:[%s13654_s3 + $0x2a4] ss:$8 sps:$4 sm:$0xff]   ;;  %v10450_v61 = vld [vmem:[%s13654_s3 + $0x74] ss:$8 sps:$4 sm:$0xff]  }
  0x27   : > { %9908 = vmatmul.mubr.msk.bf16.vlgmr.msra.gmra.mrb[0].mxu0 %vm495_vm1, %v10353_v12  ;;  %v10444_v60 = vld [vmem:[%s13654_s3 + $0x2a0] ss:$8 sps:$4 sm:$0xff]   ;;  %v10453_v63 = vld [vmem:[%s13654_s3 + $0x2b4] ss:$8 sps:$4 sm:$0xff]   ;;  %v10448_v0 = vld [vmem:[%s13654_s3 + $0x70] ss:$8 sps:$4 sm:$0xff]  }
  0x28   : > { %3033 = vrot.lane.b32.xlu0 %v10354_v14, %s13664_s2  ;;  %8773 = vmatmul.mubr.msk.bf16.vlgmr.msra.gmra.mrb[0].mxu1 %vm495_vm1, %v10353_v12  ;;  %v10451_v3 = vld [vmem:[%s13654_s3 + $0x2b0] ss:$8 sps:$4 sm:$0xff]   ;;  %v10457_v4 = vld [vmem:[%s13654_s3 + $0x84] ss:$8 sps:$4 sm:$0xff]   ;;  %v10455_v7 = vld [vmem:[%s13654_s3 + $0x80] ss:$8 sps:$4 sm:$0xff]  }
  0x29   : > { %543 = vmatpush1.bf16.msra.mxu1 %v10355_v15  ;;  %574 = vmatprep.mubr.bf16.mxu1 %v11122_v1  ;;  %v10377_v5 = vld [vmem:[%s13655_s4 + $0x1b0] ss:$52 sps:$4 sm:$0xff]   ;;  %v10458_v8 = vld [vmem:[%s13654_s3 + $0x2c0] ss:$8 sps:$4 sm:$0xff]   ;;  %v10464_v9 = vld [vmem:[%s13654_s3 + $0x94] ss:$8 sps:$4 sm:$0xff]  }
  0x2a   : > { %544 = vmatprep.subr.bf16.mxu1 %v10361_v16  ;;  %1630 = vmatpush1.bf16.msra.mxu0 %v10402_v29  ;;  %v10460_v6 = vld [vmem:[%s13654_s3 + $0x2c4] ss:$8 sps:$4 sm:$0xff]   ;;  %v10378_v10 = vld [vmem:[%s13655_s4 + $0x280] ss:$52 sps:$4 sm:$0xff]   ;;  %v10465_v13 = vld [vmem:[%s13654_s3 + $0x2d0] ss:$8 sps:$4 sm:$0xff]  }
  0x2b   : > { %1631 = vmatprep.subr.bf16.mxu0 %v10411_v35  ;;  %v10467_v11 = vld [vmem:[%s13654_s3 + $0x2d4] ss:$8 sps:$4 sm:$0xff]   ;;  %v10471_v14 = vld [vmem:[%s13654_s3 + $0xa4] ss:$8 sps:$4 sm:$0xff]   ;;  %vm8632_vm4 = vcmask 1043456   ;;  %vm8628_vm5 = vcmask 457728  }
  0x2c   : > { %3037 = vrot.lane.b32.xlu0 %v10358_v17, %s13664_s2  ;;  %v10379_v15 = vld [vmem:[%s13655_s4 + $0x350] ss:$52 sps:$4 sm:$0xff]   ;;  %v10469_v17 = vld [vmem:[%s13654_s3 + $0xa0] ss:$8 sps:$4 sm:$0xff]   ;;  %v10491_v29 = vld [vmem:[%s13654_s3 + $0xd4] ss:$8 sps:$4 sm:$0xff]  }
  0x2d   : > { %545 = vmatpush1.bf16.msra.mxu1 %v10359_v18  ;;  %v10474_v16 = vld [vmem:[%s13654_s3 + $0x2e4] ss:$8 sps:$4 sm:$0xff]   ;;  %v10472_v18 = vld [vmem:[%s13654_s3 + $0x2e0] ss:$8 sps:$4 sm:$0xff]   ;;  %v10382_v30 = vld [vmem:[%s13655_s4 + $0x21c] ss:$52 sps:$4 sm:$0xff]  }
  0x2e   : > { %1067 = vmatprep.subr.bf16.mxu1 %v10401_v28  ;;  %1632 = vmatpush1.bf16.msra.mxu0 %v10409_v34  ;;  %v10486_v28 = vld [vmem:[%s13654_s3 + $0x300] ss:$8 sps:$4 sm:$0xff]   ;;  %v10497_v34 = vld [vmem:[%s13654_s3 + $0xe4] ss:$8 sps:$4 sm:$0xff]   ;;  %vm8676_vm6 = vcmask 73728   ;;  %s9745_s29 = sshll.u32 %s11213_s25, 4 }
  0x2f   : > { %1633 = vmatprep.subr.bf16.mxu0 %v10418_v40  ;;  %v10383_v35 = vld [vmem:[%s13655_s4 + $0x2ec] ss:$52 sps:$4 sm:$0xff]   ;;  %v10503_v40 = vld [vmem:[%s13654_s3 + $0xf4] ss:$8 sps:$4 sm:$0xff]   ;;  %s13608_s18 = scalar_lea.hbm %s13663_s12, %s9745_s29  ;;  %s11126_s25 = smov [#allocation2]  }
  0x30   : > { %3403 = vrot.lane.b32.xlu0 %v10362_v19, %s13664_s2  ;;  %8774 = vmatmul.mubr.msk.bf16.vlgmr.msra.gmra.mrb[4].mxu1 %vm495_vm1, %v10353_v12  ;;  %v10462_v12 = vld [vmem:[%s13654_s3 + $0x90] ss:$8 sps:$4 sm:$0xff]   ;;  %v10478_v19 = vld [vmem:[%s13654_s3 + $0xb4] ss:$8 sps:$4 sm:$0xff]   ;;  %s11062_s16 = sshll.u32 %s11126_s25, 4  ;;  %s11063_s16 = int_to_ptr.vmem [resolvable:$false] %s11062_s16 }
  0x31   : > { %1068 = vmatpush1.bf16.msra.mxu1 %v10399_v27  ;;  %v10483_v27 = vld [vmem:[%s13654_s3 + $0xc0] ss:$8 sps:$4 sm:$0xff]   ;;  %s11064_s26 = scalar_lea.vmem %s11063_s16, 32 }
  0x32   : > { %1069 = vmatprep.subr.bf16.mxu1 %v10408_v33  ;;  %1634 = vmatpush1.bf16.msra.mxu0 %v10416_v39  ;;  %v10492_v33 = vld [vmem:[%s13654_s3 + $0x310] ss:$8 sps:$4 sm:$0xff]   ;;  %v10498_v39 = vld [vmem:[%s13654_s3 + $0x320] ss:$8 sps:$4 sm:$0xff]  }
  0x33   : > { %1635 = vmatprep.subr.bf16.mxu0 %v10425_v45  ;;  %v10512_v45 = vld [vmem:[%s13654_s3 + $0x344] ss:$8 sps:$4 sm:$0xff]  }
  0x34   : > { %3407 = vrot.lane.b32.xlu0 %v10363_v20, %s13664_s2  ;;  %v10481_v20 = vld [vmem:[%s13654_s3 + $0x2f4] ss:$8 sps:$4 sm:$0xff]  }
  0x35   : > { %1070 = vmatpush1.bf16.msra.mxu1 %v10406_v32  ;;  %v10489_v32 = vld [vmem:[%s13654_s3 + $0xd0] ss:$8 sps:$4 sm:$0xff]  }
  0x36   : > { %1071 = vmatprep.subr.bf16.mxu1 %v10415_v38  ;;  %1636 = vmatpush1.bf16.msra.mxu0 %v10423_v44  ;;  %v10384_v38 = vld [vmem:[%s13655_s4 + $0x18] ss:$52 sps:$4 sm:$0xff]  }
  0x37   : > { %1637 = vmatprep.subr.bf16.mxu0 %v10432_v49  ;;  %v10509_v44 = vld [vmem:[%s13654_s3 + $0x104] ss:$8 sps:$4 sm:$0xff]  }
  0x38   : > { %3411 = vrot.lane.b32.xlu0 %v10364_v21, %s13664_s2  ;;  %v10380_v21 = vld [vmem:[%s13655_s4 + $0x7c] ss:$52 sps:$4 sm:$0xff]   ;;  %v10388_v49 = vld [vmem:[%s13655_s4 + $0x358] ss:$52 sps:$4 sm:$0xff]  }
  0x39   : > { %1072 = vmatpush1.bf16.msra.mxu1 %v10413_v37  ;;  %v10500_v37 = vld [vmem:[%s13654_s3 + $0x324] ss:$8 sps:$4 sm:$0xff]  }
  0x3a   : > { %1073 = vmatprep.subr.bf16.mxu1 %v10422_v43  ;;  %1638 = vmatpush1.bf16.msra.mxu0 %v10430_v50  ;;  %v10504_v43 = vld [vmem:[%s13654_s3 + $0x330] ss:$8 sps:$4 sm:$0xff]  }
  0x3b   : > { %1639 = vmatprep.subr.bf16.mxu0 %v10439_v54  ;;  %v10389_v50 = vld [vmem:[%s13655_s4 + $0x84] ss:$52 sps:$4 sm:$0xff]   ;;  %v10393_v54 = vld [vmem:[%s13655_s4 + $0x20] ss:$52 sps:$4 sm:$0xff]  }
  0x3c   : > { %3415 = vrot.lane.b32.xlu0 %v10365_v22, %s13664_s2  ;;  %v10476_v22 = vld [vmem:[%s13654_s3 + $0xb0] ss:$8 sps:$4 sm:$0xff]  }
  0x3d   : > { %1074 = vmatpush1.bf16.msra.mxu1 %v10420_v42  ;;  %v10506_v42 = vld [vmem:[%s13654_s3 + $0x334] ss:$8 sps:$4 sm:$0xff]  }
  0x3e   : > { %1075 = vmatprep.subr.bf16.mxu1 %v10429_v47  ;;  %1640 = vmatpush1.bf16.msra.mxu0 %v10437_v55  ;;  %v10386_v47 = vld [vmem:[%s13655_s4 + $0x1b8] ss:$52 sps:$4 sm:$0xff]   ;;  %v10394_v55 = vld [vmem:[%s13655_s4 + $0xf0] ss:$52 sps:$4 sm:$0xff]  }
  0x3f   : > { %1641 = vmatprep.subr.bf16.mxu0 %v10446_v59  ;;  %v10398_v59 = vld [vmem:[%s13655_s4 + $0x8c] ss:$52 sps:$4 sm:$0xff]  }
  0x40   : > { %3722 = vrot.lane.b32.xlu0 %v10366_v23, %s13664_s2  ;;  %v10479_v23 = vld [vmem:[%s13654_s3 + $0x2f0] ss:$8 sps:$4 sm:$0xff]  }
  0x41   : > { %1076 = vmatpush1.bf16.msra.mxu1 %v10427_v48  ;;  %v10387_v48 = vld [vmem:[%s13655_s4 + $0x288] ss:$52 sps:$4 sm:$0xff]  }
  0x42   : > { %1077 = vmatprep.subr.bf16.mxu1 %v10436_v52  ;;  %1642 = vmatpush1.bf16.msra.mxu0 %v10444_v60  ;;  %v10391_v52 = vld [vmem:[%s13655_s4 + $0x224] ss:$52 sps:$4 sm:$0xff]   ;;  %v10405_v60 = vld [vmem:[%s13655_s4 + $0x15c] ss:$52 sps:$4 sm:$0xff]  }
  0x43   : > { %1643 = vmatprep.subr.bf16.mxu0 %v10453_v63  ;;  %v10426_v63 = vld [vmem:[%s13655_s4 + $0x28] ss:$52 sps:$4 sm:$0xff]  }
  0x44   : > { %3726 = vrot.lane.b32.xlu0 %v10367_v24, %s13664_s2  ;;  %v10485_v24 = vld [vmem:[%s13654_s3 + $0xc4] ss:$8 sps:$4 sm:$0xff]  }
  0x45   : > { %1078 = vmatpush1.bf16.msra.mxu1 %v10434_v53  ;;  %v10392_v53 = vld [vmem:[%s13655_s4 + $0x2f4] ss:$52 sps:$4 sm:$0xff]  }
  0x46   : > { %1079 = vmatprep.subr.bf16.mxu1 %v10443_v57  ;;  %1644 = vmatpush1.bf16.msra.mxu0 %v10451_v3  ;;  %v10396_v57 = vld [vmem:[%s13655_s4 + $0x290] ss:$52 sps:$4 sm:$0xff]   ;;  %v10433_v3 = vld [vmem:[%s13655_s4 + $0xf8] ss:$52 sps:$4 sm:$0xff]  }
  0x47   : > { %1645 = vmatprep.subr.bf16.mxu0 %v10460_v6  ;;  %v10447_v6 = vld [vmem:[%s13655_s4 + $0x298] ss:$52 sps:$4 sm:$0xff]  }
  0x48   : > { %3730 = vrot.lane.b32.xlu0 %v10368_v25, %s13664_s2  ;;  %v10488_v25 = vld [vmem:[%s13654_s3 + $0x304] ss:$8 sps:$4 sm:$0xff]  }
  0x49   : > { %1080 = vmatpush1.bf16.msra.mxu1 %v10441_v58  ;;  %v10397_v58 = vld [vmem:[%s13655_s4 + $0x360] ss:$52 sps:$4 sm:$0xff]  }
  0x4a   : > { %1081 = vmatprep.subr.bf16.mxu1 %v10450_v61  ;;  %1646 = vmatpush1.bf16.msra.mxu0 %v10458_v8  ;;  %v10412_v61 = vld [vmem:[%s13655_s4 + $0x22c] ss:$52 sps:$4 sm:$0xff]   ;;  %v10454_v8 = vld [vmem:[%s13655_s4 + $0x368] ss:$52 sps:$4 sm:$0xff]  }
  0x4b   : > { %1647 = vmatprep.subr.bf16.mxu0 %v10467_v11  ;;  %v10468_v11 = vld [vmem:[%s13655_s4 + $0x164] ss:$52 sps:$4 sm:$0xff]  }
  0x4c   : > { %3734 = vrot.lane.b32.xlu0 %v10369_v26, %s13664_s2  ;;  %v10381_v26 = vld [vmem:[%s13655_s4 + $0x14c] ss:$52 sps:$4 sm:$0xff]  }
  0x4d   : > { %1082 = vmatpush1.bf16.msra.mxu1 %v10448_v0 }
  0x4e   : > { %1083 = vmatprep.subr.bf16.mxu1 %v10457_v4  ;;  %1648 = vmatpush1.bf16.msra.mxu0 %v10465_v13  ;;  %v10475_v13 = vld [vmem:[%s13655_s4 + $0x234] ss:$52 sps:$4 sm:$0xff]  }
  0x4f   : > { %1649 = vmatprep.subr.bf16.mxu0 %v10474_v16  ;;  %v6932_v16 = vld [vmem:[%s13657_s6] sm:$0xff] }
  0x50   : > { %3738 = vrot.lane.b32.xlu0 %v10370_v31, %s13664_s2  ;;  %v10494_v31 = vld [vmem:[%s13654_s3 + $0x314] ss:$8 sps:$4 sm:$0xff]  }
  0x51   : > { %1084 = vmatpush1.bf16.msra.mxu1 %v10455_v7 }
  0x52   : > { %1085 = vmatprep.subr.bf16.mxu1 %v10464_v9  ;;  %1650 = vmatpush1.bf16.msra.mxu0 %v10472_v18  ;;  %v6934_v18 = vld [vmem:[%s13657_s6 + $0x10] sm:$0xff] }
  0x53   : > { %1651 = vmatprep.subr.bf16.mxu0 %v10481_v20 }
  0x54   : > { %4045 = vrot.lane.b32.xlu0 %v10371_v36, %s13664_s2  ;;  %v10495_v36 = vld [vmem:[%s13654_s3 + $0xe0] ss:$8 sps:$4 sm:$0xff]  }
  0x55   : > { %1086 = vmatpush1.bf16.msra.mxu1 %v10462_v12 }
  0x56   : > { %1087 = vmatprep.subr.bf16.mxu1 %v10471_v14  ;;  %1652 = vmatpush1.bf16.msra.mxu0 %v10479_v23 }
  0x57   : > { %1653 = vmatprep.subr.bf16.mxu0 %v10488_v25 }
  0x58   : > { %4049 = vrot.lane.b32.xlu0 %v10372_v41, %s13664_s2  ;;  %v10501_v41 = vld [vmem:[%s13654_s3 + $0xf0] ss:$8 sps:$4 sm:$0xff]  }
  0x59   : > { %1088 = vmatpush1.bf16.msra.mxu1 %v10469_v17 }
  0x5a   : > { %1089 = vmatprep.subr.bf16.mxu1 %v10478_v19  ;;  %1654 = vmatpush1.bf16.msra.mxu0 %v10486_v28 }
  0x5b   : > { %1655 = vmatprep.subr.bf16.mxu0 %v10494_v31 }
  0x5c   : > { %4053 = vrot.lane.b32.xlu0 %v10373_v46, %s13664_s2  ;;  %v10385_v46 = vld [vmem:[%s13655_s4 + $0xe8] ss:$52 sps:$4 sm:$0xff]  }
  0x5d   : > { %1090 = vmatpush1.bf16.msra.mxu1 %v10476_v22 }
  0x5e   : > { %1091 = vmatprep.subr.bf16.mxu1 %v10485_v24  ;;  %1656 = vmatpush1.bf16.msra.mxu0 %v10492_v33 }
  0x5f   : > { %1657 = vmatprep.subr.bf16.mxu0 %v10500_v37 }
  0x60   : > { %4057 = vrot.lane.b32.xlu0 %v10374_v51, %s13664_s2  ;;  %v10390_v51 = vld [vmem:[%s13655_s4 + $0x154] ss:$52 sps:$4 sm:$0xff]  }
  0x61   : > { %1092 = vmatpush1.bf16.msra.mxu1 %v10483_v27 }
  0x62   : > { %1093 = vmatprep.subr.bf16.mxu1 %v10491_v29  ;;  %1658 = vmatpush1.bf16.msra.mxu0 %v10498_v39  ;;  %v10515_v39 = vld [vmem:[%s13654_s3 + $0x114] ss:$8 sps:$4 sm:$0xff]  }
  0x63   : > { %1659 = vmatprep.subr.bf16.mxu0 %v10506_v42  ;;  %v10513_v42 = vld [vmem:[%s13654_s3 + $0x110] ss:$8 sps:$4 sm:$0xff]  }
  0x64   : > { %4364 = vrot.lane.b32.xlu0 %v10375_v56, %s13664_s2  ;;  %v10395_v56 = vld [vmem:[%s13655_s4 + $0x1c0] ss:$52 sps:$4 sm:$0xff]  }
  0x65   : > { %1094 = vmatpush1.bf16.msra.mxu1 %v10489_v32 }
  0x66   : > { %1095 = vmatprep.subr.bf16.mxu1 %v10497_v34  ;;  %1660 = vmatpush1.bf16.msra.mxu0 %v10504_v43  ;;  %v10516_v43 = vld [vmem:[%s13654_s3 + $0x350] ss:$8 sps:$4 sm:$0xff]  }
  0x67   : > { %1672 = vmatprep.subr.bf16.mxu0 %v10512_v45 }
  0x68   : > { %4368 = vrot.lane.b32.xlu0 %v10376_v62, %s13664_s2  ;;  %v10419_v62 = vld [vmem:[%s13655_s4 + $0x2fc] ss:$52 sps:$4 sm:$0xff]  }
  0x69   : > { %1096 = vmatpush1.bf16.msra.mxu1 %v10495_v36  ;;  %v10510_v36 = vld [vmem:[%s13654_s3 + $0x340] ss:$8 sps:$4 sm:$0xff]  }
  0x6a   : > { %1097 = vmatprep.subr.bf16.mxu1 %v10503_v40  ;;  %v10518_v40 = vld [vmem:[%s13654_s3 + $0x354] ss:$8 sps:$4 sm:$0xff]  }
  0x6c   : > { %4372 = vrot.lane.b32.xlu0 %v10377_v5, %s13664_s2  ;;  %v10440_v5 = vld [vmem:[%s13655_s4 + $0x1c8] ss:$52 sps:$4 sm:$0xff]  }
  0x6d   : > { %1098 = vmatpush1.bf16.msra.mxu1 %v10501_v41 }
  0x6e   : > { %1110 = vmatprep.subr.bf16.mxu1 %v10509_v44 }
  0x70   : > { %4376 = vrot.lane.b32.xlu0 %v10378_v10, %s13664_s2  ;;  %v10461_v10 = vld [vmem:[%s13655_s4 + $0x94] ss:$52 sps:$4 sm:$0xff]  }
  0x74   : > { %4380 = vrot.lane.b32.xlu0 %v10379_v15, %s13664_s2  ;;  %v10482_v15 = vld [vmem:[%s13655_s4 + $0x304] ss:$52 sps:$4 sm:$0xff]  }
  0x78   : > { %4687 = vrot.lane.b32.xlu0 %v10380_v21, %s13664_s2 }
  0x7c   : > { %4691 = vrot.lane.b32.xlu0 %v10381_v26, %s13664_s2 }
  0x80   : > { %4695 = vrot.lane.b32.xlu0 %v10382_v30, %s13664_s2 }
  0x84   : > { %4699 = vrot.lane.b32.xlu0 %v10383_v35, %s13664_s2  ;;  %v10507_v35 = vld [vmem:[%s13654_s3 + $0x100] ss:$8 sps:$4 sm:$0xff]  }
  0x88   : > { %5006 = vrot.lane.b32.xlu0 %v10384_v38, %s13664_s2 }
  0x8c   : > { %5010 = vrot.lane.b32.xlu0 %v10385_v46, %s13664_s2 }
  0x90   : > { %5014 = vrot.lane.b32.xlu0 %v10386_v47, %s13664_s2 }
  0x94   : > { %5018 = vrot.lane.b32.xlu0 %v10387_v48, %s13664_s2 }
  0x97   : > { %v11642_v0 = vpop.permute.xlu0 %430 }
  0x98   : > { %5022 = vrot.lane.b32.xlu0 %v10388_v49, %s13664_s2  ;;  %v10521_v49 = vld [vmem:[%s13654_s3 + $0x124] ss:$8 sps:$4 sm:$0xff]  }
  0x9b   : > { %v11648_v4 = vpop.permute.xlu0 %435 }
  0x9c   : > { %5329 = vrot.lane.b32.xlu0 %v10389_v50, %s13664_s2  ;;  %v10524_v50 = vld [vmem:[%s13654_s3 + $0x364] ss:$8 sps:$4 sm:$0xff]  }
  0x9f   : > { %v11658_v7 = vpop.permute.xlu0 %3025 }
  0xa0   : > { %5333 = vrot.lane.b32.xlu0 %v10390_v51, %s13664_s2 }
  0xa3   : > { %v11664_v9 = vpop.permute.xlu0 %3029 }
  0xa4   : > { %5337 = vrot.lane.b32.xlu0 %v10391_v52, %s13664_s2 }
  0xa7   : > { %v11674_v12 = vpop.permute.xlu0 %3033 }
  0xa8   : > { %5341 = vrot.lane.b32.xlu0 %v10392_v53, %s13664_s2  ;;  %v10519_v53 = vld [vmem:[%s13654_s3 + $0x120] ss:$8 sps:$4 sm:$0xff]  }
  0xab   : > { %v11680_v14 = vpop.permute.xlu0 %3037 }
  0xac   : > { %5648 = vrot.lane.b32.xlu0 %v10393_v54, %s13664_s2  ;;  %v10522_v54 = vld [vmem:[%s13654_s3 + $0x360] ss:$8 sps:$4 sm:$0xff]  }
  0xaf   : > { %v11690_v17 = vpop.permute.xlu0 %3403 }
  0xb0   : > { %5652 = vrot.lane.b32.xlu0 %v10394_v55, %s13664_s2 }
  0xb3   : > { %v11695_v19 = vpop.permute.xlu0 %3407 }
  0xb4   : > { %5656 = vrot.lane.b32.xlu0 %v10395_v56, %s13664_s2 }
  0xb8   : > { %5660 = vrot.lane.b32.xlu0 %v10396_v57, %s13664_s2  ;;  %v10527_v57 = vld [vmem:[%s13654_s3 + $0x134] ss:$8 sps:$4 sm:$0xff]  }
  0xbc   : > { %5664 = vrot.lane.b32.xlu0 %v10397_v58, %s13664_s2  ;;  %v10530_v58 = vld [vmem:[%s13654_s3 + $0x374] ss:$8 sps:$4 sm:$0xff]  }
  0xc0   : > { %5971 = vrot.lane.b32.xlu0 %v10398_v59, %s13664_s2  ;;  %v10525_v59 = vld [vmem:[%s13654_s3 + $0x130] ss:$8 sps:$4 sm:$0xff]  }
  0xc4   : > { %5975 = vrot.lane.b32.xlu0 %v10405_v60, %s13664_s2  ;;  %v10528_v60 = vld [vmem:[%s13654_s3 + $0x370] ss:$8 sps:$4 sm:$0xff]  }
  0xc8   : > { %5979 = vrot.lane.b32.xlu0 %v10412_v61, %s13664_s2  ;;  %v10533_v61 = vld [vmem:[%s13654_s3 + $0x144] ss:$8 sps:$4 sm:$0xff]  }
  0xcc   : > { %5983 = vrot.lane.b32.xlu0 %v10419_v62, %s13664_s2  ;;  %v10536_v62 = vld [vmem:[%s13654_s3 + $0x384] ss:$8 sps:$4 sm:$0xff]  }
  0xd0   : > { %6290 = vrot.lane.b32.xlu0 %v10426_v63, %s13664_s2  ;;  %v10531_v63 = vld [vmem:[%s13654_s3 + $0x140] ss:$8 sps:$4 sm:$0xff]  }
  0xd4   : > { %6294 = vrot.lane.b32.xlu0 %v10433_v3, %s13664_s2  ;;  %v10539_v3 = vld [vmem:[%s13654_s3 + $0x154] ss:$8 sps:$4 sm:$0xff]  }
  0xd8   : > { %6298 = vrot.lane.b32.xlu0 %v10440_v5, %s13664_s2  ;;  %v10537_v5 = vld [vmem:[%s13654_s3 + $0x150] ss:$8 sps:$4 sm:$0xff]  }
  0xdc   : > { %6302 = vrot.lane.b32.xlu0 %v10447_v6, %s13664_s2  ;;  %v10540_v6 = vld [vmem:[%s13654_s3 + $0x390] ss:$8 sps:$4 sm:$0xff]  }
  0xe0   : > { %6306 = vrot.lane.b32.xlu0 %v10454_v8, %s13664_s2  ;;  %v10545_v8 = vld [vmem:[%s13654_s3 + $0x164] ss:$8 sps:$4 sm:$0xff]  }
  0xe4   : > { %6613 = vrot.lane.b32.xlu0 %v10461_v10, %s13664_s2  ;;  %v10548_v10 = vld [vmem:[%s13654_s3 + $0x3a4] ss:$8 sps:$4 sm:$0xff]  }
  0xe8   : > { %6617 = vrot.lane.b32.xlu0 %v10468_v11, %s13664_s2  ;;  %v10543_v11 = vld [vmem:[%s13654_s3 + $0x160] ss:$8 sps:$4 sm:$0xff]  }
  0xec   : > { %6621 = vrot.lane.b32.xlu0 %v10475_v13, %s13664_s2  ;;  %v10546_v13 = vld [vmem:[%s13654_s3 + $0x3a0] ss:$8 sps:$4 sm:$0xff]  }
  0xf0   : > { %6625 = vrot.lane.b32.xlu0 %v10482_v15, %s13664_s2  ;;  %v10551_v15 = vld [vmem:[%s13654_s3 + $0x174] ss:$8 sps:$4 sm:$0xff]  }
  0xf4   : > { %6937 = vperm.xlu0 %10341, %v6932_v16   ;;  %v10554_v16 = vld [vmem:[%s13654_s3 + $0x3b4] ss:$8 sps:$4 sm:$0xff]  }
  0xf8   : > { %6947 = vperm.xlu0 %10341, %v6934_v18   ;;  %v10549_v18 = vld [vmem:[%s13654_s3 + $0x170] ss:$8 sps:$4 sm:$0xff]  }
  0xfa   : > { %v619_v20 = vpop.f32.mrb[0].mxu0 }
  0xfb   : > { %v533_v21 = vpop.f32.mrb[0].mxu1  ;;  %v9909_v22 = vpop.f32.mrb[1].mxu0  ;;  %v620_v25 = vadd.f32 %v619_v20, %v11642_v0  ;;  %v10552_v20 = vld [vmem:[%s13654_s3 + $0x3b0] ss:$8 sps:$4 sm:$0xff]  }
  0xfc   : > { %v535_v23 = vpop.f32.mrb[1].mxu1  ;;  %v622_v24 = vpop.f32.mrb[2].mxu0  ;;  %v534_v29 = vadd.f32 %v533_v21, %v11642_v0  ;;  %v10557_v21 = vld [vmem:[%s13654_s3 + $0x184] ss:$8 sps:$4 sm:$0xff]  }
  0xfd   : > { %v623_v26 = vadd.f32 %v622_v24, %v11648_v4  ;;  %v537_v27 = vpop.f32.mrb[2].mxu1  ;;  %v9910_v28 = vpop.f32.mrb[3].mxu0  ;;  %v536_v32 = vadd.f32 %v535_v23, %v11642_v0  ;;  %v10560_v22 = vld [vmem:[%s13654_s3 + $0x3c4] ss:$8 sps:$4 sm:$0xff]   ;;  %v10555_v23 = vld [vmem:[%s13654_s3 + $0x180] ss:$8 sps:$4 sm:$0xff]  }
  0xfe   : > { %v538_v30 = vadd.f32 %v537_v27, %v11648_v4  ;;  %v539_v31 = vpop.f32.mrb[3].mxu1  ;;  %v10558_v24 = vld [vmem:[%s13654_s3 + $0x3c0] ss:$8 sps:$4 sm:$0xff]   ;;  %v10561_v27 = vld [vmem:[%s13654_s3 + $0x190] ss:$8 sps:$4 sm:$0xff]  }
  0xff   : > { %v11702_v33 = vpack.c.bf16 %v623_v26, %v620_v25  ;;  %v540_v34 = vadd.f32 %v539_v31, %v11648_v4  ;;  %v10563_v25 = vld [vmem:[%s13654_s3 + $0x194] ss:$8 sps:$4 sm:$0xff]   ;;  %v10564_v28 = vld [vmem:[%s13654_s3 + $0x3d0] ss:$8 sps:$4 sm:$0xff]   ;;  %v10567_v31 = vld [vmem:[%s13654_s3 + $0x1a0] ss:$8 sps:$4 sm:$0xff]  }
 0x100   : > { %v11711_v37 = vpack.c.bf16 %v538_v30, %v534_v29  ;;  %v10566_v26 = vld [vmem:[%s13654_s3 + $0x3d4] ss:$8 sps:$4 sm:$0xff]   ;;  %v10569_v29 = vld [vmem:[%s13654_s3 + $0x1a4] ss:$8 sps:$4 sm:$0xff]  }
 0x101   : > { %v11713_v38 = vpack.c.bf16 %v540_v34, %v536_v32  ;;  %v10572_v30 = vld [vmem:[%s13654_s3 + $0x3e4] ss:$8 sps:$4 sm:$0xff]   ;;  %v10570_v32 = vld [vmem:[%s13654_s3 + $0x3e0] ss:$8 sps:$4 sm:$0xff]   ;;  %v10575_v34 = vld [vmem:[%s13654_s3 + $0x1b4] ss:$8 sps:$4 sm:$0xff]  }
 0x103   : > { %v576_v41 = vpop.f32.mrb[4].mxu1  ;;  %1099 = vmatprep.mubr.bf16.mxu1 %v11713_v38  ;;  %1661 = vmatprep.mubr.bf16.mxu0 %v11713_v38 }
 0x104   : > { %v578_v44 = vpop.f32.mrb[5].mxu1  ;;  %1100 = vmatmul.mubr.bf16.vlgmr.msra.gmra.mrb[8].mxu1 %v11711_v37  ;;  %1662 = vmatmul.mubr.bf16.vlgmr.msra.gmra.mrb[4].mxu0 %v11711_v37  ;;  %v577_v46 = vadd.f32 %v576_v41, %v11642_v0  ;;  %v10584_v41 = vld [vmem:[%s13654_s3 + $0x404] ss:$8 sps:$4 sm:$0xff]  }
 0x105   : > { %1111 = vmatpush1.bf16.msra.mxu1 %v10507_v35  ;;  %1673 = vmatpush1.bf16.msra.mxu0 %v10510_v36  ;;  %v580_v45 = vpop.f32.mrb[6].mxu1  ;;  %v579_v51 = vadd.f32 %v578_v44, %v11642_v0  ;;  %v10534_v0 = vld [vmem:[%s13654_s3 + $0x380] ss:$8 sps:$4 sm:$0xff]   ;;  %v10578_v35 = vld [vmem:[%s13654_s3 + $0x3f4] ss:$8 sps:$4 sm:$0xff]  }
 0x106   : > { %v581_v47 = vadd.f32 %v580_v45, %v11648_v4  ;;  %v582_v48 = vpop.f32.mrb[7].mxu1  ;;  %1112 = vmatprep.subr.bf16.mxu1 %v10515_v39  ;;  %1674 = vmatprep.subr.bf16.mxu0 %v10518_v40  ;;  %v10573_v36 = vld [vmem:[%s13654_s3 + $0x1b0] ss:$8 sps:$4 sm:$0xff]   ;;  %v10581_v40 = vld [vmem:[%s13654_s3 + $0x1c4] ss:$8 sps:$4 sm:$0xff]  }
 0x107   : > { %v583_v52 = vadd.f32 %v582_v48, %v11648_v4  ;;  %v10542_v4 = vld [vmem:[%s13654_s3 + $0x394] ss:$8 sps:$4 sm:$0xff]   ;;  %v10576_v39 = vld [vmem:[%s13654_s3 + $0x3f0] ss:$8 sps:$4 sm:$0xff]   ;;  %v10593_v48 = vld [vmem:[%s13654_s3 + $0x1e4] ss:$8 sps:$4 sm:$0xff]  }
 0x108   : > { %v11747_v55 = vpack.c.bf16 %v581_v47, %v577_v46  ;;  %v10587_v44 = vld [vmem:[%s13654_s3 + $0x1d4] ss:$8 sps:$4 sm:$0xff]   ;;  %v10585_v46 = vld [vmem:[%s13654_s3 + $0x1d0] ss:$8 sps:$4 sm:$0xff]  }
 0x109   : > { %v11749_v56 = vpack.c.bf16 %v583_v52, %v579_v51  ;;  %1113 = vmatpush1.bf16.msra.mxu1 %v10513_v42  ;;  %1675 = vmatpush1.bf16.msra.mxu0 %v10516_v43  ;;  %v10579_v42 = vld [vmem:[%s13654_s3 + $0x1c0] ss:$8 sps:$4 sm:$0xff]   ;;  %v10590_v45 = vld [vmem:[%s13654_s3 + $0x414] ss:$8 sps:$4 sm:$0xff]   ;;  %v10588_v47 = vld [vmem:[%s13654_s3 + $0x410] ss:$8 sps:$4 sm:$0xff]  }
 0x10a   : > { %1114 = vmatprep.subr.bf16.mxu1 %v10521_v49  ;;  %1676 = vmatprep.subr.bf16.mxu0 %v10524_v50  ;;  %v10582_v43 = vld [vmem:[%s13654_s3 + $0x400] ss:$8 sps:$4 sm:$0xff]   ;;  %v10596_v49 = vld [vmem:[%s13654_s3 + $0x424] ss:$8 sps:$4 sm:$0xff]   ;;  %v10599_v52 = vld [vmem:[%s13654_s3 + $0x1f4] ss:$8 sps:$4 sm:$0xff]  }
 0x10b   : > { %1142 = vmatprep.mubr.bf16.mxu1 %v11749_v56  ;;  %1704 = vmatprep.mubr.bf16.mxu0 %v11749_v56  ;;  %v10591_v50 = vld [vmem:[%s13654_s3 + $0x1e0] ss:$8 sps:$4 sm:$0xff]  }
 0x10c   : > { %v10594_v51 = vld [vmem:[%s13654_s3 + $0x420] ss:$8 sps:$4 sm:$0xff]  }
 0x10d   : > { %1115 = vmatpush1.bf16.msra.mxu1 %v10519_v53  ;;  %1677 = vmatpush1.bf16.msra.mxu0 %v10522_v54  ;;  %v10602_v53 = vld [vmem:[%s13654_s3 + $0x434] ss:$8 sps:$4 sm:$0xff]   ;;  %v10597_v54 = vld [vmem:[%s13654_s3 + $0x1f0] ss:$8 sps:$4 sm:$0xff]  }
 0x10e   : > { %1116 = vmatprep.subr.bf16.mxu1 %v10527_v57  ;;  %1678 = vmatprep.subr.bf16.mxu0 %v10530_v58  ;;  %v10600_v57 = vld [vmem:[%s13654_s3 + $0x430] ss:$8 sps:$4 sm:$0xff]   ;;  %v10605_v58 = vld [vmem:[%s13654_s3 + $0x204] ss:$8 sps:$4 sm:$0xff]  }
 0x111   : > { %1117 = vmatpush1.bf16.msra.mxu1 %v10525_v59  ;;  %1679 = vmatpush1.bf16.msra.mxu0 %v10528_v60  ;;  %v10608_v59 = vld [vmem:[%s13654_s3 + $0x444] ss:$8 sps:$4 sm:$0xff]   ;;  %v10603_v60 = vld [vmem:[%s13654_s3 + $0x200] ss:$8 sps:$4 sm:$0xff]  }
 0x112   : > { %1118 = vmatprep.subr.bf16.mxu1 %v10533_v61  ;;  %1680 = vmatprep.subr.bf16.mxu0 %v10536_v62  ;;  %v10606_v61 = vld [vmem:[%s13654_s3 + $0x440] ss:$8 sps:$4 sm:$0xff]   ;;  %v10611_v62 = vld [vmem:[%s13654_s3 + $0x214] ss:$8 sps:$4 sm:$0xff]  }
 0x115   : > { %1119 = vmatpush1.bf16.msra.mxu1 %v10531_v63  ;;  %1681 = vmatpush1.bf16.msra.mxu0 %v10534_v0  ;;  %v10614_v63 = vld [vmem:[%s13654_s3 + $0x454] ss:$8 sps:$4 sm:$0xff]   ;;  %v10609_v0 = vld [vmem:[%s13654_s3 + $0x210] ss:$8 sps:$4 sm:$0xff]  }
 0x116   : > { %1120 = vmatprep.subr.bf16.mxu1 %v10539_v3  ;;  %1682 = vmatprep.subr.bf16.mxu0 %v10542_v4  ;;  %v10612_v3 = vld [vmem:[%s13654_s3 + $0x450] ss:$8 sps:$4 sm:$0xff]   ;;  %v10617_v4 = vld [vmem:[%s13654_s3 + $0x224] ss:$8 sps:$4 sm:$0xff]  }
 0x119   : > { %1121 = vmatpush1.bf16.msra.mxu1 %v10537_v5  ;;  %1683 = vmatpush1.bf16.msra.mxu0 %v10540_v6  ;;  %v10620_v5 = vld [vmem:[%s13654_s3 + $0x464] ss:$8 sps:$4 sm:$0xff]   ;;  %v10615_v6 = vld [vmem:[%s13654_s3 + $0x220] ss:$8 sps:$4 sm:$0xff]  }
 0x11a   : > { %1122 = vmatprep.subr.bf16.mxu1 %v10545_v8  ;;  %1684 = vmatprep.subr.bf16.mxu0 %v10548_v10  ;;  %v10618_v8 = vld [vmem:[%s13654_s3 + $0x460] ss:$8 sps:$4 sm:$0xff]   ;;  %v10623_v10 = vld [vmem:[%s13654_s3 + $0x234] ss:$8 sps:$4 sm:$0xff]  }
 0x11d   : > { %1123 = vmatpush1.bf16.msra.mxu1 %v10543_v11  ;;  %1685 = vmatpush1.bf16.msra.mxu0 %v10546_v13  ;;  %v10626_v11 = vld [vmem:[%s13654_s3 + $0x474] ss:$8 sps:$4 sm:$0xff]   ;;  %v10621_v13 = vld [vmem:[%s13654_s3 + $0x230] ss:$8 sps:$4 sm:$0xff]  }
 0x11e   : > { %1124 = vmatprep.subr.bf16.mxu1 %v10551_v15  ;;  %1686 = vmatprep.subr.bf16.mxu0 %v10554_v16  ;;  %v10624_v15 = vld [vmem:[%s13654_s3 + $0x470] ss:$8 sps:$4 sm:$0xff]   ;;  %v10629_v16 = vld [vmem:[%s13654_s3 + $0x484] ss:$8 sps:$4 sm:$0xff]  }
 0x121   : > { %1125 = vmatpush1.bf16.msra.mxu1 %v10549_v18  ;;  %1687 = vmatpush1.bf16.msra.mxu0 %v10552_v20  ;;  %v10632_v18 = vld [vmem:[%s13654_s3 + $0x6c4] ss:$8 sps:$4 sm:$0xff]   ;;  %v10627_v20 = vld [vmem:[%s13654_s3 + $0x480] ss:$8 sps:$4 sm:$0xff]  }
 0x122   : > { %1126 = vmatprep.subr.bf16.mxu1 %v10557_v21  ;;  %1688 = vmatprep.subr.bf16.mxu0 %v10560_v22  ;;  %v10630_v21 = vld [vmem:[%s13654_s3 + $0x6c0] ss:$8 sps:$4 sm:$0xff]   ;;  %v10635_v22 = vld [vmem:[%s13654_s3 + $0x494] ss:$8 sps:$4 sm:$0xff]  }
 0x125   : > { %1127 = vmatpush1.bf16.msra.mxu1 %v10555_v23  ;;  %1689 = vmatpush1.bf16.msra.mxu0 %v10558_v24  ;;  %v10638_v23 = vld [vmem:[%s13654_s3 + $0x6d4] ss:$8 sps:$4 sm:$0xff]   ;;  %v10633_v24 = vld [vmem:[%s13654_s3 + $0x490] ss:$8 sps:$4 sm:$0xff]  }
 0x126   : > { %1128 = vmatprep.subr.bf16.mxu1 %v10563_v25  ;;  %1690 = vmatprep.subr.bf16.mxu0 %v10566_v26  ;;  %v10636_v25 = vld [vmem:[%s13654_s3 + $0x6d0] ss:$8 sps:$4 sm:$0xff]   ;;  %v10641_v26 = vld [vmem:[%s13654_s3 + $0x4a4] ss:$8 sps:$4 sm:$0xff]  }
 0x129   : > { %1129 = vmatpush1.bf16.msra.mxu1 %v10561_v27  ;;  %1691 = vmatpush1.bf16.msra.mxu0 %v10564_v28  ;;  %v10639_v27 = vld [vmem:[%s13654_s3 + $0x4a0] ss:$8 sps:$4 sm:$0xff]   ;;  %v10644_v28 = vld [vmem:[%s13654_s3 + $0x6e4] ss:$8 sps:$4 sm:$0xff]  }
 0x12a   : > { %1130 = vmatprep.subr.bf16.mxu1 %v10569_v29  ;;  %1692 = vmatprep.subr.bf16.mxu0 %v10572_v30  ;;  %v10647_v29 = vld [vmem:[%s13654_s3 + $0x4b4] ss:$8 sps:$4 sm:$0xff]   ;;  %v10645_v30 = vld [vmem:[%s13654_s3 + $0x4b0] ss:$8 sps:$4 sm:$0xff]  }
 0x12d   : > { %1131 = vmatpush1.bf16.msra.mxu1 %v10567_v31  ;;  %1693 = vmatpush1.bf16.msra.mxu0 %v10570_v32  ;;  %v10650_v31 = vld [vmem:[%s13654_s3 + $0x6f4] ss:$8 sps:$4 sm:$0xff]   ;;  %v10648_v32 = vld [vmem:[%s13654_s3 + $0x6f0] ss:$8 sps:$4 sm:$0xff]  }
 0x12e   : > { %1132 = vmatprep.subr.bf16.mxu1 %v10575_v34  ;;  %1694 = vmatprep.subr.bf16.mxu0 %v10578_v35  ;;  %v10653_v34 = vld [vmem:[%s13654_s3 + $0x4c4] ss:$8 sps:$4 sm:$0xff]   ;;  %v10651_v35 = vld [vmem:[%s13654_s3 + $0x4c0] ss:$8 sps:$4 sm:$0xff]  }
 0x131   : > { %1133 = vmatpush1.bf16.msra.mxu1 %v10573_v36  ;;  %1695 = vmatpush1.bf16.msra.mxu0 %v10576_v39  ;;  %v10656_v36 = vld [vmem:[%s13654_s3 + $0x704] ss:$8 sps:$4 sm:$0xff]   ;;  %v10654_v39 = vld [vmem:[%s13654_s3 + $0x700] ss:$8 sps:$4 sm:$0xff]  }
 0x132   : > { %1134 = vmatprep.subr.bf16.mxu1 %v10581_v40  ;;  %1696 = vmatprep.subr.bf16.mxu0 %v10584_v41  ;;  %v10659_v40 = vld [vmem:[%s13654_s3 + $0x4d4] ss:$8 sps:$4 sm:$0xff]  }
 0x133   : > { %v10662_v41 = vld [vmem:[%s13654_s3 + $0x714] ss:$8 sps:$4 sm:$0xff]  }
 0x135   : > { %1135 = vmatpush1.bf16.msra.mxu1 %v10579_v42  ;;  %1697 = vmatpush1.bf16.msra.mxu0 %v10582_v43  ;;  %v10657_v42 = vld [vmem:[%s13654_s3 + $0x4d0] ss:$8 sps:$4 sm:$0xff]  }
 0x136   : > { %1136 = vmatprep.subr.bf16.mxu1 %v10587_v44  ;;  %1698 = vmatprep.subr.bf16.mxu0 %v10590_v45  ;;  %v10660_v43 = vld [vmem:[%s13654_s3 + $0x710] ss:$8 sps:$4 sm:$0xff]   ;;  %v10665_v44 = vld [vmem:[%s13654_s3 + $0x4e4] ss:$8 sps:$4 sm:$0xff]  }
 0x137   : > { %v10668_v45 = vld [vmem:[%s13654_s3 + $0x724] ss:$8 sps:$4 sm:$0xff]  }
 0x139   : > { %1137 = vmatpush1.bf16.msra.mxu1 %v10585_v46  ;;  %1699 = vmatpush1.bf16.msra.mxu0 %v10588_v47  ;;  %v10663_v46 = vld [vmem:[%s13654_s3 + $0x4e0] ss:$8 sps:$4 sm:$0xff]  }
 0x13a   : > { %1138 = vmatprep.subr.bf16.mxu1 %v10593_v48  ;;  %1700 = vmatprep.subr.bf16.mxu0 %v10596_v49  ;;  %v10666_v47 = vld [vmem:[%s13654_s3 + $0x720] ss:$8 sps:$4 sm:$0xff]   ;;  %v10671_v48 = vld [vmem:[%s13654_s3 + $0x4f4] ss:$8 sps:$4 sm:$0xff]  }
 0x13b   : > { %v10674_v49 = vld [vmem:[%s13654_s3 + $0x734] ss:$8 sps:$4 sm:$0xff]  }
 0x13d   : > { %1139 = vmatpush1.bf16.msra.mxu1 %v10591_v50  ;;  %1701 = vmatpush1.bf16.msra.mxu0 %v10594_v51  ;;  %v10669_v50 = vld [vmem:[%s13654_s3 + $0x4f0] ss:$8 sps:$4 sm:$0xff]  }
 0x13e   : > { %1140 = vmatprep.subr.bf16.mxu1 %v10599_v52  ;;  %1702 = vmatprep.subr.bf16.mxu0 %v10602_v53  ;;  %v10672_v51 = vld [vmem:[%s13654_s3 + $0x730] ss:$8 sps:$4 sm:$0xff]   ;;  %v10677_v52 = vld [vmem:[%s13654_s3 + $0x504] ss:$8 sps:$4 sm:$0xff]  }
 0x13f   : > { %v10680_v53 = vld [vmem:[%s13654_s3 + $0x744] ss:$8 sps:$4 sm:$0xff]  }
 0x141   : > { %1141 = vmatpush1.bf16.msra.mxu1 %v10597_v54  ;;  %1703 = vmatpush1.bf16.msra.mxu0 %v10600_v57  ;;  %v10675_v54 = vld [vmem:[%s13654_s3 + $0x500] ss:$8 sps:$4 sm:$0xff]  }
 0x142   : > { %1153 = vmatprep.subr.bf16.mxu1 %v10605_v58  ;;  %1715 = vmatprep.subr.bf16.mxu0 %v10608_v59  ;;  %v10678_v57 = vld [vmem:[%s13654_s3 + $0x740] ss:$8 sps:$4 sm:$0xff]   ;;  %v10683_v58 = vld [vmem:[%s13654_s3 + $0x514] ss:$8 sps:$4 sm:$0xff]  }
 0x143   : > { %v10686_v59 = vld [vmem:[%s13654_s3 + $0x754] ss:$8 sps:$4 sm:$0xff]  }
 0x144   : > { %1143 = vmatmul.mubr.bf16.vlgmr.msra.gmra.mrb[8].mxu1 %v11747_v55  ;;  %1705 = vmatmul.mubr.bf16.vlgmr.msra.gmra.mrb[4].mxu0 %v11747_v55 }
 0x145   : > { %1154 = vmatpush1.bf16.msra.mxu1 %v10603_v60  ;;  %1716 = vmatpush1.bf16.msra.mxu0 %v10606_v61  ;;  %v10681_v60 = vld [vmem:[%s13654_s3 + $0x510] ss:$8 sps:$4 sm:$0xff]  }
 0x146   : > { %1155 = vmatprep.subr.bf16.mxu1 %v10611_v62  ;;  %1717 = vmatprep.subr.bf16.mxu0 %v10614_v63  ;;  %v10684_v61 = vld [vmem:[%s13654_s3 + $0x750] ss:$8 sps:$4 sm:$0xff]   ;;  %v10689_v62 = vld [vmem:[%s13654_s3 + $0x524] ss:$8 sps:$4 sm:$0xff]  }
 0x147   : > { %1185 = vmatprep.mubr.bf16.mxu1 %v11122_v1  ;;  %1747 = vmatprep.mubr.bf16.mxu0 %v11122_v1  ;;  %v10692_v63 = vld [vmem:[%s13654_s3 + $0x764] ss:$8 sps:$4 sm:$0xff]  }
 0x149   : > { %1156 = vmatpush1.bf16.msra.mxu1 %v10609_v0  ;;  %1718 = vmatpush1.bf16.msra.mxu0 %v10612_v3  ;;  %v10687_v0 = vld [vmem:[%s13654_s3 + $0x520] ss:$8 sps:$4 sm:$0xff]  }
 0x14a   : > { %1157 = vmatprep.subr.bf16.mxu1 %v10617_v4  ;;  %1719 = vmatprep.subr.bf16.mxu0 %v10620_v5  ;;  %v10690_v3 = vld [vmem:[%s13654_s3 + $0x760] ss:$8 sps:$4 sm:$0xff]   ;;  %v10695_v4 = vld [vmem:[%s13654_s3 + $0x534] ss:$8 sps:$4 sm:$0xff]  }
 0x14b   : > { %v10698_v5 = vld [vmem:[%s13654_s3 + $0x774] ss:$8 sps:$4 sm:$0xff]  }
 0x14d   : > { %1158 = vmatpush1.bf16.msra.mxu1 %v10615_v6  ;;  %1720 = vmatpush1.bf16.msra.mxu0 %v10618_v8  ;;  %v10693_v6 = vld [vmem:[%s13654_s3 + $0x530] ss:$8 sps:$4 sm:$0xff]  }
 0x14e   : > { %1159 = vmatprep.subr.bf16.mxu1 %v10623_v10  ;;  %1721 = vmatprep.subr.bf16.mxu0 %v10626_v11  ;;  %v10696_v8 = vld [vmem:[%s13654_s3 + $0x770] ss:$8 sps:$4 sm:$0xff]   ;;  %v10701_v10 = vld [vmem:[%s13654_s3 + $0x544] ss:$8 sps:$4 sm:$0xff]  }
 0x14f   : > { %v10704_v11 = vld [vmem:[%s13654_s3 + $0x784] ss:$8 sps:$4 sm:$0xff]  }
 0x151   : > { %1160 = vmatpush1.bf16.msra.mxu1 %v10621_v13  ;;  %1722 = vmatpush1.bf16.msra.mxu0 %v10624_v15  ;;  %v10699_v13 = vld [vmem:[%s13654_s3 + $0x540] ss:$8 sps:$4 sm:$0xff]  }
 0x152   : > { %2191 = vmatprep.subr.bf16.mxu1 %v10629_v16  ;;  %2753 = vmatprep.subr.bf16.mxu0 %v10632_v18  ;;  %v10702_v15 = vld [vmem:[%s13654_s3 + $0x780] ss:$8 sps:$4 sm:$0xff]   ;;  %v10707_v16 = vld [vmem:[%s13654_s3 + $0x554] ss:$8 sps:$4 sm:$0xff]  }
 0x153   : > { %v10710_v18 = vld [vmem:[%s13654_s3 + $0x794] ss:$8 sps:$4 sm:$0xff]  }
 0x154   : > { %8848 = vmatmul.mubr.msk.bf16.vlgmr.msra.gmra.mrb[8].mxu1 %vm1063_vm2, %v11702_v33  ;;  %8993 = vmatmul.mubr.msk.bf16.vlgmr.msra.gmra.mrb[4].mxu0 %vm1063_vm2, %v11702_v33 }
 0x155   : > { %2192 = vmatpush1.bf16.msra.mxu1 %v10627_v20  ;;  %2223 = vmatprep.mubr.bf16.mxu1 %v11713_v38  ;;  %v10705_v20 = vld [vmem:[%s13654_s3 + $0x550] ss:$8 sps:$4 sm:$0xff]  }
 0x156   : > { %2754 = vmatpush1.bf16.msra.mxu0 %v10630_v21  ;;  %2785 = vmatprep.mubr.bf16.mxu0 %v11713_v38  ;;  %v10642_v38 = vld [vmem:[%s13654_s3 + $0x6e0] ss:$8 sps:$4 sm:$0xff]   ;;  %v10708_v21 = vld [vmem:[%s13654_s3 + $0x790] ss:$8 sps:$4 sm:$0xff]  }
 0x157   : > { %2193 = vmatprep.subr.bf16.mxu1 %v10635_v22  ;;  %2755 = vmatprep.subr.bf16.mxu0 %v10638_v23  ;;  %v10713_v22 = vld [vmem:[%s13654_s3 + $0x564] ss:$8 sps:$4 sm:$0xff]  }
 0x158   : > { %v10716_v23 = vld [vmem:[%s13654_s3 + $0x7a4] ss:$8 sps:$4 sm:$0xff]  }
 0x159   : > { %2194 = vmatpush1.bf16.msra.mxu1 %v10633_v24  ;;  %v10711_v24 = vld [vmem:[%s13654_s3 + $0x560] ss:$8 sps:$4 sm:$0xff]  }
 0x15a   : > { %2756 = vmatpush1.bf16.msra.mxu0 %v10636_v25  ;;  %2195 = vmatprep.subr.bf16.mxu1 %v10641_v26  ;;  %v10714_v25 = vld [vmem:[%s13654_s3 + $0x7a0] ss:$8 sps:$4 sm:$0xff]   ;;  %v10719_v26 = vld [vmem:[%s13654_s3 + $0x574] ss:$8 sps:$4 sm:$0xff]  }
 0x15b   : > { %2757 = vmatprep.subr.bf16.mxu0 %v10644_v28  ;;  %v10717_v28 = vld [vmem:[%s13654_s3 + $0x570] ss:$8 sps:$4 sm:$0xff]  }
 0x15d   : > { %2196 = vmatpush1.bf16.msra.mxu1 %v10639_v27  ;;  %v10722_v27 = vld [vmem:[%s13654_s3 + $0x7b4] ss:$8 sps:$4 sm:$0xff]  }
 0x15e   : > { %2758 = vmatpush1.bf16.msra.mxu0 %v10642_v38  ;;  %2197 = vmatprep.subr.bf16.mxu1 %v10647_v29  ;;  %v10720_v38 = vld [vmem:[%s13654_s3 + $0x7b0] ss:$8 sps:$4 sm:$0xff]   ;;  %v10725_v29 = vld [vmem:[%s13654_s3 + $0x584] ss:$8 sps:$4 sm:$0xff]  }
 0x15f   : > { %2759 = vmatprep.subr.bf16.mxu0 %v10650_v31  ;;  %v10723_v31 = vld [vmem:[%s13654_s3 + $0x580] ss:$8 sps:$4 sm:$0xff]  }
 0x161   : > { %2198 = vmatpush1.bf16.msra.mxu1 %v10645_v30  ;;  %v10728_v30 = vld [vmem:[%s13654_s3 + $0x7c4] ss:$8 sps:$4 sm:$0xff]  }
 0x162   : > { %2760 = vmatpush1.bf16.msra.mxu0 %v10648_v32  ;;  %2199 = vmatprep.subr.bf16.mxu1 %v10653_v34  ;;  %v10726_v32 = vld [vmem:[%s13654_s3 + $0x7c0] ss:$8 sps:$4 sm:$0xff]   ;;  %v10731_v34 = vld [vmem:[%s13654_s3 + $0x594] ss:$8 sps:$4 sm:$0xff]  }
 0x163   : > { %2761 = vmatprep.subr.bf16.mxu0 %v10656_v36  ;;  %v10729_v36 = vld [vmem:[%s13654_s3 + $0x590] ss:$8 sps:$4 sm:$0xff]  }
 0x165   : > { %2200 = vmatpush1.bf16.msra.mxu1 %v10651_v35  ;;  %v10734_v35 = vld [vmem:[%s13654_s3 + $0x7d4] ss:$8 sps:$4 sm:$0xff]  }
 0x166   : > { %2762 = vmatpush1.bf16.msra.mxu0 %v10654_v39  ;;  %2201 = vmatprep.subr.bf16.mxu1 %v10659_v40  ;;  %v10732_v39 = vld [vmem:[%s13654_s3 + $0x7d0] ss:$8 sps:$4 sm:$0xff]   ;;  %v10737_v40 = vld [vmem:[%s13654_s3 + $0x5a4] ss:$8 sps:$4 sm:$0xff]  }
 0x167   : > { %2763 = vmatprep.subr.bf16.mxu0 %v10662_v41  ;;  %v10735_v41 = vld [vmem:[%s13654_s3 + $0x5a0] ss:$8 sps:$4 sm:$0xff]  }
 0x169   : > { %2202 = vmatpush1.bf16.msra.mxu1 %v10657_v42  ;;  %v10738_v42 = vld [vmem:[%s13654_s3 + $0x7e0] ss:$8 sps:$4 sm:$0xff]  }
 0x16a   : > { %2764 = vmatpush1.bf16.msra.mxu0 %v10660_v43  ;;  %2203 = vmatprep.subr.bf16.mxu1 %v10665_v44  ;;  %v10746_v43 = vld [vmem:[%s13654_s3 + $0x7f4] ss:$8 sps:$4 sm:$0xff]   ;;  %v10741_v44 = vld [vmem:[%s13654_s3 + $0x5b0] ss:$8 sps:$4 sm:$0xff]  }
 0x16b   : > { %2765 = vmatprep.subr.bf16.mxu0 %v10668_v45  ;;  %v10744_v45 = vld [vmem:[%s13654_s3 + $0x7f0] ss:$8 sps:$4 sm:$0xff]  }
 0x16d   : > { %2204 = vmatpush1.bf16.msra.mxu1 %v10663_v46  ;;  %v10749_v46 = vld [vmem:[%s13654_s3 + $0x5c4] ss:$8 sps:$4 sm:$0xff]  }
 0x16e   : > { %2766 = vmatpush1.bf16.msra.mxu0 %v10666_v47  ;;  %2205 = vmatprep.subr.bf16.mxu1 %v10671_v48  ;;  %v10752_v47 = vld [vmem:[%s13654_s3 + $0x804] ss:$8 sps:$4 sm:$0xff]   ;;  %v10747_v48 = vld [vmem:[%s13654_s3 + $0x5c0] ss:$8 sps:$4 sm:$0xff]  }
 0x16f   : > { %2767 = vmatprep.subr.bf16.mxu0 %v10674_v49  ;;  %v10750_v49 = vld [vmem:[%s13654_s3 + $0x800] ss:$8 sps:$4 sm:$0xff]  }
 0x171   : > { %2206 = vmatpush1.bf16.msra.mxu1 %v10669_v50  ;;  %v10755_v50 = vld [vmem:[%s13654_s3 + $0x5d4] ss:$8 sps:$4 sm:$0xff]  }
 0x172   : > { %2768 = vmatpush1.bf16.msra.mxu0 %v10672_v51  ;;  %2207 = vmatprep.subr.bf16.mxu1 %v10677_v52  ;;  %v10758_v51 = vld [vmem:[%s13654_s3 + $0x814] ss:$8 sps:$4 sm:$0xff]   ;;  %v10753_v52 = vld [vmem:[%s13654_s3 + $0x5d0] ss:$8 sps:$4 sm:$0xff]  }
 0x173   : > { %2769 = vmatprep.subr.bf16.mxu0 %v10680_v53  ;;  %v10756_v53 = vld [vmem:[%s13654_s3 + $0x810] ss:$8 sps:$4 sm:$0xff]  }
 0x175   : > { %2208 = vmatpush1.bf16.msra.mxu1 %v10675_v54  ;;  %v10761_v54 = vld [vmem:[%s13654_s3 + $0x5e4] ss:$8 sps:$4 sm:$0xff]  }
 0x176   : > { %2770 = vmatpush1.bf16.msra.mxu0 %v10678_v57  ;;  %2209 = vmatprep.subr.bf16.mxu1 %v10683_v58  ;;  %v10764_v57 = vld [vmem:[%s13654_s3 + $0x824] ss:$8 sps:$4 sm:$0xff]   ;;  %v10759_v58 = vld [vmem:[%s13654_s3 + $0x5e0] ss:$8 sps:$4 sm:$0xff]  }
 0x177   : > { %2771 = vmatprep.subr.bf16.mxu0 %v10686_v59  ;;  %v10762_v59 = vld [vmem:[%s13654_s3 + $0x820] ss:$8 sps:$4 sm:$0xff]  }
 0x179   : > { %2210 = vmatpush1.bf16.msra.mxu1 %v10681_v60  ;;  %v10767_v60 = vld [vmem:[%s13654_s3 + $0x5f4] ss:$8 sps:$4 sm:$0xff]  }
 0x17a   : > { %2772 = vmatpush1.bf16.msra.mxu0 %v10684_v61  ;;  %2211 = vmatprep.subr.bf16.mxu1 %v10689_v62  ;;  %v10770_v61 = vld [vmem:[%s13654_s3 + $0x834] ss:$8 sps:$4 sm:$0xff]  }
 0x17b   : > { %2773 = vmatprep.subr.bf16.mxu0 %v10692_v63  ;;  %v12256_v62 = vld [vmem:[%s13655_s4] ss:$52 sps:$4 sm:$0xff]   ;;  %v10765_v63 = vld [vmem:[%s13654_s3 + $0x5f0] ss:$8 sps:$4 sm:$0xff]  }
 0x17c   : > { %3021 = vrot.lane.b32.xlu1 %v12256_v62, %s13674_s1 }
 0x17d   : > { %2212 = vmatpush1.bf16.msra.mxu1 %v10687_v0  ;;  %v12266_v0 = vld [vmem:[%s13655_s4 + $0x68] ss:$52 sps:$4 sm:$0xff]  }
 0x17e   : > { %2774 = vmatpush1.bf16.msra.mxu0 %v10690_v3  ;;  %2213 = vmatprep.subr.bf16.mxu1 %v10695_v4  ;;  %v10768_v3 = vld [vmem:[%s13654_s3 + $0x830] ss:$8 sps:$4 sm:$0xff]   ;;  %v10773_v4 = vld [vmem:[%s13654_s3 + $0x604] ss:$8 sps:$4 sm:$0xff]  }
 0x17f   : > { %2775 = vmatprep.subr.bf16.mxu0 %v10698_v5  ;;  %v10776_v5 = vld [vmem:[%s13654_s3 + $0x844] ss:$8 sps:$4 sm:$0xff]  }
 0x180   : > { %3023 = vrot.lane.b32.xlu1 %v12266_v0, %s13674_s1 }
 0x181   : > { %2214 = vmatpush1.bf16.msra.mxu1 %v10693_v6  ;;  %v10771_v6 = vld [vmem:[%s13654_s3 + $0x600] ss:$8 sps:$4 sm:$0xff]  }
 0x182   : > { %2776 = vmatpush1.bf16.msra.mxu0 %v10696_v8  ;;  %2215 = vmatprep.subr.bf16.mxu1 %v10701_v10  ;;  %v12285_v8 = vld [vmem:[%s13655_s4 + $0x138] ss:$52 sps:$4 sm:$0xff]   ;;  %v10774_v10 = vld [vmem:[%s13654_s3 + $0x840] ss:$8 sps:$4 sm:$0xff]  }
 0x183   : > { %2777 = vmatprep.subr.bf16.mxu0 %v10704_v11  ;;  %v10779_v11 = vld [vmem:[%s13654_s3 + $0x614] ss:$8 sps:$4 sm:$0xff]  }
 0x184   : > { %3027 = vrot.lane.b32.xlu1 %v12285_v8, %s13674_s1 }
 0x185   : > { %2216 = vmatpush1.bf16.msra.mxu1 %v10699_v13  ;;  %v10782_v13 = vld [vmem:[%s13654_s3 + $0x854] ss:$8 sps:$4 sm:$0xff]  }
 0x186   : > { %2778 = vmatpush1.bf16.msra.mxu0 %v10702_v15  ;;  %2217 = vmatprep.subr.bf16.mxu1 %v10707_v16  ;;  %v10777_v15 = vld [vmem:[%s13654_s3 + $0x610] ss:$8 sps:$4 sm:$0xff]   ;;  %v12304_v16 = vld [vmem:[%s13655_s4 + $0x208] ss:$52 sps:$4 sm:$0xff]  }
 0x187   : > { %2779 = vmatprep.subr.bf16.mxu0 %v10710_v18  ;;  %v10780_v18 = vld [vmem:[%s13654_s3 + $0x850] ss:$8 sps:$4 sm:$0xff]  }
 0x188   : > { %3031 = vrot.lane.b32.xlu1 %v12304_v16, %s13674_s1 }
 0x189   : > { %2218 = vmatpush1.bf16.msra.mxu1 %v10705_v20  ;;  %v10785_v20 = vld [vmem:[%s13654_s3 + $0x624] ss:$8 sps:$4 sm:$0xff]  }
 0x18a   : > { %2780 = vmatpush1.bf16.msra.mxu0 %v10708_v21  ;;  %2219 = vmatprep.subr.bf16.mxu1 %v10713_v22  ;;  %v10788_v21 = vld [vmem:[%s13654_s3 + $0x864] ss:$8 sps:$4 sm:$0xff]   ;;  %v10783_v22 = vld [vmem:[%s13654_s3 + $0x620] ss:$8 sps:$4 sm:$0xff]  }
 0x18b   : > { %2781 = vmatprep.subr.bf16.mxu0 %v10716_v23  ;;  %v12323_v23 = vld [vmem:[%s13655_s4 + $0x2d8] ss:$52 sps:$4 sm:$0xff]  }
 0x18c   : > { %3035 = vrot.lane.b32.xlu1 %v12323_v23, %s13674_s1 }
 0x18d   : > { %2220 = vmatpush1.bf16.msra.mxu1 %v10711_v24  ;;  %v10786_v24 = vld [vmem:[%s13654_s3 + $0x860] ss:$8 sps:$4 sm:$0xff]  }
 0x18e   : > { %2782 = vmatpush1.bf16.msra.mxu0 %v10714_v25  ;;  %2221 = vmatprep.subr.bf16.mxu1 %v10719_v26  ;;  %v10791_v25 = vld [vmem:[%s13654_s3 + $0x634] ss:$8 sps:$4 sm:$0xff]  }
 0x18f   : > { %2783 = vmatprep.subr.bf16.mxu0 %v10722_v27  ;;  %v10794_v26 = vld [vmem:[%s13654_s3 + $0x874] ss:$8 sps:$4 sm:$0xff]   ;;  %v10789_v27 = vld [vmem:[%s13654_s3 + $0x630] ss:$8 sps:$4 sm:$0xff]  }
 0x191   : > { %2222 = vmatpush1.bf16.msra.mxu1 %v10717_v28  ;;  %v10792_v28 = vld [vmem:[%s13654_s3 + $0x870] ss:$8 sps:$4 sm:$0xff]  }
 0x192   : > { %2784 = vmatpush1.bf16.msra.mxu0 %v10720_v38  ;;  %2234 = vmatprep.subr.bf16.mxu1 %v10725_v29  ;;  %v10797_v38 = vld [vmem:[%s13654_s3 + $0x644] ss:$8 sps:$4 sm:$0xff]  }
 0x193   : > { %2796 = vmatprep.subr.bf16.mxu0 %v10728_v30  ;;  %v10800_v29 = vld [vmem:[%s13654_s3 + $0x884] ss:$8 sps:$4 sm:$0xff]   ;;  %v10795_v30 = vld [vmem:[%s13654_s3 + $0x640] ss:$8 sps:$4 sm:$0xff]  }
 0x194   : > { %2224 = vmatmul.mubr.bf16.vlgmr.msra.gmra.mrb[12].mxu1 %v11711_v37 }
 0x195   : > { %2786 = vmatmul.mubr.bf16.vlgmr.msra.gmra.mrb[8].mxu0 %v11711_v37  ;;  %2235 = vmatpush1.bf16.msra.mxu1 %v10723_v31  ;;  %v10740_v37 = vld [vmem:[%s13654_s3 + $0x7e4] ss:$8 sps:$4 sm:$0xff]   ;;  %v10798_v31 = vld [vmem:[%s13654_s3 + $0x880] ss:$8 sps:$4 sm:$0xff]  }
 0x196   : > { %2266 = vmatprep.mubr.bf16.mxu1 %v11749_v56  ;;  %2797 = vmatpush1.bf16.msra.mxu0 %v10726_v32  ;;  %v10803_v32 = vld [vmem:[%s13654_s3 + $0x654] ss:$8 sps:$4 sm:$0xff]  }
 0x197   : > { %2828 = vmatprep.mubr.bf16.mxu0 %v11749_v56  ;;  %2236 = vmatprep.subr.bf16.mxu1 %v10731_v34  ;;  %v10743_v56 = vld [vmem:[%s13654_s3 + $0x5b4] ss:$8 sps:$4 sm:$0xff]  }
 0x198   : > { %2798 = vmatprep.subr.bf16.mxu0 %v10734_v35  ;;  %v10806_v34 = vld [vmem:[%s13654_s3 + $0x894] ss:$8 sps:$4 sm:$0xff]   ;;  %v10801_v35 = vld [vmem:[%s13654_s3 + $0x650] ss:$8 sps:$4 sm:$0xff]  }
 0x199   : > { %2237 = vmatpush1.bf16.msra.mxu1 %v10729_v36  ;;  %v10804_v36 = vld [vmem:[%s13654_s3 + $0x890] ss:$8 sps:$4 sm:$0xff]  }
 0x19a   : > { %2799 = vmatpush1.bf16.msra.mxu0 %v10732_v39  ;;  %2238 = vmatprep.subr.bf16.mxu1 %v10737_v40  ;;  %v10809_v39 = vld [vmem:[%s13654_s3 + $0x664] ss:$8 sps:$4 sm:$0xff]  }
 0x19b   : > { %2800 = vmatprep.subr.bf16.mxu0 %v10740_v37  ;;  %v10812_v40 = vld [vmem:[%s13654_s3 + $0x8a4] ss:$8 sps:$4 sm:$0xff]   ;;  %v10807_v37 = vld [vmem:[%s13654_s3 + $0x660] ss:$8 sps:$4 sm:$0xff]  }
 0x19d   : > { %2239 = vmatpush1.bf16.msra.mxu1 %v10735_v41  ;;  %v10810_v41 = vld [vmem:[%s13654_s3 + $0x8a0] ss:$8 sps:$4 sm:$0xff]  }
 0x19e   : > { %2801 = vmatpush1.bf16.msra.mxu0 %v10738_v42  ;;  %2240 = vmatprep.subr.bf16.mxu1 %v10743_v56  ;;  %v10815_v42 = vld [vmem:[%s13654_s3 + $0x674] ss:$8 sps:$4 sm:$0xff]  }
 0x19f   : > { %2802 = vmatprep.subr.bf16.mxu0 %v10746_v43  ;;  %v10818_v56 = vld [vmem:[%s13654_s3 + $0x8b4] ss:$8 sps:$4 sm:$0xff]   ;;  %v10813_v43 = vld [vmem:[%s13654_s3 + $0x670] ss:$8 sps:$4 sm:$0xff]  }
 0x1a1   : > { %2241 = vmatpush1.bf16.msra.mxu1 %v10741_v44  ;;  %v10816_v44 = vld [vmem:[%s13654_s3 + $0x8b0] ss:$8 sps:$4 sm:$0xff]  }
 0x1a2   : > { %2803 = vmatpush1.bf16.msra.mxu0 %v10744_v45  ;;  %2242 = vmatprep.subr.bf16.mxu1 %v10749_v46  ;;  %v10821_v45 = vld [vmem:[%s13654_s3 + $0x684] ss:$8 sps:$4 sm:$0xff]  }
 0x1a3   : > { %2804 = vmatprep.subr.bf16.mxu0 %v10752_v47  ;;  %v10824_v46 = vld [vmem:[%s13654_s3 + $0x8c4] ss:$8 sps:$4 sm:$0xff]   ;;  %v10819_v47 = vld [vmem:[%s13654_s3 + $0x680] ss:$8 sps:$4 sm:$0xff]  }
 0x1a5   : > { %2243 = vmatpush1.bf16.msra.mxu1 %v10747_v48  ;;  %v10822_v48 = vld [vmem:[%s13654_s3 + $0x8c0] ss:$8 sps:$4 sm:$0xff]  }
 0x1a6   : > { %2805 = vmatpush1.bf16.msra.mxu0 %v10750_v49  ;;  %2244 = vmatprep.subr.bf16.mxu1 %v10755_v50  ;;  %v10827_v49 = vld [vmem:[%s13654_s3 + $0x694] ss:$8 sps:$4 sm:$0xff]  }
 0x1a7   : > { %2806 = vmatprep.subr.bf16.mxu0 %v10758_v51  ;;  %v10830_v50 = vld [vmem:[%s13654_s3 + $0x8d4] ss:$8 sps:$4 sm:$0xff]   ;;  %v10825_v51 = vld [vmem:[%s13654_s3 + $0x690] ss:$8 sps:$4 sm:$0xff]  }
 0x1a9   : > { %2245 = vmatpush1.bf16.msra.mxu1 %v10753_v52  ;;  %v10828_v52 = vld [vmem:[%s13654_s3 + $0x8d0] ss:$8 sps:$4 sm:$0xff]  }
 0x1aa   : > { %2807 = vmatpush1.bf16.msra.mxu0 %v10756_v53  ;;  %2246 = vmatprep.subr.bf16.mxu1 %v10761_v54  ;;  %v10833_v53 = vld [vmem:[%s13654_s3 + $0x6a4] ss:$8 sps:$4 sm:$0xff]   ;;  %v10831_v54 = vld [vmem:[%s13654_s3 + $0x6a0] ss:$8 sps:$4 sm:$0xff]  }
 0x1ab   : > { %2808 = vmatprep.subr.bf16.mxu0 %v10764_v57  ;;  %v10834_v57 = vld [vmem:[%s13654_s3 + $0x8e0] ss:$8 sps:$4 sm:$0xff]  }
 0x1ad   : > { %2247 = vmatpush1.bf16.msra.mxu1 %v10759_v58  ;;  %v10839_v58 = vld [vmem:[%s13654_s3 + $0x6b4] ss:$8 sps:$4 sm:$0xff]  }
 0x1ae   : > { %2809 = vmatpush1.bf16.msra.mxu0 %v10762_v59  ;;  %2248 = vmatprep.subr.bf16.mxu1 %v10767_v60  ;;  %v10842_v59 = vld [vmem:[%s13654_s3 + $0x8f4] ss:$8 sps:$4 sm:$0xff]   ;;  %v10837_v60 = vld [vmem:[%s13654_s3 + $0x6b0] ss:$8 sps:$4 sm:$0xff]  }
 0x1af   : > { %2810 = vmatprep.subr.bf16.mxu0 %v10770_v61  ;;  %v10840_v61 = vld [vmem:[%s13654_s3 + $0x8f0] ss:$8 sps:$4 sm:$0xff]  }
 0x1b1   : > { %2249 = vmatpush1.bf16.msra.mxu1 %v10765_v63  ;;  %v11005_v63 = vld [vmem:[%s13655_s4 + $0xd0] ss:$52 sps:$4 sm:$0xff]  }
 0x1b2   : > { %2811 = vmatpush1.bf16.msra.mxu0 %v10768_v3  ;;  %2250 = vmatprep.subr.bf16.mxu1 %v10773_v4 }
 0x1b3   : > { %2812 = vmatprep.subr.bf16.mxu0 %v10776_v5 }
 0x1b5   : > { %2251 = vmatpush1.bf16.msra.mxu1 %v10771_v6 }
 0x1b6   : > { %2813 = vmatpush1.bf16.msra.mxu0 %v10774_v10  ;;  %2252 = vmatprep.subr.bf16.mxu1 %v10779_v11 }
 0x1b7   : > { %2814 = vmatprep.subr.bf16.mxu0 %v10782_v13 }
 0x1b9   : > { %2253 = vmatpush1.bf16.msra.mxu1 %v10777_v15 }
 0x1ba   : > { %2815 = vmatpush1.bf16.msra.mxu0 %v10780_v18  ;;  %2254 = vmatprep.subr.bf16.mxu1 %v10785_v20 }
 0x1bb   : > { %2816 = vmatprep.subr.bf16.mxu0 %v10788_v21 }
 0x1bd   : > { %2255 = vmatpush1.bf16.msra.mxu1 %v10783_v22 }
 0x1be   : > { %2817 = vmatpush1.bf16.msra.mxu0 %v10786_v24  ;;  %2256 = vmatprep.subr.bf16.mxu1 %v10791_v25 }
 0x1bf   : > { %2818 = vmatprep.subr.bf16.mxu0 %v10794_v26 }
 0x1c1   : > { %2257 = vmatpush1.bf16.msra.mxu1 %v10789_v27 }
 0x1c2   : > { %2819 = vmatpush1.bf16.msra.mxu0 %v10792_v28  ;;  %2258 = vmatprep.subr.bf16.mxu1 %v10797_v38 }
 0x1c3   : > { %2820 = vmatprep.subr.bf16.mxu0 %v10800_v29 }
 0x1c5   : > { %2259 = vmatpush1.bf16.msra.mxu1 %v10795_v30 }
 0x1c6   : > { %2821 = vmatpush1.bf16.msra.mxu0 %v10798_v31  ;;  %2260 = vmatprep.subr.bf16.mxu1 %v10803_v32 }
 0x1c7   : > { %2822 = vmatprep.subr.bf16.mxu0 %v10806_v34 }
 0x1c9   : > { %2261 = vmatpush1.bf16.msra.mxu1 %v10801_v35 }
 0x1ca   : > { %2823 = vmatpush1.bf16.msra.mxu0 %v10804_v36  ;;  %2262 = vmatprep.subr.bf16.mxu1 %v10809_v39 }
 0x1cb   : > { %2824 = vmatprep.subr.bf16.mxu0 %v10812_v40 }
 0x1cd   : > { %2263 = vmatpush1.bf16.msra.mxu1 %v10807_v37 }
 0x1ce   : > { %2825 = vmatpush1.bf16.msra.mxu0 %v10810_v41  ;;  %2264 = vmatprep.subr.bf16.mxu1 %v10815_v42 }
 0x1cf   : > { %2826 = vmatprep.subr.bf16.mxu0 %v10818_v56 }
 0x1d1   : > { %2265 = vmatpush1.bf16.msra.mxu1 %v10813_v43 }
 0x1d2   : > { %2827 = vmatpush1.bf16.msra.mxu0 %v10816_v44  ;;  %2277 = vmatprep.subr.bf16.mxu1 %v10821_v45  ;;  %v10848_v44 = vld [vmem:[%s13656_s5 + $0xc] sm:$0xff]   ;;  %v10849_v45 = vld [vmem:[%s13656_s5] sm:$0xff]  }
 0x1d3   : > { %2839 = vmatprep.subr.bf16.mxu0 %v10824_v46  ;;  %v10852_v46 = vld [vmem:[%s13655_s4 + $0x4] ss:$52 sps:$4 sm:$0xff]  }
 0x1d4   : > { %2267 = vmatmul.mubr.bf16.vlgmr.msra.gmra.mrb[12].mxu1 %v11747_v55  ;;  %3401 = vrot.lane.b32.xlu1 %v10852_v46, %s13674_s1 }
 0x1d5   : > { %2829 = vmatmul.mubr.bf16.vlgmr.msra.gmra.mrb[8].mxu0 %v11747_v55  ;;  %2278 = vmatpush1.bf16.msra.mxu1 %v10819_v47  ;;  %v10836_v55 = vld [vmem:[%s13654_s3 + $0x8e4] ss:$8 sps:$4 sm:$0xff]   ;;  %v10853_v47 = vld [vmem:[%s13655_s4 + $0xd4] ss:$52 sps:$4 sm:$0xff]  }
 0x1d6   : > { %2840 = vmatpush1.bf16.msra.mxu0 %v10822_v48  ;;  %2279 = vmatprep.subr.bf16.mxu1 %v10827_v49  ;;  %v10854_v48 = vld [vmem:[%s13655_s4 + $0x1a4] ss:$52 sps:$4 sm:$0xff]   ;;  %v10855_v49 = vld [vmem:[%s13655_s4 + $0x274] ss:$52 sps:$4 sm:$0xff]  }
 0x1d7   : > { %2841 = vmatprep.subr.bf16.mxu0 %v10830_v50  ;;  %2309 = vmatprep.mubr.bf16.mxu1 %v11122_v1  ;;  %v10856_v50 = vld [vmem:[%s13655_s4 + $0x344] ss:$52 sps:$4 sm:$0xff]  }
 0x1d8   : > { %2871 = vmatprep.mubr.bf16.mxu0 %v11122_v1  ;;  %3405 = vrot.lane.b32.xlu1 %v10853_v47, %s13674_s1 }
 0x1d9   : > { %2280 = vmatpush1.bf16.msra.mxu1 %v10825_v51 }
 0x1da   : > { %2842 = vmatpush1.bf16.msra.mxu0 %v10828_v52  ;;  %2281 = vmatprep.subr.bf16.mxu1 %v10833_v53 }
 0x1db   : > { %2843 = vmatprep.subr.bf16.mxu0 %v10836_v55 }
 0x1dc   : > { %3409 = vrot.lane.b32.xlu1 %v10854_v48, %s13674_s1 }
 0x1dd   : > { %2282 = vmatpush1.bf16.msra.mxu1 %v10831_v54 }
 0x1de   : > { %2844 = vmatpush1.bf16.msra.mxu0 %v10834_v57  ;;  %2283 = vmatprep.subr.bf16.mxu1 %v10839_v58 }
 0x1df   : > { %2845 = vmatprep.subr.bf16.mxu0 %v10842_v59 }
 0x1e0   : > { %3413 = vrot.lane.b32.xlu1 %v10855_v49, %s13674_s1 }
 0x1e1   : > { %2284 = vmatpush1.bf16.msra.mxu1 %v10837_v60 }
 0x1e2   : > { %2846 = vmatpush1.bf16.msra.mxu0 %v10840_v61  ;;  %2976 = vmatprep.subr.bf16.mxu1 %v11122_v1 }
 0x1e3   : > { %3048 = vmatprep.subr.bf16.mxu0 %v11122_v1 }
 0x1e4   : > { %9138 = vmatmul.mubr.msk.bf16.vlgmr.msra.gmra.mrb[12].mxu1 %vm1063_vm2, %v11702_v33  ;;  %3417 = vrot.lane.b32.xlu1 %v10856_v50, %s13674_s1 }
 0x1e5   : > { %9283 = vmatmul.mubr.msk.bf16.vlgmr.msra.gmra.mrb[8].mxu0 %vm1063_vm2, %v11702_v33  ;;  %2977 = vmatpush1.bf16.msra.mxu1 %v12256_v62  ;;  %v11006_v33 = vld [vmem:[%s13655_s4 + $0x1a0] ss:$52 sps:$4 sm:$0xff]   ;;  %v11007_v62 = vld [vmem:[%s13655_s4 + $0x270] ss:$52 sps:$4 sm:$0xff]  }
 0x1e6   : > { %2978 = vmatprep.subr.bf16.mxu1 %v11122_v1 }
 0x1e9   : > { %2979 = vmatpush1.bf16.msra.mxu1 %v12266_v0  ;;  %v11008_v0 = vld [vmem:[%s13655_s4 + $0x340] ss:$52 sps:$4 sm:$0xff]  }
 0x1ea   : > { %2980 = vmatprep.subr.bf16.mxu1 %v11122_v1 }
 0x1ed   : > { %2981 = vmatpush1.bf16.msra.mxu1 %v11005_v63  ;;  %v10850_v63 = vld [vmem:[%s13656_s5 + $0x14] ss:$0 sps:$4 sm:$0xff]  }
 0x1ee   : > { %2982 = vmatprep.subr.bf16.mxu1 %v11122_v1  ;;  %v3022_v3 = vpop.permute.xlu1 %3021 }
 0x1ef   : > { %3049 = vmatpush1.bf16.msra.mxu0 %v3022_v3  ;;  %v11011_v3 = vld [vmem:[%s13655_s4 + $0x20c] ss:$52 sps:$4 sm:$0xff]  }
 0x1f0   : > { %3050 = vmatprep.subr.bf16.mxu0 %v11122_v1 }
 0x1f1   : > { %2983 = vmatpush1.bf16.msra.mxu1 %v12285_v8 }
 0x1f2   : > { %2984 = vmatprep.subr.bf16.mxu1 %v11122_v1  ;;  %v3024_v4 = vpop.permute.xlu1 %3023 }
 0x1f3   : > { %3051 = vmatpush1.bf16.msra.mxu0 %v3024_v4  ;;  %v11012_v4 = vld [vmem:[%s13655_s4 + $0x2dc] ss:$52 sps:$4 sm:$0xff]  }
 0x1f4   : > { %3052 = vmatprep.subr.bf16.mxu0 %v11122_v1 }
 0x1f5   : > { %2985 = vmatpush1.bf16.msra.mxu1 %v11006_v33  ;;  %v10851_v33 = vld [vmem:[%s13656_s5 + $0x8] ss:$0 sps:$4 sm:$0xff]  }
 0x1f6   : > { %2986 = vmatprep.subr.bf16.mxu1 %v11122_v1 }
 0x1f7   : > { %3053 = vmatpush1.bf16.msra.mxu0 %v11658_v7 }
 0x1f8   : > { %3054 = vmatprep.subr.bf16.mxu0 %v11122_v1 }
 0x1f9   : > { %2987 = vmatpush1.bf16.msra.mxu1 %v12304_v16 }
 0x1fa   : > { %2988 = vmatprep.subr.bf16.mxu1 %v11122_v1 }
 0x1fd   : > { %2989 = vmatpush1.bf16.msra.mxu1 %v11007_v62  ;;  %v11009_v62 = vld [vmem:[%s13655_s4 + $0x6c] ss:$52 sps:$4 sm:$0xff]  }
 0x1fe   : > { %2990 = vmatprep.subr.bf16.mxu1 %v11122_v1 }
 0x201   : > { %2991 = vmatpush1.bf16.msra.mxu1 %v12323_v23  ;;  %v3028_v23 = vpop.permute.xlu1 %3027 }
 0x202   : > { %2992 = vmatprep.subr.bf16.mxu1 %v11122_v1  ;;  %3055 = vmatpush1.bf16.msra.mxu0 %v3028_v23 }
 0x203   : > { %3056 = vmatprep.subr.bf16.mxu0 %v11122_v1 }
 0x205   : > { %2993 = vmatpush1.bf16.msra.mxu1 %v11008_v0  ;;  %v3032_v24 = vpop.permute.xlu1 %3031  ;;  %v11010_v0 = vld [vmem:[%s13655_s4 + $0x13c] ss:$52 sps:$4 sm:$0xff]  }
 0x206   : > { %3057 = vmatpush1.bf16.msra.mxu0 %v11664_v9 }
 0x207   : > { %3058 = vmatprep.subr.bf16.mxu0 %v11122_v1 }
 0x209   : > { %v3036_v7 = vpop.permute.xlu1 %3035 }
 0x20a   : > { %3059 = vmatpush1.bf16.msra.mxu0 %v3032_v24 }
 0x20b   : > { %3060 = vmatprep.subr.bf16.mxu0 %v11122_v1 }
 0x20e   : > { %3061 = vmatpush1.bf16.msra.mxu0 %v11674_v12 }
 0x20f   : > { %3062 = vmatprep.subr.bf16.mxu0 %v11122_v1 }
 0x212   : > { %3063 = vmatpush1.bf16.msra.mxu0 %v3036_v7 }
 0x213   : > { %3064 = vmatprep.subr.bf16.mxu0 %v11122_v1 }
 0x216   : > { %3065 = vmatpush1.bf16.msra.mxu0 %v11680_v14 }
 0x227   : > { %v1187_v5 = vpop.f32.mrb[8].mxu1  ;;  %v1749_v6 = vpop.f32.mrb[4].mxu0 }
 0x228   : > { %v2882_v8 = vmax.f32 %v1187_v5, %v1749_v6  ;;  %v1189_v10 = vpop.f32.mrb[9].mxu1  ;;  %v1751_v11 = vpop.f32.mrb[5].mxu0  ;;  %v10857_v5 = vld [vmem:[%s13656_s5 + $0x18] sm:$0xff]  }
 0x229   : > { %v2883_v13 = vmax.f32 %v1189_v10, %v1751_v11  ;;  %v1191_v15 = vpop.f32.mrb[10].mxu1  ;;  %v1753_v16 = vpop.f32.mrb[6].mxu0 }
 0x22a   : > { %v2884_v18 = vmax.f32 %v1191_v15, %v1753_v16  ;;  %v1193_v20 = vpop.f32.mrb[11].mxu1  ;;  %v1755_v21 = vpop.f32.mrb[7].mxu0 }
 0x22b   : > { %v2885_v22 = vmax.f32 %v1193_v20, %v1755_v21 }
 0x2b7   : > { %v2311_v25 = vpop.f32.mrb[12].mxu1 }
 0x2b8   : > { %v2873_v26 = vpop.f32.mrb[8].mxu0  ;;  %v2313_v27 = vpop.f32.mrb[13].mxu1 }
 0x2b9   : > { %v2886_v9 = vmax.f32 %v2311_v25, %v2873_v26  ;;  %v2875_v28 = vpop.f32.mrb[9].mxu0  ;;  %v2315_v38 = vpop.f32.mrb[14].mxu1 }
 0x2ba   : > { %v2887_v29 = vmax.f32 %v2313_v27, %v2875_v28  ;;  %v2877_v30 = vpop.f32.mrb[10].mxu0  ;;  %v2317_v31 = vpop.f32.mrb[15].mxu1  ;;  %v10858_v27 = vld [vmem:[%s13656_s5 + $0x20] ss:$0 sps:$4 sm:$0xff]  }
 0x2bb   : > { %v2890_v32 = vmax.f32 %v2882_v8, %v2886_v9  ;;  %v2888_v34 = vmax.f32 %v2315_v38, %v2877_v30  ;;  %v2879_v12 = vpop.f32.mrb[11].mxu0  ;;  %v3402_v9 = vpop.permute.xlu1 %3401 }
 0x2bc   : > { %v2891_v35 = vmax.f32 %v2883_v13, %v2887_v29  ;;  %v2889_v36 = vmax.f32 %v2317_v31, %v2879_v12  ;;  %v3412_v29 = vpop.permute.xlu0 %3411  ;;  %v10863_v12 = vld [vmem:[%s13655_s4 + $0x210] ss:$52 sps:$4 sm:$0xff]  }
 0x2bd   : > { %v2892_v39 = vmax.f32 %v2884_v18, %v2888_v34  ;;  %v2894_v37 = vmax.f32 %v2890_v32, 0.0  ;;  %v10861_v32 = vld [vmem:[%s13655_s4 + $0x70] ss:$52 sps:$4 sm:$0xff]   ;;  %v10862_v34 = vld [vmem:[%s13655_s4 + $0x140] ss:$52 sps:$4 sm:$0xff]  }
 0x2be   : > { %v2893_v40 = vmax.f32 %v2885_v22, %v2889_v36  ;;  %v2895_v42 = vmax.f32 %v2891_v35, 0.0  ;;  %3724 = vrot.lane.b32.xlu1 %v10861_v32, %s13674_s1  ;;  %v10864_v35 = vld [vmem:[%s13655_s4 + $0x2e0] ss:$52 sps:$4 sm:$0xff]  }
 0x2bf   : > { %v2896_v41 = vmax.f32 %v2892_v39, 0.0  ;;  %v3406_v28 = vpop.permute.xlu1 %3405 }
 0x2c0   : > { %v2897_v14 = vmax.f32 %v2893_v40, 0.0 }
 0x2c1   : > { %v12485_v56 = vpack.c.bf16 %v2896_v41, %v2894_v37 }
 0x2c2   : > { %v12487_v43 = vpack.c.bf16 %v2897_v14, %v2895_v42  ;;  %3728 = vrot.lane.b32.xlu1 %v10862_v34, %s13674_s1 }
 0x2c3   : > { %v3410_v38 = vpop.permute.xlu1 %3409 }
 0x2c4   : > { %9293 = vmatprep.mubr.msk.bf16.mxu1 %vm2972_vm3, %v12487_v43  ;;  %9294 = vmatprep.mubr.msk.bf16.mxu0 %vm2972_vm3, %v12487_v43 }
 0x2c5   : > { %3009 = vmatmul.mubr.bf16.vlgmr.msra.gmra.mrb[16].mxu1 %v12485_v56  ;;  %3081 = vmatmul.mubr.bf16.vlgmr.msra.gmra.mrb[12].mxu0 %v12485_v56 }
 0x2c6   : > { %9913 = vmatprep.mubr.msk.bf16.mxu1 %vm2972_vm3, %v10848_v44  ;;  %9919 = vmatprep.mubr.msk.bf16.mxu0 %vm2972_vm3, %v10849_v45 }
 0x2c7   : > { %v3414_v30 = vpop.permute.xlu1 %3413  ;;  %3732 = vrot.lane.b32.xlu1 %v10863_v12, %s13674_s1 }
 0x2cb   : > { %v3418_v31 = vpop.permute.xlu1 %3417  ;;  %3736 = vrot.lane.b32.xlu1 %v10864_v35, %s13674_s1 }
 0x398   : > { %v3010_v51 = vpop.f32.mrb[16].mxu1  ;;  %v3082_v52 = vpop.f32.mrb[12].mxu0 }
 0x399   : > { %v3012_v53 = vpop.f32.mrb[17].mxu1  ;;  %v3084_v55 = vpop.f32.mrb[13].mxu0 }
 0x39a   : > { %v3013_v54 = vpop.f32.mrb[18].mxu1  ;;  %v3085_v57 = vpop.f32.mrb[14].mxu0  ;;  %v11016_v53 = vld [vmem:[%s13655_s4 + $0x278] ss:$52 sps:$4 sm:$0xff]   ;;  %v11017_v55 = vld [vmem:[%s13655_s4 + $0x348] ss:$52 sps:$4 sm:$0xff]  }
 0x39b   : > { %v3020_v58 = vpack.c.bf16 %v3013_v54, %v3010_v51  ;;  %v3093_v59 = vpack.c.bf16 %v3085_v57, %v3082_v52  ;;  %v3015_v60 = vpop.f32.mrb[19].mxu1  ;;  %v3087_v61 = vpop.f32.mrb[15].mxu0  ;;  %v11014_v51 = vld [vmem:[%s13655_s4 + $0xd8] ss:$52 sps:$4 sm:$0xff]   ;;  %v11015_v52 = vld [vmem:[%s13655_s4 + $0x1a8] ss:$52 sps:$4 sm:$0xff]  }
 0x39c   : > { %v10865_v54 = vld [vmem:[%s13656_s5 + $0x30] sm:$0xff]  }
 0x39d   : > { %9911 = vmatprep.subr.bf16.mxu1 %v3093_v59  ;;  %9917 = vmatprep.subr.bf16.mxu0 %v3020_v58 }
 0x39e   : > { %9912 = vmatpush3.bf16.msra.mxu1 %v3093_v59  ;;  %9918 = vmatpush3.bf16.msra.mxu0 %v3020_v58 }
 0x39f   : > { %3290 = vmatprep.subr.bf16.mxu1 %v11122_v1 }
 0x3a1   : > { %9914 = vmatmul.mubr.msk.bf16.vlgmr.msra.gmra.mrb[20].mxu1 %vm2972_vm3, %v10850_v63  ;;  %9920 = vmatmul.mubr.msk.bf16.vlgmr.msra.gmra.mrb[16].mxu0 %vm2972_vm3, %v10851_v33 }
 0x3a2   : > { %3291 = vmatpush1.bf16.msra.mxu1 %v10852_v46  ;;  %9315 = vmatprep.mubr.msk.bf16.mxu1 %vm2972_vm3, %v12487_v43 }
 0x3a3   : > { %3292 = vmatprep.subr.bf16.mxu1 %v11122_v1  ;;  %9925 = vmatprep.mubr.msk.bf16.mxu0 %vm2972_vm3, %v10857_v5 }
 0x3a6   : > { %3293 = vmatpush1.bf16.msra.mxu1 %v11009_v62 }
 0x3a7   : > { %3294 = vmatprep.subr.bf16.mxu1 %v11122_v1 }
 0x3aa   : > { %3295 = vmatpush1.bf16.msra.mxu1 %v10853_v47 }
 0x3ab   : > { %3296 = vmatprep.subr.bf16.mxu1 %v11122_v1 }
 0x3ae   : > { %3297 = vmatpush1.bf16.msra.mxu1 %v11010_v0 }
 0x3af   : > { %3298 = vmatprep.subr.bf16.mxu1 %v11122_v1 }
 0x3b2   : > { %3299 = vmatpush1.bf16.msra.mxu1 %v10854_v48 }
 0x3b3   : > { %3300 = vmatprep.subr.bf16.mxu1 %v11122_v1 }
 0x3b6   : > { %3301 = vmatpush1.bf16.msra.mxu1 %v11011_v3 }
 0x3b7   : > { %3302 = vmatprep.subr.bf16.mxu1 %v11122_v1 }
 0x3ba   : > { %3303 = vmatpush1.bf16.msra.mxu1 %v10855_v49  ;;  %v10860_v49 = vld [vmem:[%s13656_s5 + $0x2c] ss:$0 sps:$4 sm:$0xff]  }
 0x3bb   : > { %3304 = vmatprep.subr.bf16.mxu1 %v11122_v1 }
 0x3be   : > { %3305 = vmatpush1.bf16.msra.mxu1 %v11012_v4 }
 0x3bf   : > { %3306 = vmatprep.subr.bf16.mxu1 %v11122_v1 }
 0x3c2   : > { %3307 = vmatpush1.bf16.msra.mxu1 %v10856_v50  ;;  %v11013_v50 = vld [vmem:[%s13655_s4 + $0x8] ss:$52 sps:$4 sm:$0xff]  }
 0x3c5   : > { %3323 = vmatmul.mubr.bf16.vlgmr.msra.gmra.mrb[24].mxu1 %v12485_v56 }
 0x474   : > { %v9915_v6 = vpop.f32.mrb[20].mxu1  ;;  %v9921_v8 = vpop.f32.mrb[16].mxu0 }
 0x475   : > { %v3213_v10 = vadd.f32 %v9921_v8, %v9915_v6  ;;  %v3142_v11 = vpop.f32.mrb[21].mxu1  ;;  %v3204_v13 = vpop.f32.mrb[17].mxu0  ;;  %v10866_v6 = vld [vmem:[%s13656_s5 + $0x38] ss:$0 sps:$4 sm:$0xff]  }
 0x476   : > { %v3205_v15 = vadd.f32 %v3204_v13, %v3142_v11  ;;  %v9916_v16 = vpop.f32.mrb[22].mxu1  ;;  %v9922_v18 = vpop.f32.mrb[18].mxu0 }
 0x477   : > { %v3145_v20 = vpop.f32.mrb[23].mxu1  ;;  %v3207_v21 = vpop.f32.mrb[19].mxu0 }
 0x478   : > { %v3208_v22 = vadd.f32 %v3207_v21, %v3145_v20 }
 0x498   : > { %v3324_v23 = vpop.f32.mrb[24].mxu1 }
 0x499   : > { %v3326_v24 = vpop.f32.mrb[25].mxu1 }
 0x49a   : > { %v3327_v7 = vpop.f32.mrb[26].mxu1  ;;  %v10870_v24 = vld [vmem:[%s13655_s4 + $0xdc] ss:$52 sps:$4 sm:$0xff]  }
 0x49b   : > { %v3335_v25 = vpack.c.bf16 %v3327_v7, %v3324_v23  ;;  %v3329_v26 = vpop.f32.mrb[27].mxu1  ;;  %v10869_v23 = vld [vmem:[%s13655_s4 + $0xc] ss:$52 sps:$4 sm:$0xff]  }
 0x49c   : > { %4043 = vrot.lane.b32.xlu1 %v10869_v23, %s13674_s1  ;;  %v10871_v7 = vld [vmem:[%s13655_s4 + $0x1ac] ss:$52 sps:$4 sm:$0xff]  }
 0x49d   : > { %9923 = vmatprep.subr.bf16.mxu0 %v3335_v25  ;;  %v10873_v26 = vld [vmem:[%s13655_s4 + $0x34c] ss:$52 sps:$4 sm:$0xff]  }
 0x49e   : > { %9924 = vmatpush3.bf16.msra.mxu0 %v3335_v25  ;;  %v10872_v25 = vld [vmem:[%s13655_s4 + $0x27c] ss:$52 sps:$4 sm:$0xff]  }
 0x49f   : > { %3428 = vmatprep.subr.bf16.mxu0 %v11122_v1 }
 0x4a0   : > { %4047 = vrot.lane.b32.xlu1 %v10870_v24, %s13674_s1 }
 0x4a1   : > { %9926 = vmatmul.mubr.msk.bf16.vlgmr.msra.gmra.mrb[20].mxu0 %vm2972_vm3, %v10858_v27 }
 0x4a2   : > { %3429 = vmatpush1.bf16.msra.mxu0 %v3402_v9  ;;  %9323 = vmatprep.mubr.msk.bf16.mxu0 %vm2972_vm3, %v12487_v43 }
 0x4a3   : > { %3430 = vmatprep.subr.bf16.mxu0 %v11122_v1 }
 0x4a4   : > { %4051 = vrot.lane.b32.xlu1 %v10871_v7, %s13674_s1 }
 0x4a6   : > { %3431 = vmatpush1.bf16.msra.mxu0 %v11690_v17  ;;  %v3416_v17 = vpop.permute.xlu0 %3415 }
 0x4a7   : > { %3432 = vmatprep.subr.bf16.mxu0 %v11122_v1 }
 0x4a8   : > { %4055 = vrot.lane.b32.xlu1 %v10872_v25, %s13674_s1 }
 0x4aa   : > { %3433 = vmatpush1.bf16.msra.mxu0 %v3406_v28  ;;  %v3723_v8 = vpop.permute.xlu0 %3722 }
 0x4ab   : > { %3434 = vmatprep.subr.bf16.mxu0 %v11122_v1 }
 0x4ac   : > { %4059 = vrot.lane.b32.xlu1 %v10873_v26, %s13674_s1 }
 0x4ae   : > { %3435 = vmatpush1.bf16.msra.mxu0 %v11695_v19  ;;  %v10859_v19 = vld [vmem:[%s13656_s5 + $0x24] sm:$0xff]   ;;  %v3727_v11 = vpop.permute.xlu0 %3726 }
 0x4af   : > { %3436 = vmatprep.subr.bf16.mxu0 %v11122_v1  ;;  %9931 = vmatprep.mubr.msk.bf16.mxu1 %vm2972_vm3, %v10859_v19 }
 0x4b2   : > { %3437 = vmatpush1.bf16.msra.mxu0 %v3410_v38 }
 0x4b3   : > { %3438 = vmatprep.subr.bf16.mxu0 %v11122_v1 }
 0x4b6   : > { %3439 = vmatpush1.bf16.msra.mxu0 %v3412_v29 }
 0x4b7   : > { %3440 = vmatprep.subr.bf16.mxu0 %v11122_v1 }
 0x4ba   : > { %3441 = vmatpush1.bf16.msra.mxu0 %v3414_v30 }
 0x4bb   : > { %3442 = vmatprep.subr.bf16.mxu0 %v11122_v1 }
 0x4be   : > { %3443 = vmatpush1.bf16.msra.mxu0 %v3416_v17 }
 0x4bf   : > { %3444 = vmatprep.subr.bf16.mxu0 %v11122_v1 }
 0x4c2   : > { %3445 = vmatpush1.bf16.msra.mxu0 %v3418_v31 }
 0x4c5   : > { %3461 = vmatmul.mubr.bf16.vlgmr.msra.gmra.mrb[24].mxu0 %v12485_v56 }
 0x4c6   : > { %9937 = vmatprep.mubr.msk.bf16.mxu0 %vm2972_vm3, %v10865_v54 }
 0x574   : > { %v9927_v36 = vpop.f32.mrb[20].mxu0 }
 0x575   : > { %v3400_v39 = vadd.f32 %v9927_v36, %v3213_v10  ;;  %v3384_v40 = vpop.f32.mrb[21].mxu0  ;;  %v3725_v10 = vpop.permute.xlu1 %3724  ;;  %v11018_v36 = vld [vmem:[%s13655_s4 + $0x74] ss:$52 sps:$4 sm:$0xff]  }
 0x576   : > { %v3398_v37 = vadd.f32 %v3384_v40, %v3205_v15  ;;  %v9928_v41 = vpop.f32.mrb[22].mxu0  ;;  %v3731_v15 = vpop.permute.xlu0 %3730  ;;  %v11020_v40 = vld [vmem:[%s13655_s4 + $0x214] ss:$52 sps:$4 sm:$0xff]  }
 0x577   : > { %v3387_v42 = vpop.f32.mrb[23].mxu0  ;;  %v10874_v41 = vld [vmem:[%s13656_s5 + $0x48] sm:$0xff]  }
 0x578   : > { %v3399_v14 = vadd.f32 %v3387_v42, %v3208_v22  ;;  %v10867_v22 = vld [vmem:[%s13656_s5 + $0x3c] sm:$0xff]  }
 0x579   : > { %v3729_v13 = vpop.permute.xlu1 %3728 }
 0x57a   : > { %v3735_v18 = vpop.permute.xlu0 %3734 }
 0x57d   : > { %v3733_v16 = vpop.permute.xlu1 %3732 }
 0x57e   : > { %v3739_v21 = vpop.permute.xlu0 %3738 }
 0x581   : > { %v3737_v20 = vpop.permute.xlu1 %3736 }
 0x585   : > { %v4044_v54 = vpop.permute.xlu1 %4043 }
 0x598   : > { %v3462_v44 = vpop.f32.mrb[24].mxu0 }
 0x599   : > { %v3464_v45 = vpop.f32.mrb[25].mxu0 }
 0x59a   : > { %v3465_v46 = vpop.f32.mrb[26].mxu0 }
 0x59b   : > { %v3473_v47 = vpack.c.bf16 %v3465_v46, %v3462_v44  ;;  %v3467_v48 = vpop.f32.mrb[27].mxu0 }
 0x59d   : > { %9929 = vmatprep.subr.bf16.mxu1 %v3473_v47 }
 0x59e   : > { %9930 = vmatpush3.bf16.msra.mxu1 %v3473_v47 }
 0x59f   : > { %3611 = vmatprep.subr.bf16.mxu1 %v11122_v1 }
 0x5a1   : > { %9932 = vmatmul.mubr.msk.bf16.vlgmr.msra.gmra.mrb[28].mxu1 %vm2972_vm3, %v10860_v49 }
 0x5a2   : > { %3612 = vmatpush1.bf16.msra.mxu1 %v11013_v50  ;;  %9340 = vmatprep.mubr.msk.bf16.mxu1 %vm2972_vm3, %v12487_v43 }
 0x5a3   : > { %3613 = vmatprep.subr.bf16.mxu1 %v11122_v1 }
 0x5a6   : > { %3614 = vmatpush1.bf16.msra.mxu1 %v10861_v32 }
 0x5a7   : > { %3615 = vmatprep.subr.bf16.mxu1 %v11122_v1 }
 0x5aa   : > { %3616 = vmatpush1.bf16.msra.mxu1 %v11014_v51 }
 0x5ab   : > { %3617 = vmatprep.subr.bf16.mxu1 %v11122_v1 }
 0x5ae   : > { %3618 = vmatpush1.bf16.msra.mxu1 %v10862_v34 }
 0x5af   : > { %3619 = vmatprep.subr.bf16.mxu1 %v11122_v1 }
 0x5b2   : > { %3620 = vmatpush1.bf16.msra.mxu1 %v11015_v52 }
 0x5b3   : > { %3621 = vmatprep.subr.bf16.mxu1 %v11122_v1 }
 0x5b6   : > { %3622 = vmatpush1.bf16.msra.mxu1 %v10863_v12 }
 0x5b7   : > { %3623 = vmatprep.subr.bf16.mxu1 %v11122_v1 }
 0x5ba   : > { %3624 = vmatpush1.bf16.msra.mxu1 %v11016_v53 }
 0x5bb   : > { %3625 = vmatprep.subr.bf16.mxu1 %v11122_v1 }
 0x5be   : > { %3626 = vmatpush1.bf16.msra.mxu1 %v10864_v35  ;;  %v10868_v35 = vld [vmem:[%s13656_s5 + $0x44] ss:$0 sps:$4 sm:$0xff]  }
 0x5bf   : > { %3627 = vmatprep.subr.bf16.mxu1 %v11122_v1 }
 0x5c2   : > { %3628 = vmatpush1.bf16.msra.mxu1 %v11017_v55  ;;  %v10875_v55 = vld [vmem:[%s13656_s5 + $0x50] ss:$0 sps:$4 sm:$0xff]  }
 0x5c5   : > { %3644 = vmatmul.mubr.bf16.vlgmr.msra.gmra.mrb[32].mxu1 %v12485_v56 }
 0x5c6   : > { %9943 = vmatprep.mubr.msk.bf16.mxu1 %vm2972_vm3, %v10867_v22 }
 0x674   : > { %v9933_v57 = vpop.f32.mrb[28].mxu1 }
 0x675   : > { %v3538_v58 = vadd.f32 %v9933_v57, %v3400_v39  ;;  %v3522_v59 = vpop.f32.mrb[29].mxu1  ;;  %v11019_v39 = vld [vmem:[%s13655_s4 + $0x144] ss:$52 sps:$4 sm:$0xff]   ;;  %v4046_v57 = vpop.permute.xlu0 %4045 }
 0x676   : > { %v3536_v60 = vadd.f32 %v3522_v59, %v3398_v37  ;;  %v9934_v61 = vpop.f32.mrb[30].mxu1  ;;  %v11021_v37 = vld [vmem:[%s13655_s4 + $0x2e4] ss:$52 sps:$4 sm:$0xff]  }
 0x677   : > { %v3525_v63 = vpop.f32.mrb[31].mxu1 }
 0x678   : > { %v3537_v33 = vadd.f32 %v3525_v63, %v3399_v14 }
 0x679   : > { %v4050_v59 = vpop.permute.xlu0 %4049 }
 0x67d   : > { %v4054_v61 = vpop.permute.xlu0 %4053 }
 0x698   : > { %v3645_v62 = vpop.f32.mrb[32].mxu1 }
 0x699   : > { %v3647_v0 = vpop.f32.mrb[33].mxu1 }
 0x69a   : > { %v3648_v3 = vpop.f32.mrb[34].mxu1  ;;  %v10876_v0 = vld [vmem:[%s13656_s5 + $0x54] sm:$0xff]  }
 0x69b   : > { %v3656_v4 = vpack.c.bf16 %v3648_v3, %v3645_v62  ;;  %v3650_v5 = vpop.f32.mrb[35].mxu1  ;;  %v10878_v3 = vld [vmem:[%s13655_s4 + $0x78] ss:$52 sps:$4 sm:$0xff]  }
 0x69c   : > { %4366 = vrot.lane.b32.xlu1 %v10878_v3, %s13674_s1  ;;  %v10880_v5 = vld [vmem:[%s13655_s4 + $0x218] ss:$52 sps:$4 sm:$0xff]  }
 0x69d   : > { %9935 = vmatprep.subr.bf16.mxu0 %v3656_v4 }
 0x69e   : > { %9936 = vmatpush3.bf16.msra.mxu0 %v3656_v4  ;;  %v10879_v4 = vld [vmem:[%s13655_s4 + $0x148] ss:$52 sps:$4 sm:$0xff]  }
 0x69f   : > { %3749 = vmatprep.subr.bf16.mxu0 %v11122_v1 }
 0x6a0   : > { %4370 = vrot.lane.b32.xlu1 %v10879_v4, %s13674_s1 }
 0x6a1   : > { %9938 = vmatmul.mubr.msk.bf16.vlgmr.msra.gmra.mrb[28].mxu0 %vm2972_vm3, %v10866_v6  ;;  %v10881_v6 = vld [vmem:[%s13655_s4 + $0x2e8] ss:$52 sps:$4 sm:$0xff]  }
 0x6a2   : > { %3750 = vmatpush1.bf16.msra.mxu0 %v3723_v8  ;;  %9348 = vmatprep.mubr.msk.bf16.mxu0 %vm2972_vm3, %v12487_v43 }
 0x6a3   : > { %3751 = vmatprep.subr.bf16.mxu0 %v11122_v1 }
 0x6a4   : > { %4374 = vrot.lane.b32.xlu1 %v10880_v5, %s13674_s1 }
 0x6a6   : > { %3752 = vmatpush1.bf16.msra.mxu0 %v3725_v10 }
 0x6a7   : > { %3753 = vmatprep.subr.bf16.mxu0 %v11122_v1 }
 0x6a8   : > { %4378 = vrot.lane.b32.xlu1 %v10881_v6, %s13674_s1 }
 0x6aa   : > { %3754 = vmatpush1.bf16.msra.mxu0 %v3727_v11 }
 0x6ab   : > { %3755 = vmatprep.subr.bf16.mxu0 %v11122_v1 }
 0x6ae   : > { %3756 = vmatpush1.bf16.msra.mxu0 %v3729_v13 }
 0x6af   : > { %3757 = vmatprep.subr.bf16.mxu0 %v11122_v1 }
 0x6b2   : > { %3758 = vmatpush1.bf16.msra.mxu0 %v3731_v15 }
 0x6b3   : > { %3759 = vmatprep.subr.bf16.mxu0 %v11122_v1 }
 0x6b6   : > { %3760 = vmatpush1.bf16.msra.mxu0 %v3733_v16 }
 0x6b7   : > { %3761 = vmatprep.subr.bf16.mxu0 %v11122_v1 }
 0x6ba   : > { %3762 = vmatpush1.bf16.msra.mxu0 %v3735_v18 }
 0x6bb   : > { %3763 = vmatprep.subr.bf16.mxu0 %v11122_v1 }
 0x6be   : > { %3764 = vmatpush1.bf16.msra.mxu0 %v3737_v20 }
 0x6bf   : > { %3765 = vmatprep.subr.bf16.mxu0 %v11122_v1 }
 0x6c2   : > { %3766 = vmatpush1.bf16.msra.mxu0 %v3739_v21 }
 0x6c5   : > { %3782 = vmatmul.mubr.bf16.vlgmr.msra.gmra.mrb[32].mxu0 %v12485_v56 }
 0x6c6   : > { %9949 = vmatprep.mubr.msk.bf16.mxu0 %vm2972_vm3, %v10874_v41 }
 0x774   : > { %v9939_v27 = vpop.f32.mrb[28].mxu0 }
 0x775   : > { %v3721_v9 = vadd.f32 %v9939_v27, %v3538_v58  ;;  %v3705_v28 = vpop.f32.mrb[29].mxu0  ;;  %v4048_v58 = vpop.permute.xlu1 %4047  ;;  %v11024_v27 = vld [vmem:[%s13655_s4 + $0x1b0] ss:$52 sps:$4 sm:$0xff]  }
 0x776   : > { %v3719_v38 = vadd.f32 %v3705_v28, %v3536_v60  ;;  %v9940_v29 = vpop.f32.mrb[30].mxu0  ;;  %v11026_v28 = vld [vmem:[%s13655_s4 + $0x350] ss:$52 sps:$4 sm:$0xff]  }
 0x777   : > { %v3708_v30 = vpop.f32.mrb[31].mxu0 }
 0x778   : > { %v3720_v17 = vadd.f32 %v3708_v30, %v3537_v33  ;;  %v4058_v33 = vpop.permute.xlu0 %4057 }
 0x779   : > { %v4052_v60 = vpop.permute.xlu1 %4051 }
 0x77c   : > { %v4365_v41 = vpop.permute.xlu0 %4364 }
 0x77d   : > { %v4056_v63 = vpop.permute.xlu1 %4055 }
 0x781   : > { %v4060_v62 = vpop.permute.xlu1 %4059 }
 0x798   : > { %v3783_v31 = vpop.f32.mrb[32].mxu0 }
 0x799   : > { %v3785_v19 = vpop.f32.mrb[33].mxu0 }
 0x79a   : > { %v3786_v32 = vpop.f32.mrb[34].mxu0 }
 0x79b   : > { %v3794_v34 = vpack.c.bf16 %v3786_v32, %v3783_v31  ;;  %v3788_v12 = vpop.f32.mrb[35].mxu0 }
 0x79d   : > { %9941 = vmatprep.subr.bf16.mxu1 %v3794_v34 }
 0x79e   : > { %9942 = vmatpush3.bf16.msra.mxu1 %v3794_v34 }
 0x79f   : > { %3932 = vmatprep.subr.bf16.mxu1 %v11122_v1 }
 0x7a1   : > { %9944 = vmatmul.mubr.msk.bf16.vlgmr.msra.gmra.mrb[36].mxu1 %vm2972_vm3, %v10868_v35 }
 0x7a2   : > { %3933 = vmatpush1.bf16.msra.mxu1 %v10869_v23  ;;  %9365 = vmatprep.mubr.msk.bf16.mxu1 %vm2972_vm3, %v12487_v43 }
 0x7a3   : > { %3934 = vmatprep.subr.bf16.mxu1 %v11122_v1 }
 0x7a6   : > { %3935 = vmatpush1.bf16.msra.mxu1 %v11018_v36 }
 0x7a7   : > { %3936 = vmatprep.subr.bf16.mxu1 %v11122_v1 }
 0x7aa   : > { %3937 = vmatpush1.bf16.msra.mxu1 %v10870_v24 }
 0x7ab   : > { %3938 = vmatprep.subr.bf16.mxu1 %v11122_v1 }
 0x7ae   : > { %3939 = vmatpush1.bf16.msra.mxu1 %v11019_v39 }
 0x7af   : > { %3940 = vmatprep.subr.bf16.mxu1 %v11122_v1 }
 0x7b2   : > { %3941 = vmatpush1.bf16.msra.mxu1 %v10871_v7  ;;  %v10877_v7 = vld [vmem:[%s13656_s5 + $0x5c] ss:$0 sps:$4 sm:$0xff]  }
 0x7b3   : > { %3942 = vmatprep.subr.bf16.mxu1 %v11122_v1 }
 0x7b6   : > { %3943 = vmatpush1.bf16.msra.mxu1 %v11020_v40 }
 0x7b7   : > { %3944 = vmatprep.subr.bf16.mxu1 %v11122_v1 }
 0x7ba   : > { %3945 = vmatpush1.bf16.msra.mxu1 %v10872_v25  ;;  %v11022_v25 = vld [vmem:[%s13655_s4 + $0x10] ss:$52 sps:$4 sm:$0xff]  }
 0x7bb   : > { %3946 = vmatprep.subr.bf16.mxu1 %v11122_v1 }
 0x7be   : > { %3947 = vmatpush1.bf16.msra.mxu1 %v11021_v37  ;;  %v10883_v37 = vld [vmem:[%s13656_s5 + $0x68] ss:$0 sps:$4 sm:$0xff]  }
 0x7bf   : > { %3948 = vmatprep.subr.bf16.mxu1 %v11122_v1 }
 0x7c2   : > { %3949 = vmatpush1.bf16.msra.mxu1 %v10873_v26  ;;  %v11023_v26 = vld [vmem:[%s13655_s4 + $0xe0] ss:$52 sps:$4 sm:$0xff]  }
 0x7c5   : > { %3965 = vmatmul.mubr.bf16.vlgmr.msra.gmra.mrb[40].mxu1 %v12485_v56 }
 0x7c6   : > { %9955 = vmatprep.mubr.msk.bf16.mxu1 %vm2972_vm3, %v10876_v0 }
 0x874   : > { %v9945_v42 = vpop.f32.mrb[36].mxu1 }
 0x875   : > { %v3859_v14 = vadd.f32 %v9945_v42, %v3721_v9  ;;  %v3843_v44 = vpop.f32.mrb[37].mxu1  ;;  %v11025_v9 = vld [vmem:[%s13655_s4 + $0x280] ss:$52 sps:$4 sm:$0xff]   ;;  %v4367_v42 = vpop.permute.xlu1 %4366 }
 0x876   : > { %v3857_v45 = vadd.f32 %v3843_v44, %v3719_v38  ;;  %v9946_v46 = vpop.f32.mrb[38].mxu1  ;;  %v10882_v38 = vld [vmem:[%s13656_s5 + $0x60] sm:$0xff]  }
 0x877   : > { %v3846_v47 = vpop.f32.mrb[39].mxu1 }
 0x878   : > { %v3858_v48 = vadd.f32 %v3846_v47, %v3720_v17 }
 0x879   : > { %v4371_v44 = vpop.permute.xlu1 %4370 }
 0x87d   : > { %v4375_v46 = vpop.permute.xlu1 %4374 }
 0x898   : > { %v3966_v49 = vpop.f32.mrb[40].mxu1 }
 0x899   : > { %v3968_v50 = vpop.f32.mrb[41].mxu1 }
 0x89a   : > { %v3969_v51 = vpop.f32.mrb[42].mxu1  ;;  %v10884_v50 = vld [vmem:[%s13656_s5 + $0x6c] sm:$0xff]  }
 0x89b   : > { %v3977_v52 = vpack.c.bf16 %v3969_v51, %v3966_v49  ;;  %v3971_v53 = vpop.f32.mrb[43].mxu1  ;;  %v10886_v51 = vld [vmem:[%s13655_s4 + $0x14] ss:$52 sps:$4 sm:$0xff]  }
 0x89c   : > { %4685 = vrot.lane.b32.xlu1 %v10886_v51, %s13674_s1  ;;  %v10888_v53 = vld [vmem:[%s13655_s4 + $0x1b4] ss:$52 sps:$4 sm:$0xff]  }
 0x89d   : > { %9947 = vmatprep.subr.bf16.mxu0 %v3977_v52 }
 0x89e   : > { %9948 = vmatpush3.bf16.msra.mxu0 %v3977_v52  ;;  %v10887_v52 = vld [vmem:[%s13655_s4 + $0xe4] ss:$52 sps:$4 sm:$0xff]  }
 0x89f   : > { %4070 = vmatprep.subr.bf16.mxu0 %v11122_v1 }
 0x8a0   : > { %4689 = vrot.lane.b32.xlu1 %v10887_v52, %s13674_s1 }
 0x8a1   : > { %9950 = vmatmul.mubr.msk.bf16.vlgmr.msra.gmra.mrb[36].mxu0 %vm2972_vm3, %v10875_v55  ;;  %v10889_v55 = vld [vmem:[%s13655_s4 + $0x284] ss:$52 sps:$4 sm:$0xff]  }
 0x8a2   : > { %4071 = vmatpush1.bf16.msra.mxu0 %v4044_v54  ;;  %9373 = vmatprep.mubr.msk.bf16.mxu0 %vm2972_vm3, %v12487_v43  ;;  %v10890_v54 = vld [vmem:[%s13655_s4 + $0x354] ss:$52 sps:$4 sm:$0xff]  }
 0x8a3   : > { %4072 = vmatprep.subr.bf16.mxu0 %v11122_v1 }
 0x8a4   : > { %4693 = vrot.lane.b32.xlu1 %v10888_v53, %s13674_s1 }
 0x8a6   : > { %4073 = vmatpush1.bf16.msra.mxu0 %v4046_v57 }
 0x8a7   : > { %4074 = vmatprep.subr.bf16.mxu0 %v11122_v1 }
 0x8a8   : > { %4697 = vrot.lane.b32.xlu1 %v10889_v55, %s13674_s1 }
 0x8aa   : > { %4075 = vmatpush1.bf16.msra.mxu0 %v4048_v58 }
 0x8ab   : > { %4076 = vmatprep.subr.bf16.mxu0 %v11122_v1 }
 0x8ac   : > { %4701 = vrot.lane.b32.xlu1 %v10890_v54, %s13674_s1 }
 0x8ae   : > { %4077 = vmatpush1.bf16.msra.mxu0 %v4050_v59 }
 0x8af   : > { %4078 = vmatprep.subr.bf16.mxu0 %v11122_v1 }
 0x8b2   : > { %4079 = vmatpush1.bf16.msra.mxu0 %v4052_v60 }
 0x8b3   : > { %4080 = vmatprep.subr.bf16.mxu0 %v11122_v1 }
 0x8b6   : > { %4081 = vmatpush1.bf16.msra.mxu0 %v4054_v61 }
 0x8b7   : > { %4082 = vmatprep.subr.bf16.mxu0 %v11122_v1 }
 0x8ba   : > { %4083 = vmatpush1.bf16.msra.mxu0 %v4056_v63 }
 0x8bb   : > { %4084 = vmatprep.subr.bf16.mxu0 %v11122_v1 }
 0x8be   : > { %4085 = vmatpush1.bf16.msra.mxu0 %v4058_v33 }
 0x8bf   : > { %4086 = vmatprep.subr.bf16.mxu0 %v11122_v1 }
 0x8c2   : > { %4087 = vmatpush1.bf16.msra.mxu0 %v4060_v62 }
 0x8c5   : > { %4103 = vmatmul.mubr.bf16.vlgmr.msra.gmra.mrb[40].mxu0 %v12485_v56 }
 0x8c6   : > { %9961 = vmatprep.mubr.msk.bf16.mxu0 %vm2972_vm3, %v10882_v38 }
 0x974   : > { %v9951_v8 = vpop.f32.mrb[36].mxu0 }
 0x975   : > { %v4042_v10 = vadd.f32 %v9951_v8, %v3859_v14  ;;  %v4026_v11 = vpop.f32.mrb[37].mxu0  ;;  %v4369_v14 = vpop.permute.xlu0 %4368  ;;  %v11027_v8 = vld [vmem:[%s13655_s4 + $0x7c] ss:$52 sps:$4 sm:$0xff]  }
 0x976   : > { %v4040_v13 = vadd.f32 %v4026_v11, %v3857_v45  ;;  %v9952_v15 = vpop.f32.mrb[38].mxu0  ;;  %v11029_v11 = vld [vmem:[%s13655_s4 + $0x21c] ss:$52 sps:$4 sm:$0xff]  }
 0x977   : > { %v4029_v16 = vpop.f32.mrb[39].mxu0  ;;  %v10891_v15 = vld [vmem:[%s13656_s5 + $0x78] sm:$0xff]  }
 0x978   : > { %v4041_v18 = vadd.f32 %v4029_v16, %v3858_v48  ;;  %v4379_v48 = vpop.permute.xlu1 %4378 }
 0x979   : > { %v4373_v45 = vpop.permute.xlu0 %4372 }
 0x97c   : > { %v4686_v38 = vpop.permute.xlu1 %4685 }
 0x97d   : > { %v4377_v47 = vpop.permute.xlu0 %4376 }
 0x981   : > { %v4381_v49 = vpop.permute.xlu0 %4380 }
 0x998   : > { %v4104_v20 = vpop.f32.mrb[40].mxu0 }
 0x999   : > { %v4106_v21 = vpop.f32.mrb[41].mxu0 }
 0x99a   : > { %v4107_v22 = vpop.f32.mrb[42].mxu0 }
 0x99b   : > { %v4115_v23 = vpack.c.bf16 %v4107_v22, %v4104_v20  ;;  %v4109_v24 = vpop.f32.mrb[43].mxu0 }
 0x99d   : > { %9953 = vmatprep.subr.bf16.mxu1 %v4115_v23 }
 0x99e   : > { %9954 = vmatpush3.bf16.msra.mxu1 %v4115_v23 }
 0x99f   : > { %4253 = vmatprep.subr.bf16.mxu1 %v11122_v1 }
 0x9a1   : > { %9956 = vmatmul.mubr.msk.bf16.vlgmr.msra.gmra.mrb[44].mxu1 %vm2972_vm3, %v10877_v7 }
 0x9a2   : > { %4254 = vmatpush1.bf16.msra.mxu1 %v11022_v25  ;;  %9390 = vmatprep.mubr.msk.bf16.mxu1 %vm2972_vm3, %v12487_v43 }
 0x9a3   : > { %4255 = vmatprep.subr.bf16.mxu1 %v11122_v1 }
 0x9a6   : > { %4256 = vmatpush1.bf16.msra.mxu1 %v10878_v3 }
 0x9a7   : > { %4257 = vmatprep.subr.bf16.mxu1 %v11122_v1 }
 0x9aa   : > { %4258 = vmatpush1.bf16.msra.mxu1 %v11023_v26 }
 0x9ab   : > { %4259 = vmatprep.subr.bf16.mxu1 %v11122_v1 }
 0x9ae   : > { %4260 = vmatpush1.bf16.msra.mxu1 %v10879_v4 }
 0x9af   : > { %4261 = vmatprep.subr.bf16.mxu1 %v11122_v1 }
 0x9b2   : > { %4262 = vmatpush1.bf16.msra.mxu1 %v11024_v27 }
 0x9b3   : > { %4263 = vmatprep.subr.bf16.mxu1 %v11122_v1 }
 0x9b6   : > { %4264 = vmatpush1.bf16.msra.mxu1 %v10880_v5 }
 0x9b7   : > { %4265 = vmatprep.subr.bf16.mxu1 %v11122_v1 }
 0x9ba   : > { %4266 = vmatpush1.bf16.msra.mxu1 %v11025_v9 }
 0x9bb   : > { %4267 = vmatprep.subr.bf16.mxu1 %v11122_v1 }
 0x9be   : > { %4268 = vmatpush1.bf16.msra.mxu1 %v10881_v6  ;;  %v10885_v6 = vld [vmem:[%s13656_s5 + $0x74] ss:$0 sps:$4 sm:$0xff]  }
 0x9bf   : > { %4269 = vmatprep.subr.bf16.mxu1 %v11122_v1 }
 0x9c2   : > { %4270 = vmatpush1.bf16.msra.mxu1 %v11026_v28  ;;  %v10892_v28 = vld [vmem:[%s13656_s5 + $0x80] ss:$0 sps:$4 sm:$0xff]  }
 0x9c5   : > { %4286 = vmatmul.mubr.bf16.vlgmr.msra.gmra.mrb[48].mxu1 %v12485_v56 }
 0x9c6   : > { %9967 = vmatprep.mubr.msk.bf16.mxu1 %vm2972_vm3, %v10884_v50 }
 0xa74   : > { %v9957_v29 = vpop.f32.mrb[44].mxu1 }
 0xa75   : > { %v4180_v30 = vadd.f32 %v9957_v29, %v4042_v10  ;;  %v4164_v17 = vpop.f32.mrb[45].mxu1  ;;  %v11028_v10 = vld [vmem:[%s13655_s4 + $0x14c] ss:$52 sps:$4 sm:$0xff]   ;;  %v4688_v29 = vpop.permute.xlu0 %4687 }
 0xa76   : > { %v4178_v31 = vadd.f32 %v4164_v17, %v4040_v13  ;;  %v9958_v19 = vpop.f32.mrb[46].mxu1  ;;  %v11030_v13 = vld [vmem:[%s13655_s4 + $0x2ec] ss:$52 sps:$4 sm:$0xff]  }
 0xa77   : > { %v4167_v32 = vpop.f32.mrb[47].mxu1 }
 0xa78   : > { %v4179_v34 = vadd.f32 %v4167_v32, %v4041_v18 }
 0xa79   : > { %v4692_v17 = vpop.permute.xlu0 %4691 }
 0xa7d   : > { %v4696_v19 = vpop.permute.xlu0 %4695 }
 0xa98   : > { %v4287_v12 = vpop.f32.mrb[48].mxu1 }
 0xa99   : > { %v4289_v35 = vpop.f32.mrb[49].mxu1 }
 0xa9a   : > { %v4290_v36 = vpop.f32.mrb[50].mxu1  ;;  %v10893_v35 = vld [vmem:[%s13656_s5 + $0x84] sm:$0xff]  }
 0xa9b   : > { %v4298_v39 = vpack.c.bf16 %v4290_v36, %v4287_v12  ;;  %v4292_v40 = vpop.f32.mrb[51].mxu1  ;;  %v10895_v36 = vld [vmem:[%s13655_s4 + $0x80] ss:$52 sps:$4 sm:$0xff]  }
 0xa9c   : > { %5008 = vrot.lane.b32.xlu1 %v10895_v36, %s13674_s1  ;;  %v10897_v40 = vld [vmem:[%s13655_s4 + $0x220] ss:$52 sps:$4 sm:$0xff]  }
 0xa9d   : > { %9959 = vmatprep.subr.bf16.mxu0 %v4298_v39 }
 0xa9e   : > { %9960 = vmatpush3.bf16.msra.mxu0 %v4298_v39  ;;  %v10896_v39 = vld [vmem:[%s13655_s4 + $0x150] ss:$52 sps:$4 sm:$0xff]  }
 0xa9f   : > { %4391 = vmatprep.subr.bf16.mxu0 %v11122_v1 }
 0xaa0   : > { %5012 = vrot.lane.b32.xlu1 %v10896_v39, %s13674_s1 }
 0xaa1   : > { %9962 = vmatmul.mubr.msk.bf16.vlgmr.msra.gmra.mrb[44].mxu0 %vm2972_vm3, %v10883_v37  ;;  %v10898_v37 = vld [vmem:[%s13655_s4 + $0x2f0] ss:$52 sps:$4 sm:$0xff]  }
 0xaa2   : > { %4392 = vmatpush1.bf16.msra.mxu0 %v4365_v41  ;;  %9398 = vmatprep.mubr.msk.bf16.mxu0 %vm2972_vm3, %v12487_v43 }
 0xaa3   : > { %4393 = vmatprep.subr.bf16.mxu0 %v11122_v1 }
 0xaa4   : > { %5016 = vrot.lane.b32.xlu1 %v10897_v40, %s13674_s1 }
 0xaa6   : > { %4394 = vmatpush1.bf16.msra.mxu0 %v4367_v42 }
 0xaa7   : > { %4395 = vmatprep.subr.bf16.mxu0 %v11122_v1 }
 0xaa8   : > { %5020 = vrot.lane.b32.xlu1 %v10898_v37, %s13674_s1 }
 0xaaa   : > { %4396 = vmatpush1.bf16.msra.mxu0 %v4369_v14 }
 0xaab   : > { %4397 = vmatprep.subr.bf16.mxu0 %v11122_v1 }
 0xaae   : > { %4398 = vmatpush1.bf16.msra.mxu0 %v4371_v44 }
 0xaaf   : > { %4399 = vmatprep.subr.bf16.mxu0 %v11122_v1 }
 0xab2   : > { %4400 = vmatpush1.bf16.msra.mxu0 %v4373_v45 }
 0xab3   : > { %4401 = vmatprep.subr.bf16.mxu0 %v11122_v1 }
 0xab6   : > { %4402 = vmatpush1.bf16.msra.mxu0 %v4375_v46 }
 0xab7   : > { %4403 = vmatprep.subr.bf16.mxu0 %v11122_v1 }
 0xaba   : > { %4404 = vmatpush1.bf16.msra.mxu0 %v4377_v47 }
 0xabb   : > { %4405 = vmatprep.subr.bf16.mxu0 %v11122_v1 }
 0xabe   : > { %4406 = vmatpush1.bf16.msra.mxu0 %v4379_v48 }
 0xabf   : > { %4407 = vmatprep.subr.bf16.mxu0 %v11122_v1 }
 0xac2   : > { %4408 = vmatpush1.bf16.msra.mxu0 %v4381_v49 }
 0xac5   : > { %4424 = vmatmul.mubr.bf16.vlgmr.msra.gmra.mrb[48].mxu0 %v12485_v56 }
 0xac6   : > { %9973 = vmatprep.mubr.msk.bf16.mxu0 %vm2972_vm3, %v10891_v15 }
 0xb74   : > { %v9963_v57 = vpop.f32.mrb[44].mxu0 }
 0xb75   : > { %v4363_v58 = vadd.f32 %v9963_v57, %v4180_v30  ;;  %v4347_v59 = vpop.f32.mrb[45].mxu0  ;;  %v4690_v30 = vpop.permute.xlu1 %4689  ;;  %v11033_v57 = vld [vmem:[%s13655_s4 + $0x1b8] ss:$52 sps:$4 sm:$0xff]  }
 0xb76   : > { %v4361_v60 = vadd.f32 %v4347_v59, %v4178_v31  ;;  %v9964_v61 = vpop.f32.mrb[46].mxu0  ;;  %v11035_v59 = vld [vmem:[%s13655_s4 + $0x358] ss:$52 sps:$4 sm:$0xff]  }
 0xb77   : > { %v4350_v63 = vpop.f32.mrb[47].mxu0 }
 0xb78   : > { %v4362_v33 = vadd.f32 %v4350_v63, %v4179_v34  ;;  %v4700_v34 = vpop.permute.xlu0 %4699 }
 0xb79   : > { %v4694_v31 = vpop.permute.xlu1 %4693 }
 0xb7c   : > { %v5007_v15 = vpop.permute.xlu0 %5006 }
 0xb7d   : > { %v4698_v32 = vpop.permute.xlu1 %4697 }
 0xb81   : > { %v4702_v12 = vpop.permute.xlu1 %4701 }
 0xb98   : > { %v4425_v62 = vpop.f32.mrb[48].mxu0 }
 0xb99   : > { %v4427_v0 = vpop.f32.mrb[49].mxu0 }
 0xb9a   : > { %v4428_v3 = vpop.f32.mrb[50].mxu0 }
 0xb9b   : > { %v4436_v4 = vpack.c.bf16 %v4428_v3, %v4425_v62  ;;  %v4430_v5 = vpop.f32.mrb[51].mxu0 }
 0xb9d   : > { %9965 = vmatprep.subr.bf16.mxu1 %v4436_v4 }
 0xb9e   : > { %9966 = vmatpush3.bf16.msra.mxu1 %v4436_v4 }
 0xb9f   : > { %4574 = vmatprep.subr.bf16.mxu1 %v11122_v1 }
 0xba1   : > { %9968 = vmatmul.mubr.msk.bf16.vlgmr.msra.gmra.mrb[52].mxu1 %vm2972_vm3, %v10885_v6 }
 0xba2   : > { %4575 = vmatpush1.bf16.msra.mxu1 %v10886_v51  ;;  %9415 = vmatprep.mubr.msk.bf16.mxu1 %vm2972_vm3, %v12487_v43 }
 0xba3   : > { %4576 = vmatprep.subr.bf16.mxu1 %v11122_v1 }
 0xba6   : > { %4577 = vmatpush1.bf16.msra.mxu1 %v11027_v8 }
 0xba7   : > { %4578 = vmatprep.subr.bf16.mxu1 %v11122_v1 }
 0xbaa   : > { %4579 = vmatpush1.bf16.msra.mxu1 %v10887_v52 }
 0xbab   : > { %4580 = vmatprep.subr.bf16.mxu1 %v11122_v1 }
 0xbae   : > { %4581 = vmatpush1.bf16.msra.mxu1 %v11028_v10 }
 0xbaf   : > { %4582 = vmatprep.subr.bf16.mxu1 %v11122_v1 }
 0xbb2   : > { %4583 = vmatpush1.bf16.msra.mxu1 %v10888_v53  ;;  %v10894_v53 = vld [vmem:[%s13656_s5 + $0x8c] ss:$0 sps:$4 sm:$0xff]  }
 0xbb3   : > { %4584 = vmatprep.subr.bf16.mxu1 %v11122_v1 }
 0xbb6   : > { %4585 = vmatpush1.bf16.msra.mxu1 %v11029_v11 }
 0xbb7   : > { %4586 = vmatprep.subr.bf16.mxu1 %v11122_v1 }
 0xbba   : > { %4587 = vmatpush1.bf16.msra.mxu1 %v10889_v55  ;;  %v11031_v55 = vld [vmem:[%s13655_s4 + $0x18] ss:$52 sps:$4 sm:$0xff]  }
 0xbbb   : > { %4588 = vmatprep.subr.bf16.mxu1 %v11122_v1 }
 0xbbe   : > { %4589 = vmatpush1.bf16.msra.mxu1 %v11030_v13  ;;  %v10900_v13 = vld [vmem:[%s13656_s5 + $0x98] ss:$0 sps:$4 sm:$0xff]  }
 0xbbf   : > { %4590 = vmatprep.subr.bf16.mxu1 %v11122_v1 }
 0xbc2   : > { %4591 = vmatpush1.bf16.msra.mxu1 %v10890_v54  ;;  %v11032_v54 = vld [vmem:[%s13655_s4 + $0xe8] ss:$52 sps:$4 sm:$0xff]  }
 0xbc5   : > { %4607 = vmatmul.mubr.bf16.vlgmr.msra.gmra.mrb[56].mxu1 %v12485_v56 }
 0xbc6   : > { %9979 = vmatprep.mubr.msk.bf16.mxu1 %vm2972_vm3, %v10893_v35 }
 0xc74   : > { %v9969_v16 = vpop.f32.mrb[52].mxu1 }
 0xc75   : > { %v4501_v18 = vadd.f32 %v9969_v16, %v4363_v58  ;;  %v4485_v20 = vpop.f32.mrb[53].mxu1  ;;  %v11034_v58 = vld [vmem:[%s13655_s4 + $0x288] ss:$52 sps:$4 sm:$0xff]   ;;  %v5009_v16 = vpop.permute.xlu1 %5008 }
 0xc76   : > { %v4499_v21 = vadd.f32 %v4485_v20, %v4361_v60  ;;  %v9970_v22 = vpop.f32.mrb[54].mxu1  ;;  %v10899_v60 = vld [vmem:[%s13656_s5 + $0x90] sm:$0xff]  }
 0xc77   : > { %v4488_v23 = vpop.f32.mrb[55].mxu1 }
 0xc78   : > { %v4500_v24 = vadd.f32 %v4488_v23, %v4362_v33 }
 0xc79   : > { %v5013_v20 = vpop.permute.xlu1 %5012 }
 0xc7d   : > { %v5017_v22 = vpop.permute.xlu1 %5016 }
 0xc98   : > { %v4608_v7 = vpop.f32.mrb[56].mxu1 }
 0xc99   : > { %v4610_v25 = vpop.f32.mrb[57].mxu1 }
 0xc9a   : > { %v4611_v26 = vpop.f32.mrb[58].mxu1  ;;  %v10901_v25 = vld [vmem:[%s13656_s5 + $0x9c] sm:$0xff]  }
 0xc9b   : > { %v4619_v27 = vpack.c.bf16 %v4611_v26, %v4608_v7  ;;  %v4613_v9 = vpop.f32.mrb[59].mxu1  ;;  %v10903_v26 = vld [vmem:[%s13655_s4 + $0x1c] ss:$52 sps:$4 sm:$0xff]  }
 0xc9c   : > { %5327 = vrot.lane.b32.xlu1 %v10903_v26, %s13674_s1  ;;  %v10905_v9 = vld [vmem:[%s13655_s4 + $0x1bc] ss:$52 sps:$4 sm:$0xff]  }
 0xc9d   : > { %9971 = vmatprep.subr.bf16.mxu0 %v4619_v27 }
 0xc9e   : > { %9972 = vmatpush3.bf16.msra.mxu0 %v4619_v27  ;;  %v10904_v27 = vld [vmem:[%s13655_s4 + $0xec] ss:$52 sps:$4 sm:$0xff]  }
 0xc9f   : > { %4712 = vmatprep.subr.bf16.mxu0 %v11122_v1 }
 0xca0   : > { %5331 = vrot.lane.b32.xlu1 %v10904_v27, %s13674_s1 }
 0xca1   : > { %9974 = vmatmul.mubr.msk.bf16.vlgmr.msra.gmra.mrb[52].mxu0 %vm2972_vm3, %v10892_v28  ;;  %v10906_v28 = vld [vmem:[%s13655_s4 + $0x28c] ss:$52 sps:$4 sm:$0xff]  }
 0xca2   : > { %4713 = vmatpush1.bf16.msra.mxu0 %v4686_v38  ;;  %9423 = vmatprep.mubr.msk.bf16.mxu0 %vm2972_vm3, %v12487_v43  ;;  %v10907_v38 = vld [vmem:[%s13655_s4 + $0x35c] ss:$52 sps:$4 sm:$0xff]  }
 0xca3   : > { %4714 = vmatprep.subr.bf16.mxu0 %v11122_v1 }
 0xca4   : > { %5335 = vrot.lane.b32.xlu1 %v10905_v9, %s13674_s1 }
 0xca6   : > { %4715 = vmatpush1.bf16.msra.mxu0 %v4688_v29 }
 0xca7   : > { %4716 = vmatprep.subr.bf16.mxu0 %v11122_v1 }
 0xca8   : > { %5339 = vrot.lane.b32.xlu1 %v10906_v28, %s13674_s1 }
 0xcaa   : > { %4717 = vmatpush1.bf16.msra.mxu0 %v4690_v30 }
 0xcab   : > { %4718 = vmatprep.subr.bf16.mxu0 %v11122_v1 }
 0xcac   : > { %5343 = vrot.lane.b32.xlu1 %v10907_v38, %s13674_s1 }
 0xcae   : > { %4719 = vmatpush1.bf16.msra.mxu0 %v4692_v17 }
 0xcaf   : > { %4720 = vmatprep.subr.bf16.mxu0 %v11122_v1 }
 0xcb2   : > { %4721 = vmatpush1.bf16.msra.mxu0 %v4694_v31 }
 0xcb3   : > { %4722 = vmatprep.subr.bf16.mxu0 %v11122_v1 }
 0xcb6   : > { %4723 = vmatpush1.bf16.msra.mxu0 %v4696_v19 }
 0xcb7   : > { %4724 = vmatprep.subr.bf16.mxu0 %v11122_v1 }
 0xcba   : > { %4725 = vmatpush1.bf16.msra.mxu0 %v4698_v32 }
 0xcbb   : > { %4726 = vmatprep.subr.bf16.mxu0 %v11122_v1 }
 0xcbe   : > { %4727 = vmatpush1.bf16.msra.mxu0 %v4700_v34 }
 0xcbf   : > { %4728 = vmatprep.subr.bf16.mxu0 %v11122_v1 }
 0xcc2   : > { %4729 = vmatpush1.bf16.msra.mxu0 %v4702_v12 }
 0xcc5   : > { %4745 = vmatmul.mubr.bf16.vlgmr.msra.gmra.mrb[56].mxu0 %v12485_v56 }
 0xcc6   : > { %9985 = vmatprep.mubr.msk.bf16.mxu0 %vm2972_vm3, %v10899_v60 }
 0xd74   : > { %v9975_v41 = vpop.f32.mrb[52].mxu0 }
 0xd75   : > { %v4684_v42 = vadd.f32 %v9975_v41, %v4501_v18  ;;  %v4668_v14 = vpop.f32.mrb[53].mxu0  ;;  %v5011_v18 = vpop.permute.xlu0 %5010  ;;  %v11036_v41 = vld [vmem:[%s13655_s4 + $0x84] ss:$52 sps:$4 sm:$0xff]  }
 0xd76   : > { %v4682_v44 = vadd.f32 %v4668_v14, %v4499_v21  ;;  %v9976_v45 = vpop.f32.mrb[54].mxu0  ;;  %v11038_v14 = vld [vmem:[%s13655_s4 + $0x224] ss:$52 sps:$4 sm:$0xff]  }
 0xd77   : > { %v4671_v46 = vpop.f32.mrb[55].mxu0  ;;  %v10908_v45 = vld [vmem:[%s13656_s5 + $0xa8] sm:$0xff]  }
 0xd78   : > { %v4683_v47 = vadd.f32 %v4671_v46, %v4500_v24  ;;  %v5021_v24 = vpop.permute.xlu1 %5020 }
 0xd79   : > { %v5015_v21 = vpop.permute.xlu0 %5014 }
 0xd7c   : > { %v5328_v60 = vpop.permute.xlu1 %5327 }
 0xd7d   : > { %v5019_v23 = vpop.permute.xlu0 %5018 }
 0xd81   : > { %v5023_v7 = vpop.permute.xlu0 %5022 }
 0xd98   : > { %v4746_v48 = vpop.f32.mrb[56].mxu0 }
 0xd99   : > { %v4748_v49 = vpop.f32.mrb[57].mxu0 }
 0xd9a   : > { %v4749_v50 = vpop.f32.mrb[58].mxu0 }
 0xd9b   : > { %v4757_v51 = vpack.c.bf16 %v4749_v50, %v4746_v48  ;;  %v4751_v52 = vpop.f32.mrb[59].mxu0 }
 0xd9d   : > { %9977 = vmatprep.subr.bf16.mxu1 %v4757_v51 }
 0xd9e   : > { %9978 = vmatpush3.bf16.msra.mxu1 %v4757_v51 }
 0xd9f   : > { %4895 = vmatprep.subr.bf16.mxu1 %v11122_v1 }
 0xda1   : > { %9980 = vmatmul.mubr.msk.bf16.vlgmr.msra.gmra.mrb[60].mxu1 %vm2972_vm3, %v10894_v53 }
 0xda2   : > { %4896 = vmatpush1.bf16.msra.mxu1 %v11031_v55  ;;  %9440 = vmatprep.mubr.msk.bf16.mxu1 %vm2972_vm3, %v12487_v43 }
 0xda3   : > { %4897 = vmatprep.subr.bf16.mxu1 %v11122_v1 }
 0xda6   : > { %4898 = vmatpush1.bf16.msra.mxu1 %v10895_v36 }
 0xda7   : > { %4899 = vmatprep.subr.bf16.mxu1 %v11122_v1 }
 0xdaa   : > { %4900 = vmatpush1.bf16.msra.mxu1 %v11032_v54 }
 0xdab   : > { %4901 = vmatprep.subr.bf16.mxu1 %v11122_v1 }
 0xdae   : > { %4902 = vmatpush1.bf16.msra.mxu1 %v10896_v39 }
 0xdaf   : > { %4903 = vmatprep.subr.bf16.mxu1 %v11122_v1 }
 0xdb2   : > { %4904 = vmatpush1.bf16.msra.mxu1 %v11033_v57 }
 0xdb3   : > { %4905 = vmatprep.subr.bf16.mxu1 %v11122_v1 }
 0xdb6   : > { %4906 = vmatpush1.bf16.msra.mxu1 %v10897_v40 }
 0xdb7   : > { %4907 = vmatprep.subr.bf16.mxu1 %v11122_v1 }
 0xdba   : > { %4908 = vmatpush1.bf16.msra.mxu1 %v11034_v58 }
 0xdbb   : > { %4909 = vmatprep.subr.bf16.mxu1 %v11122_v1 }
 0xdbe   : > { %4910 = vmatpush1.bf16.msra.mxu1 %v10898_v37  ;;  %v10902_v37 = vld [vmem:[%s13656_s5 + $0xa4] ss:$0 sps:$4 sm:$0xff]  }
 0xdbf   : > { %4911 = vmatprep.subr.bf16.mxu1 %v11122_v1 }
 0xdc2   : > { %4912 = vmatpush1.bf16.msra.mxu1 %v11035_v59  ;;  %v10909_v59 = vld [vmem:[%s13656_s5 + $0xb0] ss:$0 sps:$4 sm:$0xff]  }
 0xdc5   : > { %4928 = vmatmul.mubr.bf16.vlgmr.msra.gmra.mrb[64].mxu1 %v12485_v56 }
 0xdc6   : > { %9991 = vmatprep.mubr.msk.bf16.mxu1 %vm2972_vm3, %v10901_v25 }
 0xe74   : > { %v9981_v61 = vpop.f32.mrb[60].mxu1 }
 0xe75   : > { %v4822_v63 = vadd.f32 %v9981_v61, %v4684_v42  ;;  %v4806_v33 = vpop.f32.mrb[61].mxu1  ;;  %v11037_v42 = vld [vmem:[%s13655_s4 + $0x154] ss:$52 sps:$4 sm:$0xff]   ;;  %v5330_v61 = vpop.permute.xlu0 %5329 }
 0xe76   : > { %v4820_v62 = vadd.f32 %v4806_v33, %v4682_v44  ;;  %v9982_v0 = vpop.f32.mrb[62].mxu1  ;;  %v11039_v44 = vld [vmem:[%s13655_s4 + $0x2f4] ss:$52 sps:$4 sm:$0xff]  }
 0xe77   : > { %v4809_v3 = vpop.f32.mrb[63].mxu1 }
 0xe78   : > { %v4821_v4 = vadd.f32 %v4809_v3, %v4683_v47 }
 0xe79   : > { %v5334_v33 = vpop.permute.xlu0 %5333 }
 0xe7d   : > { %v5338_v0 = vpop.permute.xlu0 %5337 }
 0xe98   : > { %v4929_v5 = vpop.f32.mrb[64].mxu1 }
 0xe99   : > { %v4931_v6 = vpop.f32.mrb[65].mxu1 }
 0xe9a   : > { %v4932_v8 = vpop.f32.mrb[66].mxu1  ;;  %v10910_v6 = vld [vmem:[%s13656_s5 + $0xb4] sm:$0xff]  }
 0xe9b   : > { %v4940_v10 = vpack.c.bf16 %v4932_v8, %v4929_v5  ;;  %v4934_v11 = vpop.f32.mrb[67].mxu1  ;;  %v10912_v8 = vld [vmem:[%s13655_s4 + $0x88] ss:$52 sps:$4 sm:$0xff]  }
 0xe9c   : > { %5650 = vrot.lane.b32.xlu1 %v10912_v8, %s13674_s1  ;;  %v10914_v11 = vld [vmem:[%s13655_s4 + $0x228] ss:$52 sps:$4 sm:$0xff]  }
 0xe9d   : > { %9983 = vmatprep.subr.bf16.mxu0 %v4940_v10 }
 0xe9e   : > { %9984 = vmatpush3.bf16.msra.mxu0 %v4940_v10  ;;  %v10913_v10 = vld [vmem:[%s13655_s4 + $0x158] ss:$52 sps:$4 sm:$0xff]  }
 0xe9f   : > { %5033 = vmatprep.subr.bf16.mxu0 %v11122_v1 }
 0xea0   : > { %5654 = vrot.lane.b32.xlu1 %v10913_v10, %s13674_s1 }
 0xea1   : > { %9986 = vmatmul.mubr.msk.bf16.vlgmr.msra.gmra.mrb[60].mxu0 %vm2972_vm3, %v10900_v13  ;;  %v10915_v13 = vld [vmem:[%s13655_s4 + $0x2f8] ss:$52 sps:$4 sm:$0xff]  }
 0xea2   : > { %5034 = vmatpush1.bf16.msra.mxu0 %v5007_v15  ;;  %9448 = vmatprep.mubr.msk.bf16.mxu0 %vm2972_vm3, %v12487_v43 }
 0xea3   : > { %5035 = vmatprep.subr.bf16.mxu0 %v11122_v1 }
 0xea4   : > { %5658 = vrot.lane.b32.xlu1 %v10914_v11, %s13674_s1 }
 0xea6   : > { %5036 = vmatpush1.bf16.msra.mxu0 %v5009_v16 }
 0xea7   : > { %5037 = vmatprep.subr.bf16.mxu0 %v11122_v1 }
 0xea8   : > { %5662 = vrot.lane.b32.xlu1 %v10915_v13, %s13674_s1 }
 0xeaa   : > { %5038 = vmatpush1.bf16.msra.mxu0 %v5011_v18 }
 0xeab   : > { %5039 = vmatprep.subr.bf16.mxu0 %v11122_v1 }
 0xeae   : > { %5040 = vmatpush1.bf16.msra.mxu0 %v5013_v20 }
 0xeaf   : > { %5041 = vmatprep.subr.bf16.mxu0 %v11122_v1 }
 0xeb2   : > { %5042 = vmatpush1.bf16.msra.mxu0 %v5015_v21 }
 0xeb3   : > { %5043 = vmatprep.subr.bf16.mxu0 %v11122_v1 }
 0xeb6   : > { %5044 = vmatpush1.bf16.msra.mxu0 %v5017_v22 }
 0xeb7   : > { %5045 = vmatprep.subr.bf16.mxu0 %v11122_v1 }
 0xeba   : > { %5046 = vmatpush1.bf16.msra.mxu0 %v5019_v23 }
 0xebb   : > { %5047 = vmatprep.subr.bf16.mxu0 %v11122_v1 }
 0xebe   : > { %5048 = vmatpush1.bf16.msra.mxu0 %v5021_v24 }
 0xebf   : > { %5049 = vmatprep.subr.bf16.mxu0 %v11122_v1 }
 0xec2   : > { %5050 = vmatpush1.bf16.msra.mxu0 %v5023_v7 }
 0xec5   : > { %5066 = vmatmul.mubr.bf16.vlgmr.msra.gmra.mrb[64].mxu0 %v12485_v56 }
 0xec6   : > { %9997 = vmatprep.mubr.msk.bf16.mxu0 %vm2972_vm3, %v10908_v45 }
 0xf74   : > { %v9987_v29 = vpop.f32.mrb[60].mxu0 }
 0xf75   : > { %v5005_v30 = vadd.f32 %v9987_v29, %v4822_v63  ;;  %v4989_v17 = vpop.f32.mrb[61].mxu0  ;;  %v5332_v63 = vpop.permute.xlu1 %5331  ;;  %v11042_v29 = vld [vmem:[%s13655_s4 + $0x1c0] ss:$52 sps:$4 sm:$0xff]  }
 0xf76   : > { %v5003_v31 = vadd.f32 %v4989_v17, %v4820_v62  ;;  %v9988_v19 = vpop.f32.mrb[62].mxu0  ;;  %v11044_v17 = vld [vmem:[%s13655_s4 + $0x360] ss:$52 sps:$4 sm:$0xff]  }
 0xf77   : > { %v4992_v32 = vpop.f32.mrb[63].mxu0 }
 0xf78   : > { %v5004_v34 = vadd.f32 %v4992_v32, %v4821_v4  ;;  %v5342_v4 = vpop.permute.xlu0 %5341 }
 0xf79   : > { %v5336_v62 = vpop.permute.xlu1 %5335 }
 0xf7c   : > { %v5649_v45 = vpop.permute.xlu0 %5648 }
 0xf7d   : > { %v5340_v3 = vpop.permute.xlu1 %5339 }
 0xf81   : > { %v5344_v5 = vpop.permute.xlu1 %5343 }
 0xf98   : > { %v5067_v12 = vpop.f32.mrb[64].mxu0 }
 0xf99   : > { %v5069_v35 = vpop.f32.mrb[65].mxu0 }
 0xf9a   : > { %v5070_v36 = vpop.f32.mrb[66].mxu0 }
 0xf9b   : > { %v5078_v39 = vpack.c.bf16 %v5070_v36, %v5067_v12  ;;  %v5072_v40 = vpop.f32.mrb[67].mxu0 }
 0xf9d   : > { %9989 = vmatprep.subr.bf16.mxu1 %v5078_v39 }
 0xf9e   : > { %9990 = vmatpush3.bf16.msra.mxu1 %v5078_v39 }
 0xf9f   : > { %5216 = vmatprep.subr.bf16.mxu1 %v11122_v1 }
 0xfa1   : > { %9992 = vmatmul.mubr.msk.bf16.vlgmr.msra.gmra.mrb[68].mxu1 %vm2972_vm3, %v10902_v37 }
 0xfa2   : > { %5217 = vmatpush1.bf16.msra.mxu1 %v10903_v26  ;;  %9465 = vmatprep.mubr.msk.bf16.mxu1 %vm2972_vm3, %v12487_v43 }
 0xfa3   : > { %5218 = vmatprep.subr.bf16.mxu1 %v11122_v1 }
 0xfa6   : > { %5219 = vmatpush1.bf16.msra.mxu1 %v11036_v41 }
 0xfa7   : > { %5220 = vmatprep.subr.bf16.mxu1 %v11122_v1 }
 0xfaa   : > { %5221 = vmatpush1.bf16.msra.mxu1 %v10904_v27 }
 0xfab   : > { %5222 = vmatprep.subr.bf16.mxu1 %v11122_v1 }
 0xfae   : > { %5223 = vmatpush1.bf16.msra.mxu1 %v11037_v42 }
 0xfaf   : > { %5224 = vmatprep.subr.bf16.mxu1 %v11122_v1 }
 0xfb2   : > { %5225 = vmatpush1.bf16.msra.mxu1 %v10905_v9  ;;  %v10911_v9 = vld [vmem:[%s13656_s5 + $0xbc] ss:$0 sps:$4 sm:$0xff]  }
 0xfb3   : > { %5226 = vmatprep.subr.bf16.mxu1 %v11122_v1 }
 0xfb6   : > { %5227 = vmatpush1.bf16.msra.mxu1 %v11038_v14 }
 0xfb7   : > { %5228 = vmatprep.subr.bf16.mxu1 %v11122_v1 }
 0xfba   : > { %5229 = vmatpush1.bf16.msra.mxu1 %v10906_v28  ;;  %v11040_v28 = vld [vmem:[%s13655_s4 + $0x20] ss:$52 sps:$4 sm:$0xff]  }
 0xfbb   : > { %5230 = vmatprep.subr.bf16.mxu1 %v11122_v1 }
 0xfbe   : > { %5231 = vmatpush1.bf16.msra.mxu1 %v11039_v44  ;;  %v10917_v44 = vld [vmem:[%s13656_s5 + $0xc8] ss:$0 sps:$4 sm:$0xff]  }
 0xfbf   : > { %5232 = vmatprep.subr.bf16.mxu1 %v11122_v1 }
 0xfc2   : > { %5233 = vmatpush1.bf16.msra.mxu1 %v10907_v38  ;;  %v11041_v38 = vld [vmem:[%s13655_s4 + $0xf0] ss:$52 sps:$4 sm:$0xff]  }
 0xfc5   : > { %5249 = vmatmul.mubr.bf16.vlgmr.msra.gmra.mrb[72].mxu1 %v12485_v56 }
 0xfc6   : > { %10003 = vmatprep.mubr.msk.bf16.mxu1 %vm2972_vm3, %v10910_v6 }
0x1074   : > { %v9993_v46 = vpop.f32.mrb[68].mxu1 }
0x1075   : > { %v5143_v47 = vadd.f32 %v9993_v46, %v5005_v30  ;;  %v5127_v48 = vpop.f32.mrb[69].mxu1  ;;  %v11043_v30 = vld [vmem:[%s13655_s4 + $0x290] ss:$52 sps:$4 sm:$0xff]   ;;  %v5651_v46 = vpop.permute.xlu1 %5650 }
0x1076   : > { %v5141_v49 = vadd.f32 %v5127_v48, %v5003_v31  ;;  %v9994_v50 = vpop.f32.mrb[70].mxu1  ;;  %v10916_v31 = vld [vmem:[%s13656_s5 + $0xc0] sm:$0xff]  }
0x1077   : > { %v5130_v51 = vpop.f32.mrb[71].mxu1 }
0x1078   : > { %v5142_v52 = vadd.f32 %v5130_v51, %v5004_v34 }
0x1079   : > { %v5655_v48 = vpop.permute.xlu1 %5654 }
0x107d   : > { %v5659_v50 = vpop.permute.xlu1 %5658 }
0x1098   : > { %v5250_v53 = vpop.f32.mrb[72].mxu1 }
0x1099   : > { %v5252_v55 = vpop.f32.mrb[73].mxu1 }
0x109a   : > { %v5253_v54 = vpop.f32.mrb[74].mxu1  ;;  %v10918_v55 = vld [vmem:[%s13656_s5 + $0xcc] sm:$0xff]  }
0x109b   : > { %v5261_v57 = vpack.c.bf16 %v5253_v54, %v5250_v53  ;;  %v5255_v58 = vpop.f32.mrb[75].mxu1  ;;  %v10920_v54 = vld [vmem:[%s13655_s4 + $0x24] ss:$52 sps:$4 sm:$0xff]  }
0x109c   : > { %5969 = vrot.lane.b32.xlu1 %v10920_v54, %s13674_s1  ;;  %v10922_v58 = vld [vmem:[%s13655_s4 + $0x1c4] ss:$52 sps:$4 sm:$0xff]  }
0x109d   : > { %9995 = vmatprep.subr.bf16.mxu0 %v5261_v57 }
0x109e   : > { %9996 = vmatpush3.bf16.msra.mxu0 %v5261_v57  ;;  %v10921_v57 = vld [vmem:[%s13655_s4 + $0xf4] ss:$52 sps:$4 sm:$0xff]  }
0x109f   : > { %5354 = vmatprep.subr.bf16.mxu0 %v11122_v1 }
0x10a0   : > { %5973 = vrot.lane.b32.xlu1 %v10921_v57, %s13674_s1 }
0x10a1   : > { %9998 = vmatmul.mubr.msk.bf16.vlgmr.msra.gmra.mrb[68].mxu0 %vm2972_vm3, %v10909_v59  ;;  %v10923_v59 = vld [vmem:[%s13655_s4 + $0x294] ss:$52 sps:$4 sm:$0xff]  }
0x10a2   : > { %5355 = vmatpush1.bf16.msra.mxu0 %v5328_v60  ;;  %9473 = vmatprep.mubr.msk.bf16.mxu0 %vm2972_vm3, %v12487_v43  ;;  %v10924_v60 = vld [vmem:[%s13655_s4 + $0x364] ss:$52 sps:$4 sm:$0xff]  }
0x10a3   : > { %5356 = vmatprep.subr.bf16.mxu0 %v11122_v1 }
0x10a4   : > { %5977 = vrot.lane.b32.xlu1 %v10922_v58, %s13674_s1 }
0x10a6   : > { %5357 = vmatpush1.bf16.msra.mxu0 %v5330_v61 }
0x10a7   : > { %5358 = vmatprep.subr.bf16.mxu0 %v11122_v1 }
0x10a8   : > { %5981 = vrot.lane.b32.xlu1 %v10923_v59, %s13674_s1 }
0x10aa   : > { %5359 = vmatpush1.bf16.msra.mxu0 %v5332_v63 }
0x10ab   : > { %5360 = vmatprep.subr.bf16.mxu0 %v11122_v1 }
0x10ac   : > { %5985 = vrot.lane.b32.xlu1 %v10924_v60, %s13674_s1 }
0x10ae   : > { %5361 = vmatpush1.bf16.msra.mxu0 %v5334_v33 }
0x10af   : > { %5362 = vmatprep.subr.bf16.mxu0 %v11122_v1 }
0x10b2   : > { %5363 = vmatpush1.bf16.msra.mxu0 %v5336_v62 }
0x10b3   : > { %5364 = vmatprep.subr.bf16.mxu0 %v11122_v1 }
0x10b6   : > { %5365 = vmatpush1.bf16.msra.mxu0 %v5338_v0 }
0x10b7   : > { %5366 = vmatprep.subr.bf16.mxu0 %v11122_v1 }
0x10ba   : > { %5367 = vmatpush1.bf16.msra.mxu0 %v5340_v3 }
0x10bb   : > { %5368 = vmatprep.subr.bf16.mxu0 %v11122_v1 }
0x10be   : > { %5369 = vmatpush1.bf16.msra.mxu0 %v5342_v4 }
0x10bf   : > { %5370 = vmatprep.subr.bf16.mxu0 %v11122_v1 }
0x10c2   : > { %5371 = vmatpush1.bf16.msra.mxu0 %v5344_v5 }
0x10c5   : > { %5387 = vmatmul.mubr.bf16.vlgmr.msra.gmra.mrb[72].mxu0 %v12485_v56 }
0x10c6   : > { %10009 = vmatprep.mubr.msk.bf16.mxu0 %vm2972_vm3, %v10916_v31 }
0x1174   : > { %v9999_v15 = vpop.f32.mrb[68].mxu0 }
0x1175   : > { %v5326_v16 = vadd.f32 %v9999_v15, %v5143_v47  ;;  %v5310_v18 = vpop.f32.mrb[69].mxu0  ;;  %v5653_v47 = vpop.permute.xlu0 %5652  ;;  %v11045_v15 = vld [vmem:[%s13655_s4 + $0x8c] ss:$52 sps:$4 sm:$0xff]  }
0x1176   : > { %v5324_v20 = vadd.f32 %v5310_v18, %v5141_v49  ;;  %v10000_v21 = vpop.f32.mrb[70].mxu0  ;;  %v11047_v18 = vld [vmem:[%s13655_s4 + $0x22c] ss:$52 sps:$4 sm:$0xff]  }
0x1177   : > { %v5313_v22 = vpop.f32.mrb[71].mxu0  ;;  %v10925_v21 = vld [vmem:[%s13656_s5 + $0xd8] sm:$0xff]  }
0x1178   : > { %v5325_v23 = vadd.f32 %v5313_v22, %v5142_v52  ;;  %v5663_v52 = vpop.permute.xlu1 %5662 }
0x1179   : > { %v5657_v49 = vpop.permute.xlu0 %5656 }
0x117c   : > { %v5970_v31 = vpop.permute.xlu1 %5969 }
0x117d   : > { %v5661_v51 = vpop.permute.xlu0 %5660 }
0x1181   : > { %v5665_v53 = vpop.permute.xlu0 %5664 }
0x1198   : > { %v5388_v24 = vpop.f32.mrb[72].mxu0 }
0x1199   : > { %v5390_v7 = vpop.f32.mrb[73].mxu0 }
0x119a   : > { %v5391_v25 = vpop.f32.mrb[74].mxu0 }
0x119b   : > { %v5399_v26 = vpack.c.bf16 %v5391_v25, %v5388_v24  ;;  %v5393_v27 = vpop.f32.mrb[75].mxu0 }
0x119d   : > { %10001 = vmatprep.subr.bf16.mxu1 %v5399_v26 }
0x119e   : > { %10002 = vmatpush3.bf16.msra.mxu1 %v5399_v26 }
0x119f   : > { %5537 = vmatprep.subr.bf16.mxu1 %v11122_v1 }
0x11a1   : > { %10004 = vmatmul.mubr.msk.bf16.vlgmr.msra.gmra.mrb[76].mxu1 %vm2972_vm3, %v10911_v9 }
0x11a2   : > { %5538 = vmatpush1.bf16.msra.mxu1 %v11040_v28  ;;  %9490 = vmatprep.mubr.msk.bf16.mxu1 %vm2972_vm3, %v12487_v43 }
0x11a3   : > { %5539 = vmatprep.subr.bf16.mxu1 %v11122_v1 }
0x11a6   : > { %5540 = vmatpush1.bf16.msra.mxu1 %v10912_v8 }
0x11a7   : > { %5541 = vmatprep.subr.bf16.mxu1 %v11122_v1 }
0x11aa   : > { %5542 = vmatpush1.bf16.msra.mxu1 %v11041_v38 }
0x11ab   : > { %5543 = vmatprep.subr.bf16.mxu1 %v11122_v1 }
0x11ae   : > { %5544 = vmatpush1.bf16.msra.mxu1 %v10913_v10 }
0x11af   : > { %5545 = vmatprep.subr.bf16.mxu1 %v11122_v1 }
0x11b2   : > { %5546 = vmatpush1.bf16.msra.mxu1 %v11042_v29 }
0x11b3   : > { %5547 = vmatprep.subr.bf16.mxu1 %v11122_v1 }
0x11b6   : > { %5548 = vmatpush1.bf16.msra.mxu1 %v10914_v11 }
0x11b7   : > { %5549 = vmatprep.subr.bf16.mxu1 %v11122_v1 }
0x11ba   : > { %5550 = vmatpush1.bf16.msra.mxu1 %v11043_v30 }
0x11bb   : > { %5551 = vmatprep.subr.bf16.mxu1 %v11122_v1 }
0x11be   : > { %5552 = vmatpush1.bf16.msra.mxu1 %v10915_v13  ;;  %v10919_v13 = vld [vmem:[%s13656_s5 + $0xd4] ss:$0 sps:$4 sm:$0xff]  }
0x11bf   : > { %5553 = vmatprep.subr.bf16.mxu1 %v11122_v1 }
0x11c2   : > { %5554 = vmatpush1.bf16.msra.mxu1 %v11044_v17  ;;  %v10926_v17 = vld [vmem:[%s13656_s5 + $0xe0] ss:$0 sps:$4 sm:$0xff]  }
0x11c5   : > { %5570 = vmatmul.mubr.bf16.vlgmr.msra.gmra.mrb[80].mxu1 %v12485_v56 }
0x11c6   : > { %10015 = vmatprep.mubr.msk.bf16.mxu1 %vm2972_vm3, %v10918_v55 }
0x1274   : > { %v10005_v19 = vpop.f32.mrb[76].mxu1 }
0x1275   : > { %v5464_v32 = vadd.f32 %v10005_v19, %v5326_v16  ;;  %v5448_v34 = vpop.f32.mrb[77].mxu1  ;;  %v11046_v16 = vld [vmem:[%s13655_s4 + $0x15c] ss:$52 sps:$4 sm:$0xff]   ;;  %v5972_v19 = vpop.permute.xlu0 %5971 }
0x1276   : > { %v5462_v12 = vadd.f32 %v5448_v34, %v5324_v20  ;;  %v10006_v35 = vpop.f32.mrb[78].mxu1  ;;  %v11048_v20 = vld [vmem:[%s13655_s4 + $0x2fc] ss:$52 sps:$4 sm:$0xff]  }
0x1277   : > { %v5451_v36 = vpop.f32.mrb[79].mxu1 }
0x1278   : > { %v5463_v39 = vadd.f32 %v5451_v36, %v5325_v23 }
0x1279   : > { %v5976_v34 = vpop.permute.xlu0 %5975 }
0x127d   : > { %v5980_v35 = vpop.permute.xlu0 %5979 }
0x1298   : > { %v5571_v40 = vpop.f32.mrb[80].mxu1 }
0x1299   : > { %v5573_v37 = vpop.f32.mrb[81].mxu1 }
0x129a   : > { %v5574_v41 = vpop.f32.mrb[82].mxu1  ;;  %v10927_v37 = vld [vmem:[%s13656_s5 + $0xe4] sm:$0xff]  }
0x129b   : > { %v5582_v42 = vpack.c.bf16 %v5574_v41, %v5571_v40  ;;  %v5576_v14 = vpop.f32.mrb[83].mxu1  ;;  %v10929_v41 = vld [vmem:[%s13655_s4 + $0x90] ss:$52 sps:$4 sm:$0xff]  }
0x129c   : > { %6292 = vrot.lane.b32.xlu1 %v10929_v41, %s13674_s1  ;;  %v10931_v14 = vld [vmem:[%s13655_s4 + $0x230] ss:$52 sps:$4 sm:$0xff]  }
0x129d   : > { %10007 = vmatprep.subr.bf16.mxu0 %v5582_v42 }
0x129e   : > { %10008 = vmatpush3.bf16.msra.mxu0 %v5582_v42  ;;  %v10930_v42 = vld [vmem:[%s13655_s4 + $0x160] ss:$52 sps:$4 sm:$0xff]  }
0x129f   : > { %5675 = vmatprep.subr.bf16.mxu0 %v11122_v1 }
0x12a0   : > { %6296 = vrot.lane.b32.xlu1 %v10930_v42, %s13674_s1 }
0x12a1   : > { %10010 = vmatmul.mubr.msk.bf16.vlgmr.msra.gmra.mrb[76].mxu0 %vm2972_vm3, %v10917_v44  ;;  %v10932_v44 = vld [vmem:[%s13655_s4 + $0x300] ss:$52 sps:$4 sm:$0xff]  }
0x12a2   : > { %5676 = vmatpush1.bf16.msra.mxu0 %v5649_v45  ;;  %9498 = vmatprep.mubr.msk.bf16.mxu0 %vm2972_vm3, %v12487_v43 }
0x12a3   : > { %5677 = vmatprep.subr.bf16.mxu0 %v11122_v1 }
0x12a4   : > { %6300 = vrot.lane.b32.xlu1 %v10931_v14, %s13674_s1 }
0x12a6   : > { %5678 = vmatpush1.bf16.msra.mxu0 %v5651_v46 }
0x12a7   : > { %5679 = vmatprep.subr.bf16.mxu0 %v11122_v1 }
0x12a8   : > { %6304 = vrot.lane.b32.xlu1 %v10932_v44, %s13674_s1 }
0x12aa   : > { %5680 = vmatpush1.bf16.msra.mxu0 %v5653_v47 }
0x12ab   : > { %5681 = vmatprep.subr.bf16.mxu0 %v11122_v1 }
0x12ae   : > { %5682 = vmatpush1.bf16.msra.mxu0 %v5655_v48 }
0x12af   : > { %5683 = vmatprep.subr.bf16.mxu0 %v11122_v1 }
0x12b2   : > { %5684 = vmatpush1.bf16.msra.mxu0 %v5657_v49 }
0x12b3   : > { %5685 = vmatprep.subr.bf16.mxu0 %v11122_v1 }
0x12b6   : > { %5686 = vmatpush1.bf16.msra.mxu0 %v5659_v50 }
0x12b7   : > { %5687 = vmatprep.subr.bf16.mxu0 %v11122_v1 }
0x12ba   : > { %5688 = vmatpush1.bf16.msra.mxu0 %v5661_v51 }
0x12bb   : > { %5689 = vmatprep.subr.bf16.mxu0 %v11122_v1 }
0x12be   : > { %5690 = vmatpush1.bf16.msra.mxu0 %v5663_v52 }
0x12bf   : > { %5691 = vmatprep.subr.bf16.mxu0 %v11122_v1 }
0x12c2   : > { %5692 = vmatpush1.bf16.msra.mxu0 %v5665_v53 }
0x12c5   : > { %5708 = vmatmul.mubr.bf16.vlgmr.msra.gmra.mrb[80].mxu0 %v12485_v56 }
0x12c6   : > { %10021 = vmatprep.mubr.msk.bf16.mxu0 %vm2972_vm3, %v10925_v21 }
0x1374   : > { %v10011_v61 = vpop.f32.mrb[76].mxu0 }
0x1375   : > { %v5647_v63 = vadd.f32 %v10011_v61, %v5464_v32  ;;  %v5631_v33 = vpop.f32.mrb[77].mxu0  ;;  %v5974_v32 = vpop.permute.xlu1 %5973  ;;  %v11051_v61 = vld [vmem:[%s13655_s4 + $0x1c8] ss:$52 sps:$4 sm:$0xff]  }
0x1376   : > { %v5645_v62 = vadd.f32 %v5631_v33, %v5462_v12  ;;  %v10012_v0 = vpop.f32.mrb[78].mxu0  ;;  %v11053_v33 = vld [vmem:[%s13655_s4 + $0x368] ss:$52 sps:$4 sm:$0xff]  }
0x1377   : > { %v5634_v3 = vpop.f32.mrb[79].mxu0 }
0x1378   : > { %v5646_v4 = vadd.f32 %v5634_v3, %v5463_v39  ;;  %v5984_v39 = vpop.permute.xlu0 %5983 }
0x1379   : > { %v5978_v12 = vpop.permute.xlu1 %5977 }
0x137c   : > { %v6291_v21 = vpop.permute.xlu0 %6290 }
0x137d   : > { %v5982_v36 = vpop.permute.xlu1 %5981 }
0x1381   : > { %v5986_v40 = vpop.permute.xlu1 %5985 }
0x1398   : > { %v5709_v5 = vpop.f32.mrb[80].mxu0 }
0x1399   : > { %v5711_v6 = vpop.f32.mrb[81].mxu0 }
0x139a   : > { %v5712_v8 = vpop.f32.mrb[82].mxu0 }
0x139b   : > { %v5720_v10 = vpack.c.bf16 %v5712_v8, %v5709_v5  ;;  %v5714_v11 = vpop.f32.mrb[83].mxu0 }
0x139d   : > { %10013 = vmatprep.subr.bf16.mxu1 %v5720_v10 }
0x139e   : > { %10014 = vmatpush3.bf16.msra.mxu1 %v5720_v10 }
0x139f   : > { %5858 = vmatprep.subr.bf16.mxu1 %v11122_v1 }
0x13a1   : > { %10016 = vmatmul.mubr.msk.bf16.vlgmr.msra.gmra.mrb[84].mxu1 %vm2972_vm3, %v10919_v13 }
0x13a2   : > { %5859 = vmatpush1.bf16.msra.mxu1 %v10920_v54  ;;  %9515 = vmatprep.mubr.msk.bf16.mxu1 %vm2972_vm3, %v12487_v43 }
0x13a3   : > { %5860 = vmatprep.subr.bf16.mxu1 %v11122_v1 }
0x13a6   : > { %5861 = vmatpush1.bf16.msra.mxu1 %v11045_v15 }
0x13a7   : > { %5862 = vmatprep.subr.bf16.mxu1 %v11122_v1 }
0x13aa   : > { %5863 = vmatpush1.bf16.msra.mxu1 %v10921_v57 }
0x13ab   : > { %5864 = vmatprep.subr.bf16.mxu1 %v11122_v1 }
0x13ae   : > { %5865 = vmatpush1.bf16.msra.mxu1 %v11046_v16 }
0x13af   : > { %5866 = vmatprep.subr.bf16.mxu1 %v11122_v1 }
0x13b2   : > { %5867 = vmatpush1.bf16.msra.mxu1 %v10922_v58  ;;  %v10928_v58 = vld [vmem:[%s13656_s5 + $0xec] ss:$0 sps:$4 sm:$0xff]  }
0x13b3   : > { %5868 = vmatprep.subr.bf16.mxu1 %v11122_v1 }
0x13b6   : > { %5869 = vmatpush1.bf16.msra.mxu1 %v11047_v18 }
0x13b7   : > { %5870 = vmatprep.subr.bf16.mxu1 %v11122_v1 }
0x13ba   : > { %5871 = vmatpush1.bf16.msra.mxu1 %v10923_v59  ;;  %v11049_v59 = vld [vmem:[%s13655_s4 + $0x28] ss:$52 sps:$4 sm:$0xff]  }
0x13bb   : > { %5872 = vmatprep.subr.bf16.mxu1 %v11122_v1 }
0x13be   : > { %5873 = vmatpush1.bf16.msra.mxu1 %v11048_v20  ;;  %v10934_v20 = vld [vmem:[%s13656_s5 + $0xf8] ss:$0 sps:$4 sm:$0xff]  }
0x13bf   : > { %5874 = vmatprep.subr.bf16.mxu1 %v11122_v1 }
0x13c2   : > { %5875 = vmatpush1.bf16.msra.mxu1 %v10924_v60  ;;  %v11050_v60 = vld [vmem:[%s13655_s4 + $0xf8] ss:$52 sps:$4 sm:$0xff]  }
0x13c5   : > { %5891 = vmatmul.mubr.bf16.vlgmr.msra.gmra.mrb[88].mxu1 %v12485_v56 }
0x13c6   : > { %10027 = vmatprep.mubr.msk.bf16.mxu1 %vm2972_vm3, %v10927_v37 }
0x1474   : > { %v10017_v22 = vpop.f32.mrb[84].mxu1 }
0x1475   : > { %v5785_v23 = vadd.f32 %v10017_v22, %v5647_v63  ;;  %v5769_v24 = vpop.f32.mrb[85].mxu1  ;;  %v11052_v63 = vld [vmem:[%s13655_s4 + $0x298] ss:$52 sps:$4 sm:$0xff]   ;;  %v6293_v22 = vpop.permute.xlu1 %6292 }
0x1476   : > { %v5783_v7 = vadd.f32 %v5769_v24, %v5645_v62  ;;  %v10018_v25 = vpop.f32.mrb[86].mxu1  ;;  %v10933_v62 = vld [vmem:[%s13656_s5 + $0xf0] sm:$0xff]  }
0x1477   : > { %v5772_v26 = vpop.f32.mrb[87].mxu1 }
0x1478   : > { %v5784_v27 = vadd.f32 %v5772_v26, %v5646_v4 }
0x1479   : > { %v6297_v24 = vpop.permute.xlu1 %6296 }
0x147d   : > { %v6301_v25 = vpop.permute.xlu1 %6300 }
0x1498   : > { %v5892_v9 = vpop.f32.mrb[88].mxu1 }
0x1499   : > { %v5894_v28 = vpop.f32.mrb[89].mxu1 }
0x149a   : > { %v5895_v38 = vpop.f32.mrb[90].mxu1  ;;  %v10935_v28 = vld [vmem:[%s13656_s5 + $0xfc] sm:$0xff]  }
0x149b   : > { %v5903_v29 = vpack.c.bf16 %v5895_v38, %v5892_v9  ;;  %v5897_v30 = vpop.f32.mrb[91].mxu1  ;;  %v10937_v38 = vld [vmem:[%s13655_s4 + $0x2c] ss:$52 sps:$4 sm:$0xff]  }
0x149c   : > { %6611 = vrot.lane.b32.xlu1 %v10937_v38, %s13674_s1  ;;  %v10939_v30 = vld [vmem:[%s13655_s4 + $0x1cc] ss:$52 sps:$4 sm:$0xff]  }
0x149d   : > { %10019 = vmatprep.subr.bf16.mxu0 %v5903_v29 }
0x149e   : > { %10020 = vmatpush3.bf16.msra.mxu0 %v5903_v29  ;;  %v10938_v29 = vld [vmem:[%s13655_s4 + $0xfc] ss:$52 sps:$4 sm:$0xff]  }
0x149f   : > { %5996 = vmatprep.subr.bf16.mxu0 %v11122_v1 }
0x14a0   : > { %6615 = vrot.lane.b32.xlu1 %v10938_v29, %s13674_s1 }
0x14a1   : > { %10022 = vmatmul.mubr.msk.bf16.vlgmr.msra.gmra.mrb[84].mxu0 %vm2972_vm3, %v10926_v17  ;;  %v10940_v17 = vld [vmem:[%s13655_s4 + $0x29c] ss:$52 sps:$4 sm:$0xff]  }
0x14a2   : > { %5997 = vmatpush1.bf16.msra.mxu0 %v5970_v31  ;;  %9523 = vmatprep.mubr.msk.bf16.mxu0 %vm2972_vm3, %v12487_v43  ;;  %v10941_v31 = vld [vmem:[%s13655_s4 + $0x36c] ss:$52 sps:$4 sm:$0xff]  }
0x14a3   : > { %5998 = vmatprep.subr.bf16.mxu0 %v11122_v1 }
0x14a4   : > { %6619 = vrot.lane.b32.xlu1 %v10939_v30, %s13674_s1 }
0x14a6   : > { %5999 = vmatpush1.bf16.msra.mxu0 %v5972_v19 }
0x14a7   : > { %6000 = vmatprep.subr.bf16.mxu0 %v11122_v1 }
0x14a8   : > { %6623 = vrot.lane.b32.xlu1 %v10940_v17, %s13674_s1 }
0x14aa   : > { %6001 = vmatpush1.bf16.msra.mxu0 %v5974_v32 }
0x14ab   : > { %6002 = vmatprep.subr.bf16.mxu0 %v11122_v1 }
0x14ac   : > { %6627 = vrot.lane.b32.xlu1 %v10941_v31, %s13674_s1  ;;  %s404_s1 = sand.u32 1, %s11112_s22  }
0x14ad   : > { %s405_s0 = scalar_lea.vmem [#allocation2], %s404_s1  ;;  %s8690_s19 = scalar_lea.sflag [#allocation3], %s404_s1 }
0x14ae   : > { %6003 = vmatpush1.bf16.msra.mxu0 %v5976_v34  ;;  %s8702_s15 = sshll.u32 %s405_s0, 4  ;;  %s13610_s15 = int_to_ptr.vmem [resolvable:$true] %s8702_s15 }
0x14af   : > { %6004 = vmatprep.subr.bf16.mxu0 %v11122_v1  ;;  %s11058_s20 = scalar_lea.vmem %s13610_s15, 16  ;;  %p11065_p0 = scmp.lt.s32.totalorder %s13610_s15, %s11063_s16 }
0x14b0   : > { %p11059_p11 = scmp.ne.s32.totalorder %s13610_s15, %s11058_s20  ;;  %p11066_p1 = scmp.lt.s32.totalorder %s11064_s26, %s11058_s20 }
0x14b2   : > { %6005 = vmatpush1.bf16.msra.mxu0 %v5978_v12  ;;  %p11060_p12 = pnand %p11059_p11, %p11230_p5  ;;  %p11067_p2 = por %p11066_p1, %p11065_p0 }
0x14b3   : > { %6006 = vmatprep.subr.bf16.mxu0 %v11122_v1 }
0x14b4   : > { %p11061_p13 = pneg %p11060_p12 }
0x14b6   : > { %6007 = vmatpush1.bf16.msra.mxu0 %v5980_v35  ;;  %p11068_p3 = pnand %p11067_p2, %p11061_p13 }
0x14b7   : > { %6008 = vmatprep.subr.bf16.mxu0 %v11122_v1 }
0x14ba   : > { %6009 = vmatpush1.bf16.msra.mxu0 %v5982_v36 }
0x14bb   : > { %6010 = vmatprep.subr.bf16.mxu0 %v11122_v1 }
0x14be   : > { %6011 = vmatpush1.bf16.msra.mxu0 %v5984_v39 }
0x14bf   : > { %6012 = vmatprep.subr.bf16.mxu0 %v11122_v1 }
0x14c2   : > { %6013 = vmatpush1.bf16.msra.mxu0 %v5986_v40 }
0x14c5   : > { %6029 = vmatmul.mubr.bf16.vlgmr.msra.gmra.mrb[88].mxu0 %v12485_v56 }
0x14c6   : > { %10033 = vmatprep.mubr.msk.bf16.mxu0 %vm2972_vm3, %v10933_v62 }
0x1574   : > { %v10023_v45 = vpop.f32.mrb[84].mxu0 }
0x1575   : > { %v5968_v46 = vadd.f32 %v10023_v45, %v5785_v23  ;;  %v5952_v47 = vpop.f32.mrb[85].mxu0  ;;  %v6295_v23 = vpop.permute.xlu0 %6294  ;;  %v11054_v45 = vld [vmem:[%s13655_s4 + $0x94] ss:$52 sps:$4 sm:$0xff]  }
0x1576   : > { %v5966_v48 = vadd.f32 %v5952_v47, %v5783_v7  ;;  %v10024_v49 = vpop.f32.mrb[86].mxu0  ;;  %v11056_v47 = vld [vmem:[%s13655_s4 + $0x234] ss:$52 sps:$4 sm:$0xff]  }
0x1577   : > { %v5955_v50 = vpop.f32.mrb[87].mxu0  ;;  %v10942_v49 = vld [vmem:[%s13656_s5 + $0x108] sm:$0xff]  }
0x1578   : > { %v5967_v51 = vadd.f32 %v5955_v50, %v5784_v27  ;;  %v6305_v27 = vpop.permute.xlu1 %6304 }
0x1579   : > { %v6299_v7 = vpop.permute.xlu0 %6298 }
0x157c   : > { %v6612_v62 = vpop.permute.xlu1 %6611 }
0x157d   : > { %v6303_v26 = vpop.permute.xlu0 %6302 }
0x1581   : > { %v6307_v9 = vpop.permute.xlu0 %6306 }
0x1598   : > { %v6030_v52 = vpop.f32.mrb[88].mxu0 }
0x1599   : > { %v6032_v53 = vpop.f32.mrb[89].mxu0 }
0x159a   : > { %v6033_v55 = vpop.f32.mrb[90].mxu0 }
0x159b   : > { %v6041_v54 = vpack.c.bf16 %v6033_v55, %v6030_v52  ;;  %v6035_v57 = vpop.f32.mrb[91].mxu0 }
0x159d   : > { %10025 = vmatprep.subr.bf16.mxu1 %v6041_v54 }
0x159e   : > { %10026 = vmatpush3.bf16.msra.mxu1 %v6041_v54 }
0x159f   : > { %6179 = vmatprep.subr.bf16.mxu1 %v11122_v1 }
0x15a1   : > { %10028 = vmatmul.mubr.msk.bf16.vlgmr.msra.gmra.mrb[92].mxu1 %vm2972_vm3, %v10928_v58 }
0x15a2   : > { %6180 = vmatpush1.bf16.msra.mxu1 %v11049_v59  ;;  %9540 = vmatprep.mubr.msk.bf16.mxu1 %vm2972_vm3, %v12487_v43 }
0x15a3   : > { %6181 = vmatprep.subr.bf16.mxu1 %v11122_v1 }
0x15a6   : > { %6182 = vmatpush1.bf16.msra.mxu1 %v10929_v41 }
0x15a7   : > { %6183 = vmatprep.subr.bf16.mxu1 %v11122_v1 }
0x15aa   : > { %6184 = vmatpush1.bf16.msra.mxu1 %v11050_v60 }
0x15ab   : > { %6185 = vmatprep.subr.bf16.mxu1 %v11122_v1 }
0x15ae   : > { %6186 = vmatpush1.bf16.msra.mxu1 %v10930_v42 }
0x15af   : > { %6187 = vmatprep.subr.bf16.mxu1 %v11122_v1 }
0x15b2   : > { %6188 = vmatpush1.bf16.msra.mxu1 %v11051_v61 }
0x15b3   : > { %6189 = vmatprep.subr.bf16.mxu1 %v11122_v1 }
0x15b6   : > { %6190 = vmatpush1.bf16.msra.mxu1 %v10931_v14 }
0x15b7   : > { %6191 = vmatprep.subr.bf16.mxu1 %v11122_v1 }
0x15ba   : > { %6192 = vmatpush1.bf16.msra.mxu1 %v11052_v63 }
0x15bb   : > { %6193 = vmatprep.subr.bf16.mxu1 %v11122_v1 }
0x15be   : > { %6194 = vmatpush1.bf16.msra.mxu1 %v10932_v44  ;;  %v10936_v44 = vld [vmem:[%s13656_s5 + $0x104] ss:$0 sps:$4 sm:$0xff]  }
0x15bf   : > { %6195 = vmatprep.subr.bf16.mxu1 %v11122_v1 }
0x15c2   : > { %6196 = vmatpush1.bf16.msra.mxu1 %v11053_v33  ;;  %v10943_v33 = vld [vmem:[%s13656_s5 + $0x110] ss:$0 sps:$4 sm:$0xff]  }
0x15c5   : > { %6212 = vmatmul.mubr.bf16.vlgmr.msra.gmra.mrb[96].mxu1 %v12485_v56 }
0x15c6   : > { %10039 = vmatprep.mubr.msk.bf16.mxu1 %vm2972_vm3, %v10935_v28  ;;  %v10946_v28 = vld [vmem:[%s13655_s4 + $0x30] ss:$52 sps:$4 sm:$0xff]  }
0x1674   : > { %v10029_v0 = vpop.f32.mrb[92].mxu1 }
0x1675   : > { %v6106_v3 = vadd.f32 %v10029_v0, %v5968_v46  ;;  %v6090_v4 = vpop.f32.mrb[93].mxu1  ;;  %v11055_v46 = vld [vmem:[%s13655_s4 + $0x164] ss:$52 sps:$4 sm:$0xff]   ;;  %v6614_v0 = vpop.permute.xlu0 %6613 }
0x1676   : > { %v6104_v5 = vadd.f32 %v6090_v4, %v5966_v48  ;;  %v10030_v6 = vpop.f32.mrb[94].mxu1  ;;  %v11057_v48 = vld [vmem:[%s13655_s4 + $0x304] ss:$52 sps:$4 sm:$0xff]  }
0x1677   : > { %v6093_v8 = vpop.f32.mrb[95].mxu1 }
0x1678   : > { %v6105_v10 = vadd.f32 %v6093_v8, %v5967_v51 }
0x1679   : > { %v6618_v4 = vpop.permute.xlu0 %6617 }
0x167d   : > { %v6622_v6 = vpop.permute.xlu0 %6621 }
0x1698   : > { %v6213_v11 = vpop.f32.mrb[96].mxu1 }
0x1699   : > { %v6215_v13 = vpop.f32.mrb[97].mxu1 }
0x169a   : > { %v6216_v15 = vpop.f32.mrb[98].mxu1  ;;  %v10944_v13 = vld [vmem:[%s13656_s5 + $0x114] sm:$0xff]  }
0x169b   : > { %v6224_v16 = vpack.c.bf16 %v6216_v15, %v6213_v11  ;;  %v6218_v18 = vpop.f32.mrb[99].mxu1 }
0x169d   : > { %10031 = vmatprep.subr.bf16.mxu0 %v6224_v16 }
0x169e   : > { %10032 = vmatpush3.bf16.msra.mxu0 %v6224_v16 }
0x169f   : > { %6317 = vmatprep.subr.bf16.mxu0 %v11122_v1 }
0x16a1   : > { %10034 = vmatmul.mubr.msk.bf16.vlgmr.msra.gmra.mrb[92].mxu0 %vm2972_vm3, %v10934_v20 }
0x16a2   : > { %6318 = vmatpush1.bf16.msra.mxu0 %v6291_v21  ;;  %9548 = vmatprep.mubr.msk.bf16.mxu0 %vm2972_vm3, %v12487_v43 }
0x16a3   : > { %6319 = vmatprep.subr.bf16.mxu0 %v11122_v1 }
0x16a6   : > { %6320 = vmatpush1.bf16.msra.mxu0 %v6293_v22 }
0x16a7   : > { %6321 = vmatprep.subr.bf16.mxu0 %v11122_v1 }
0x16aa   : > { %6322 = vmatpush1.bf16.msra.mxu0 %v6295_v23 }
0x16ab   : > { %6323 = vmatprep.subr.bf16.mxu0 %v11122_v1 }
0x16ae   : > { %6324 = vmatpush1.bf16.msra.mxu0 %v6297_v24 }
0x16af   : > { %6325 = vmatprep.subr.bf16.mxu0 %v11122_v1 }
0x16b2   : > { %6326 = vmatpush1.bf16.msra.mxu0 %v6299_v7 }
0x16b3   : > { %6327 = vmatprep.subr.bf16.mxu0 %v11122_v1 }
0x16b6   : > { %6328 = vmatpush1.bf16.msra.mxu0 %v6301_v25 }
0x16b7   : > { %6329 = vmatprep.subr.bf16.mxu0 %v11122_v1 }
0x16ba   : > { %6330 = vmatpush1.bf16.msra.mxu0 %v6303_v26 }
0x16bb   : > { %6331 = vmatprep.subr.bf16.mxu0 %v11122_v1 }
0x16be   : > { %6332 = vmatpush1.bf16.msra.mxu0 %v6305_v27 }
0x16bf   : > { %6333 = vmatprep.subr.bf16.mxu0 %v11122_v1 }
0x16c2   : > { %6334 = vmatpush1.bf16.msra.mxu0 %v6307_v9  ;;  %v10945_v9 = vld [vmem:[%s13656_s5 + $0x11c] ss:$0 sps:$4 sm:$0xff]  }
0x16c5   : > { %6350 = vmatmul.mubr.bf16.vlgmr.msra.gmra.mrb[96].mxu0 %v12485_v56 }
0x16c6   : > { %10045 = vmatprep.mubr.msk.bf16.mxu0 %vm2972_vm3, %v10942_v49  ;;  %v10956_v49 = vld [vmem:[%s13656_s5 + $0x128] ss:$0 sps:$4 sm:$0xff]  }
0x1774   : > { %v10035_v19 = vpop.f32.mrb[92].mxu0 }
0x1775   : > { %v6289_v32 = vadd.f32 %v10035_v19, %v6106_v3  ;;  %v6273_v34 = vpop.f32.mrb[93].mxu0  ;;  %v6616_v3 = vpop.permute.xlu1 %6615  ;;  %v10953_v19 = vld [vmem:[%s13655_s4 + $0x308] ss:$52 sps:$4 sm:$0xff]  }
0x1776   : > { %v6287_v12 = vadd.f32 %v6273_v34, %v6104_v5  ;;  %v10036_v35 = vpop.f32.mrb[94].mxu0  ;;  %v10955_v34 = vld [vmem:[%s13656_s5 + $0x120] sm:$0xff]  }
0x1777   : > { %v6276_v36 = vpop.f32.mrb[95].mxu0  ;;  %v10958_v35 = vld [vmem:[%s13658_s7 + $0x40] sm:$0xff]  }
0x1778   : > { %v6288_v39 = vadd.f32 %v6276_v36, %v6105_v10  ;;  %v6626_v10 = vpop.permute.xlu0 %6625 }
0x1779   : > { %v6620_v5 = vpop.permute.xlu1 %6619 }
0x177d   : > { %v6624_v8 = vpop.permute.xlu1 %6623 }
0x1781   : > { %v6628_v11 = vpop.permute.xlu1 %6627 }
0x1798   : > { %v6351_v40 = vpop.f32.mrb[96].mxu0 }
0x1799   : > { %v6353_v37 = vpop.f32.mrb[97].mxu0 }
0x179a   : > { %v6354_v41 = vpop.f32.mrb[98].mxu0 }
0x179b   : > { %v6362_v42 = vpack.c.bf16 %v6354_v41, %v6351_v40  ;;  %v6356_v14 = vpop.f32.mrb[99].mxu0 }
0x179d   : > { %10037 = vmatprep.subr.bf16.mxu1 %v6362_v42 }
0x179e   : > { %10038 = vmatpush3.bf16.msra.mxu1 %v6362_v42 }
0x179f   : > { %6500 = vmatprep.subr.bf16.mxu1 %v11122_v1 }
0x17a1   : > { %10040 = vmatmul.mubr.msk.bf16.vlgmr.msra.gmra.mrb[100].mxu1 %vm2972_vm3, %v10936_v44 }
0x17a2   : > { %6501 = vmatpush1.bf16.msra.mxu1 %v10937_v38  ;;  %9565 = vmatprep.mubr.msk.bf16.mxu1 %vm2972_vm3, %v12487_v43  ;;  %v10947_v38 = vld [vmem:[%s13655_s4 + $0x98] ss:$52 sps:$4 sm:$0xff]  }
0x17a3   : > { %6502 = vmatprep.subr.bf16.mxu1 %v11122_v1 }
0x17a6   : > { %6503 = vmatpush1.bf16.msra.mxu1 %v11054_v45 }
0x17a7   : > { %6504 = vmatprep.subr.bf16.mxu1 %v11122_v1 }
0x17aa   : > { %6505 = vmatpush1.bf16.msra.mxu1 %v10938_v29  ;;  %v10948_v29 = vld [vmem:[%s13655_s4 + $0x100] ss:$52 sps:$4 sm:$0xff]  }
0x17ab   : > { %6506 = vmatprep.subr.bf16.mxu1 %v11122_v1 }
0x17ae   : > { %6507 = vmatpush1.bf16.msra.mxu1 %v11055_v46 }
0x17af   : > { %6508 = vmatprep.subr.bf16.mxu1 %v11122_v1 }
0x17b2   : > { %6509 = vmatpush1.bf16.msra.mxu1 %v10939_v30  ;;  %v10949_v30 = vld [vmem:[%s13655_s4 + $0x168] ss:$52 sps:$4 sm:$0xff]  }
0x17b3   : > { %6510 = vmatprep.subr.bf16.mxu1 %v11122_v1 }
0x17b6   : > { %6511 = vmatpush1.bf16.msra.mxu1 %v11056_v47 }
0x17b7   : > { %6512 = vmatprep.subr.bf16.mxu1 %v11122_v1 }
0x17ba   : > { %6513 = vmatpush1.bf16.msra.mxu1 %v10940_v17  ;;  %v10951_v17 = vld [vmem:[%s13655_s4 + $0x238] ss:$52 sps:$4 sm:$0xff]  }
0x17bb   : > { %6514 = vmatprep.subr.bf16.mxu1 %v11122_v1 }
0x17be   : > { %6515 = vmatpush1.bf16.msra.mxu1 %v11057_v48  ;;  %v10957_v48 = vld [vmem:[%s13658_s7] sm:$0xff]  }
0x17bf   : > { %6516 = vmatprep.subr.bf16.mxu1 %v11122_v1 }
0x17c2   : > { %6517 = vmatpush1.bf16.msra.mxu1 %v10941_v31  ;;  %v10952_v31 = vld [vmem:[%s13655_s4 + $0x2a0] ss:$52 sps:$4 sm:$0xff]  }
0x17c5   : > { %6533 = vmatmul.mubr.bf16.vlgmr.msra.gmra.mrb[104].mxu1 %v12485_v56 }
0x17c6   : > { %10051 = vmatprep.mubr.msk.bf16.mxu1 %vm2972_vm3, %v10944_v13  ;;  %v10967_v13 = vld [vmem:[%s13658_s7 + $0x30] sm:$0xff]  }
0x1874   : > { %v10041_v50 = vpop.f32.mrb[100].mxu1 }
0x1875   : > { %v6427_v51 = vadd.f32 %v10041_v50, %v6289_v32  ;;  %v6411_v52 = vpop.f32.mrb[101].mxu1  ;;  %v10954_v32 = vld [vmem:[%s13655_s4 + $0x370] ss:$52 sps:$4 sm:$0xff]   ;;  %v10959_v50 = vld [vmem:[%s13658_s7 + $0x8] sm:$0xff]  }
0x1876   : > { %v6425_v53 = vadd.f32 %v6411_v52, %v6287_v12  ;;  %v10042_v55 = vpop.f32.mrb[102].mxu1  ;;  %v6933_v12 = vld [vmem:[%s13657_s6 + $0x8] sm:$0xff]  ;;  %v10962_v52 = vld [vmem:[%s13658_s7 + $0x50] sm:$0xff]  }
0x1877   : > { %v6414_v54 = vpop.f32.mrb[103].mxu1  ;;  %6942 = vperm.xlu1 %10342, %v6933_v12   ;;  %v10964_v55 = vld [vmem:[%s13658_s7 + $0x58] sm:$0xff]  }
0x1878   : > { %v6426_v57 = vadd.f32 %v6414_v54, %v6288_v39  ;;  %v10965_v54 = vld [vmem:[%s13658_s7 + $0x20] sm:$0xff]  }
0x1898   : > { %v6534_v58 = vpop.f32.mrb[104].mxu1 }
0x1899   : > { %v6536_v59 = vpop.f32.mrb[105].mxu1 }
0x189a   : > { %v6537_v60 = vpop.f32.mrb[106].mxu1 }
0x189b   : > { %v6545_v61 = vpack.c.bf16 %v6537_v60, %v6534_v58  ;;  %v6539_v63 = vpop.f32.mrb[107].mxu1 }
0x189d   : > { %10043 = vmatprep.subr.bf16.mxu0 %v6545_v61 }
0x189e   : > { %10044 = vmatpush3.bf16.msra.mxu0 %v6545_v61 }
0x189f   : > { %6638 = vmatprep.subr.bf16.mxu0 %v11122_v1 }
0x18a1   : > { %10046 = vmatmul.mubr.msk.bf16.vlgmr.msra.gmra.mrb[100].mxu0 %vm2972_vm3, %v10943_v33 }
0x18a2   : > { %6639 = vmatpush1.bf16.msra.mxu0 %v6612_v62  ;;  %9573 = vmatprep.mubr.msk.bf16.mxu0 %vm2972_vm3, %v12487_v43 }
0x18a3   : > { %6640 = vmatprep.subr.bf16.mxu0 %v11122_v1 }
0x18a6   : > { %6641 = vmatpush1.bf16.msra.mxu0 %v6614_v0 }
0x18a7   : > { %6642 = vmatprep.subr.bf16.mxu0 %v11122_v1 }
0x18aa   : > { %6643 = vmatpush1.bf16.msra.mxu0 %v6616_v3 }
0x18ab   : > { %6644 = vmatprep.subr.bf16.mxu0 %v11122_v1 }
0x18ae   : > { %6645 = vmatpush1.bf16.msra.mxu0 %v6618_v4 }
0x18af   : > { %6646 = vmatprep.subr.bf16.mxu0 %v11122_v1 }
0x18b2   : > { %6647 = vmatpush1.bf16.msra.mxu0 %v6620_v5 }
0x18b3   : > { %6648 = vmatprep.subr.bf16.mxu0 %v11122_v1 }
0x18b6   : > { %6649 = vmatpush1.bf16.msra.mxu0 %v6622_v6 }
0x18b7   : > { %6650 = vmatprep.subr.bf16.mxu0 %v11122_v1 }
0x18ba   : > { %6651 = vmatpush1.bf16.msra.mxu0 %v6624_v8 }
0x18bb   : > { %6652 = vmatprep.subr.bf16.mxu0 %v11122_v1 }
0x18be   : > { %6653 = vmatpush1.bf16.msra.mxu0 %v6626_v10 }
0x18bf   : > { %6654 = vmatprep.subr.bf16.mxu0 %v11122_v1 }
0x18c2   : > { %6655 = vmatpush1.bf16.msra.mxu0 %v6628_v11  ;;  %v10966_v11 = vld [vmem:[%s13658_s7 + $0x28] sm:$0xff]  }
0x18c5   : > { %6671 = vmatmul.mubr.bf16.vlgmr.msra.gmra.mrb[104].mxu0 %v12485_v56 }
0x18c6   : > { %10057 = vmatprep.mubr.msk.bf16.mxu0 %vm2972_vm3, %v10955_v34 }
0x18f6   : > { %v6943_v62 = vpop.permute.xlu1 %6942 }
0x1974   : > { %v10047_v15 = vpop.f32.mrb[100].mxu0 }
0x1975   : > { %v6610_v16 = vadd.f32 %v10047_v15, %v6427_v51  ;;  %v6594_v18 = vpop.f32.mrb[101].mxu0  ;;  %v10961_v51 = vld [vmem:[%s13658_s7 + $0x10] sm:$0xff]   ;;  %v10968_v15 = vld [vmem:[%s13658_s7 + $0x38] sm:$0xff]  }
0x1976   : > { %v6608_v20 = vadd.f32 %v6594_v18, %v6425_v53  ;;  %v10048_v21 = vpop.f32.mrb[102].mxu0  ;;  %v10963_v53 = vld [vmem:[%s13658_s7 + $0x18] sm:$0xff]   ;;  %v10970_v18 = vld [vmem:[%s13658_s7 + $0x68] sm:$0xff]  }
0x1977   : > { %v6597_v22 = vpop.f32.mrb[103].mxu0  ;;  %v10972_v21 = vld [vmem:[%s13658_s7 + $0x78] sm:$0xff]  }
0x1978   : > { %v6609_v23 = vadd.f32 %v6597_v22, %v6426_v57  ;;  %v6938_v57 = vpop.permute.xlu0 %6937  ;;  %v10973_v22 = vld [vmem:[%s13659_s8 + $0x8] sm:$0xff]  }
0x197c   : > { %v6948_v0 = vpop.permute.xlu0 %6947 }
0x1998   : > { %v6672_v24 = vpop.f32.mrb[104].mxu0 }
0x1999   : > { %v6674_v7 = vpop.f32.mrb[105].mxu0 }
0x199a   : > { %v6675_v25 = vpop.f32.mrb[106].mxu0 }
0x199b   : > { %v6683_v26 = vpack.c.bf16 %v6675_v25, %v6672_v24  ;;  %v6677_v27 = vpop.f32.mrb[107].mxu0 }
0x199d   : > { %10049 = vmatprep.subr.bf16.mxu1 %v6683_v26 }
0x199e   : > { %10050 = vmatpush3.bf16.msra.mxu1 %v6683_v26 }
0x199f   : > { %6821 = vmatprep.subr.bf16.mxu1 %v11122_v1 }
0x19a1   : > { %10052 = vmatmul.mubr.msk.bf16.vlgmr.msra.gmra.mrb[108].mxu1 %vm2972_vm3, %v10945_v9 }
0x19a2   : > { %6822 = vmatpush1.bf16.msra.mxu1 %v10946_v28  ;;  %9590 = vmatprep.mubr.msk.bf16.mxu1 %vm2972_vm3, %v12487_v43  ;;  %v10950_v43 = vld [vmem:[%s13655_s4 + $0x1d0] ss:$52 sps:$4 sm:$0xff]  }
0x19a3   : > { %6823 = vmatprep.subr.bf16.mxu1 %v11122_v1 }
0x19a6   : > { %6824 = vmatpush1.bf16.msra.mxu1 %v10947_v38 }
0x19a7   : > { %6825 = vmatprep.subr.bf16.mxu1 %v11122_v1 }
0x19aa   : > { %6826 = vmatpush1.bf16.msra.mxu1 %v10948_v29 }
0x19ab   : > { %6827 = vmatprep.subr.bf16.mxu1 %v11122_v1 }
0x19ae   : > { %6828 = vmatpush1.bf16.msra.mxu1 %v10949_v30 }
0x19af   : > { %6829 = vmatprep.subr.bf16.mxu1 %v11122_v1 }
0x19b2   : > { %6830 = vmatpush1.bf16.msra.mxu1 %v10950_v43 }
0x19b3   : > { %6831 = vmatprep.subr.bf16.mxu1 %v11122_v1 }
0x19b6   : > { %6832 = vmatpush1.bf16.msra.mxu1 %v10951_v17 }
0x19b7   : > { %6833 = vmatprep.subr.bf16.mxu1 %v11122_v1 }
0x19ba   : > { %6834 = vmatpush1.bf16.msra.mxu1 %v10952_v31 }
0x19bb   : > { %6835 = vmatprep.subr.bf16.mxu1 %v11122_v1 }
0x19be   : > { %6836 = vmatpush1.bf16.msra.mxu1 %v10953_v19 }
0x19bf   : > { %6837 = vmatprep.subr.bf16.mxu1 %v11122_v1  ;;  %v10960_v1 = vld [vmem:[%s13658_s7 + $0x48] sm:$0xff]  }
0x19c2   : > { %6838 = vmatpush1.bf16.msra.mxu1 %v10954_v32 }
0x19c3   : > { %10085 = vmatprep.subr.bf16.mxu1 %v10958_v35 }
0x19c5   : > { %6854 = vmatmul.mubr.bf16.vlgmr.msra.gmra.mrb[112].mxu1 %v12485_v56 }
0x19c6   : > { %10086 = vmatpush3.bf16.msra.mxu1 %v10958_v35 }
0x19c7   : > { %10087 = vmatprep.subr.bf16.mxu1 %v10960_v1 }
0x19ca   : > { %10088 = vmatpush3.bf16.msra.mxu1 %v10960_v1 }
0x19cb   : > { %10089 = vmatprep.subr.bf16.mxu1 %v10962_v52 }
0x19ce   : > { %10090 = vmatpush3.bf16.msra.mxu1 %v10962_v52  ;;  %v10980_v52 = vld [vmem:[%s13659_s8 + $0x40] sm:$0xff]  }
0x19cf   : > { %10091 = vmatprep.subr.bf16.mxu1 %v10964_v55 }
0x19d2   : > { %10092 = vmatpush3.bf16.msra.mxu1 %v10964_v55 }
0x19d3   : > { %10109 = vmatprep.subr.bf16.mxu1 %v11123_v2 }
0x1a74   : > { %v10053_v56 = vpop.f32.mrb[108].mxu1 }
0x1a75   : > { %v6748_v36 = vadd.f32 %v10053_v56, %v6610_v16  ;;  %v6732_v39 = vpop.f32.mrb[109].mxu1  ;;  %v10969_v16 = vld [vmem:[%s13658_s7 + $0x60] sm:$0xff]  }
0x1a76   : > { %v6746_v40 = vadd.f32 %v6732_v39, %v6608_v20  ;;  %v10054_v37 = vpop.f32.mrb[110].mxu1  ;;  %v10971_v20 = vld [vmem:[%s13658_s7 + $0x70] sm:$0xff]  }
0x1a77   : > { %v6735_v41 = vpop.f32.mrb[111].mxu1 }
0x1a78   : > { %v6747_v42 = vadd.f32 %v6735_v41, %v6609_v23  ;;  %v10974_v23 = vld [vmem:[%s13659_s8 + $0x10] sm:$0xff]  }
0x1a98   : > { %v6855_v14 = vpop.f32.mrb[112].mxu1 }
0x1a99   : > { %v6857_v44 = vpop.f32.mrb[113].mxu1 }
0x1a9a   : > { %v6858_v45 = vpop.f32.mrb[114].mxu1  ;;  %v10975_v44 = vld [vmem:[%s13659_s8] sm:$0xff]  }
0x1a9b   : > { %v6866_v46 = vpack.c.bf16 %v6858_v45, %v6855_v14  ;;  %v6860_v47 = vpop.f32.mrb[115].mxu1  ;;  %v10976_v45 = vld [vmem:[%s13659_s8 + $0x20] sm:$0xff]  }
0x1a9d   : > { %10055 = vmatprep.subr.bf16.mxu0 %v6866_v46 }
0x1a9e   : > { %10056 = vmatpush3.bf16.msra.mxu0 %v6866_v46 }
0x1a9f   : > { %10061 = vmatprep.subr.bf16.mxu0 %v10957_v48 }
0x1aa1   : > { %10058 = vmatmul.mubr.msk.bf16.vlgmr.msra.gmra.mrb[108].mxu0 %vm2972_vm3, %v10956_v49  ;;  %v10978_v49 = vld [vmem:[%s13659_s8 + $0x30] sm:$0xff]  }
0x1aa2   : > { %10062 = vmatpush3.bf16.msra.mxu0 %v10957_v48  ;;  %v10977_v48 = vld [vmem:[%s13659_s8 + $0x18] sm:$0xff]  }
0x1aa3   : > { %10063 = vmatprep.subr.bf16.mxu0 %v10959_v50 }
0x1aa6   : > { %10064 = vmatpush3.bf16.msra.mxu0 %v10959_v50 }
0x1aa7   : > { %10065 = vmatprep.subr.bf16.mxu0 %v10961_v51 }
0x1aaa   : > { %10066 = vmatpush3.bf16.msra.mxu0 %v10961_v51  ;;  %v10979_v51 = vld [vmem:[%s13659_s8 + $0x28] sm:$0xff]  }
0x1aab   : > { %10067 = vmatprep.subr.bf16.mxu0 %v10963_v53 }
0x1aae   : > { %10068 = vmatpush3.bf16.msra.mxu0 %v10963_v53 }
0x1aaf   : > { %10073 = vmatprep.subr.bf16.mxu0 %v10965_v54 }
0x1b74   : > { %v10059_v58 = vpop.f32.mrb[108].mxu0 }
0x1b75   : > { %v6931_v59 = vadd.f32 %v10059_v58, %v6748_v36  ;;  %v6915_v60 = vpop.f32.mrb[109].mxu0  ;;  %v10982_v58 = vld [vmem:[%s13659_s8 + $0x50] sm:$0xff]  }
0x1b76   : > { %v6929_v61 = vadd.f32 %v6915_v60, %v6746_v40  ;;  %v10060_v63 = vpop.f32.mrb[110].mxu0 }
0x1b77   : > { %v6918_v33 = vpop.f32.mrb[111].mxu0  ;;  %v6952_v4 = vadd.f32 %v6948_v0, %v6931_v59  ;;  %v10984_v63 = vld [vmem:[%s13659_s8 + $0x60] sm:$0xff]   ;;  %v10985_v0 = vld [vmem:[%s13659_s8 + $0x58] sm:$0xff]  }
0x1b78   : > { %v6930_v3 = vadd.f32 %v6918_v33, %v6747_v42  ;;  %v6950_v5 = vadd.f32 %v6938_v57, %v6929_v61  ;;  %v10981_v57 = vld [vmem:[%s13659_s8 + $0x38] sm:$0xff]   ;;  %v10983_v61 = vld [vmem:[%s13659_s8 + $0x48] sm:$0xff]  }
0x1b79   : > { %v6954_v10 = vpack.c.bf16 %v6952_v4, %v6952_v4 }
0x1b7a   : > { %v6951_v6 = vadd.f32 %v6943_v62, %v6930_v3  ;;  %v10986_v3 = vld [vmem:[%s13659_s8 + $0x70] sm:$0xff]  }
0x1b7c   : > { %v6953_v8 = vpack.c.bf16 %v6951_v6, %v6950_v5  ;;  %v10987_v6 = vld [vmem:[%s13659_s8 + $0x68] sm:$0xff]  }
0x1b7e   : > { %10069 = vmatprep.mubr.msk.bf16.mxu0 %vm1063_vm2, %v6953_v8  ;;  %10093 = vmatprep.mubr.msk.bf16.mxu1 %vm1063_vm2, %v6953_v8 }
0x1b7f   : > { %10070 = vmatmul.mubr.msk.bf16.vlgmr.msra.gmra.mrb[112].mxu0 %vm1063_vm2, %v6954_v10  ;;  %10094 = vmatmul.mubr.msk.bf16.vlgmr.msra.gmra.mrb[116].mxu1 %vm1063_vm2, %v6954_v10 }
0x1b80   : > { %10074 = vmatpush3.bf16.msra.mxu0 %v10965_v54  ;;  %10081 = vmatprep.mubr.msk.bf16.mxu0 %vm1063_vm2, %v6953_v8 }
0x1b81   : > { %10075 = vmatprep.subr.bf16.mxu0 %v10966_v11  ;;  %10111 = vmatprep.mubr.msk.bf16.mxu1 %vm11124_vm0, %v11123_v2 }
0x1b82   : > { %10110 = vmatpush3.bf16.msra.mxu1 %v10973_v22  ;;  %v10992_v22 = vld [vmem:[%s13659_s8 + $0xa0] sm:$0xff]  }
0x1b83   : > { %10115 = vmatprep.subr.bf16.mxu1 %v11123_v2 }
0x1b84   : > { %10076 = vmatpush3.bf16.msra.mxu0 %v10966_v11 }
0x1b85   : > { %10077 = vmatprep.subr.bf16.mxu0 %v10967_v13 }
0x1b88   : > { %10078 = vmatpush3.bf16.msra.mxu0 %v10967_v13 }
0x1b89   : > { %10079 = vmatprep.subr.bf16.mxu0 %v10968_v15 }
0x1b8c   : > { %10080 = vmatpush3.bf16.msra.mxu0 %v10968_v15  ;;  %v10989_v15 = vld [vmem:[%s13659_s8 + $0x78] sm:$0xff]  }
0x1b8d   : > { %10097 = vmatprep.subr.bf16.mxu0 %v10969_v16 }
0x1b8f   : > { %10082 = vmatmul.mubr.msk.bf16.vlgmr.msra.gmra.mrb[116].mxu0 %vm1063_vm2, %v6954_v10 }
0x1b90   : > { %10098 = vmatpush3.bf16.msra.mxu0 %v10969_v16  ;;  %10105 = vmatprep.mubr.msk.bf16.mxu0 %vm1063_vm2, %v6953_v8  ;;  %v10988_v8 = vld [vmem:[%s13659_s8 + $0x80] sm:$0xff]   ;;  %v10990_v16 = vld [vmem:[%s13659_s8 + $0x90] sm:$0xff]  }
0x1b91   : > { %10099 = vmatprep.subr.bf16.mxu0 %v10970_v18 }
0x1b94   : > { %10100 = vmatpush3.bf16.msra.mxu0 %v10970_v18 }
0x1b95   : > { %10101 = vmatprep.subr.bf16.mxu0 %v10971_v20 }
0x1b98   : > { %10102 = vmatpush3.bf16.msra.mxu0 %v10971_v20 }
0x1b99   : > { %10103 = vmatprep.subr.bf16.mxu0 %v10972_v21 }
0x1b9c   : > { %10104 = vmatpush3.bf16.msra.mxu0 %v10972_v21  ;;  %v10991_v21 = vld [vmem:[%s13659_s8 + $0x88] sm:$0xff]  }
0x1b9d   : > { %10121 = vmatprep.subr.bf16.mxu0 %v11123_v2 }
0x1b9f   : > { %10106 = vmatmul.mubr.msk.bf16.vlgmr.msra.gmra.mrb[120].mxu0 %vm1063_vm2, %v6954_v10 }
0x1ba0   : > { %10123 = vmatprep.mubr.msk.bf16.mxu0 %vm11124_vm0, %v11123_v2  ;;  %10122 = vmatpush3.bf16.msra.mxu0 %v10974_v23 }
0x1ba1   : > { %10133 = vmatprep.subr.bf16.mxu0 %v11123_v2 }
0x1c52   : > { %v10071_v24 = vpop.f32.mrb[112].mxu0  ;;  %v10095_v7 = vpop.f32.mrb[116].mxu1 }
0x1c53   : > { %v7027_v25 = vpop.f32.mrb[113].mxu0  ;;  %v7189_v26 = vpop.f32.mrb[117].mxu1 }
0x1c54   : > { %v10072_v27 = vpop.f32.mrb[114].mxu0  ;;  %v10096_v9 = vpop.f32.mrb[118].mxu1 }
0x1c55   : > { %v7030_v28 = vpop.f32.mrb[115].mxu0  ;;  %v7192_v38 = vpop.f32.mrb[119].mxu1  ;;  %v10995_v9 = vld [vmem:[%s13659_s8 + $0xa8] sm:$0xff]  }
0x1c62   : > { %v10083_v29 = vpop.f32.mrb[116].mxu0 }
0x1c63   : > { %v7286_v30 = vmax.f32 %v10071_v24, %v10083_v29  ;;  %v7108_v43 = vpop.f32.mrb[117].mxu0  ;;  %v10996_v29 = vld [vmem:[%s13659_s8 + $0xb8] sm:$0xff]  }
0x1c64   : > { %v7284_v17 = vmax.f32 %v7027_v25, %v7108_v43  ;;  %v10084_v31 = vpop.f32.mrb[118].mxu0  ;;  %v10994_v25 = vld [vmem:[%s13659_s8 + $0xb0] sm:$0xff]  }
0x1c65   : > { %v7111_v19 = vpop.f32.mrb[119].mxu0  ;;  %v10998_v31 = vld [vmem:[%s13661_s10 + $0x8] sm:$0xff]  }
0x1c66   : > { %v7285_v32 = vmax.f32 %v7030_v28, %v7111_v19  ;;  %v10999_v19 = vld [vmem:[%s13661_s10 + $0x10] sm:$0xff]  }
0x1c72   : > { %v10107_v34 = vpop.f32.mrb[120].mxu0 }
0x1c73   : > { %v7289_v12 = vmax.f32 %v10095_v7, %v10107_v34  ;;  %v7270_v35 = vpop.f32.mrb[121].mxu0  ;;  %v10993_v7 = vld [vmem:[%s13659_s8 + $0x98] sm:$0xff]  }
0x1c74   : > { %v7287_v1 = vmax.f32 %v7189_v26, %v7270_v35  ;;  %v10108_v56 = vpop.f32.mrb[122].mxu0 }
0x1c75   : > { %v13420_v36 = vmax.f32 %v7286_v30, %v7289_v12  ;;  %v7273_v39 = vpop.f32.mrb[123].mxu0 }
0x1c76   : > { %v7290_v40 = vmax.f32 %v7284_v17, %v7287_v1  ;;  %v7288_v37 = vmax.f32 %v7192_v38, %v7273_v39  ;;  %v10997_v17 = vld [vmem:[%s13661_s10] sm:$0xff]  }
0x1c77   : > { %v7295_v13 = vmax.f32 %v13420_v36, 0.0 }
0x1c78   : > { %v7293_v41 = vmax.f32 %v7290_v40, 0.0  ;;  %v7291_v42 = vmax.f32 %v7285_v32, %v7288_v37  ;;  %v11000_v32 = vld [vmem:[%s13661_s10 + $0x18] ss:$0 sps:$4 sm:$0xff]  }
0x1c79   : > { %v8161_v18 = vpack.c.bf16 %v7295_v13, %v7295_v13  ;;  %v8634_v34 = vsel %vm8632_vm4, %v11000_v32, 0 }
0x1c7a   : > { %v7296_v14 = vpack.c.bf16 %v7293_v41, %v7293_v41  ;;  %v7294_v54 = vmax.f32 %v7291_v42, 0.0 }
0x1c7b   : > { %v8274_v24 = vrot.slane %v8161_v18, 1  ;;  %v8218_v26 = vshrl.u32 %v8161_v18, 16  ;;  %v8382_v27 = vrot.slane %v8161_v18, 2  ;;  %v8490_v38 = vrot.slane %v8161_v18, 3 }
0x1c7c   : > { %v7303_v46 = vshrl.u32 %v7296_v14, 16  ;;  %v7406_v47 = vrot.slane %v7296_v14, 1  ;;  %v7514_v50 = vrot.slane %v7296_v14, 2  ;;  %v7622_v55 = vrot.slane %v7296_v14, 3 }
0x1c7d   : > { %v7727_v59 = vpack.c.bf16 %v7294_v54, %v7294_v54  ;;  %v8328_v28 = vrot.slane %v8218_v26, 1  ;;  %v8436_v30 = vrot.slane %v8218_v26, 2  ;;  %v8544_v43 = vrot.slane %v8218_v26, 3 }
0x1c7e   : > { %10112 = vmatmul.mubr.msk.bf16.vlgmr.msra.gmra.mrb[120].mxu1 %vm2972_vm3, %v7303_v46  ;;  %10124 = vmatmul.mubr.msk.bf16.vlgmr.msra.gmra.mrb[124].mxu0 %vm2972_vm3, %v7406_v47  ;;  %v7460_v53 = vrot.slane %v7303_v46, 1  ;;  %v7568_v60 = vrot.slane %v7303_v46, 2  ;;  %v7676_v33 = vrot.slane %v7303_v46, 3 }
0x1c7f   : > { %10116 = vmatpush3.bf16.msra.mxu1 %v10975_v44  ;;  %10134 = vmatpush3.bf16.msra.mxu0 %v10976_v45  ;;  %v7840_v62 = vrot.slane %v7727_v59, 1  ;;  %v7784_v4 = vshrl.u32 %v7727_v59, 16  ;;  %v7948_v5 = vrot.slane %v7727_v59, 2  ;;  %v8056_v11 = vrot.slane %v7727_v59, 3 }
0x1c80   : > { %10117 = vmatprep.mubr.msk.bf16.mxu1 %vm11124_vm0, %v11123_v2  ;;  %10135 = vmatprep.mubr.msk.bf16.mxu0 %vm11124_vm0, %v11123_v2 }
0x1c81   : > { %10127 = vmatprep.subr.bf16.mxu1 %v11123_v2  ;;  %10145 = vmatprep.subr.bf16.mxu0 %v11123_v2  ;;  %v7894_v10 = vrot.slane %v7784_v4, 1  ;;  %v8002_v20 = vrot.slane %v7784_v4, 2  ;;  %v8110_v23 = vrot.slane %v7784_v4, 3 }
0x1c86   : > { %10118 = vmatmul.mubr.msk.bf16.vlgmr.msra.gmra.mrb[124].mxu1 %vm2972_vm3, %v7296_v14  ;;  %10136 = vmatmul.mubr.msk.bf16.vlgmr.msra.gmra.mrb[128].mxu0 %vm2972_vm3, %v7514_v50 }
0x1c87   : > { %10128 = vmatpush3.bf16.msra.mxu1 %v10977_v48  ;;  %10146 = vmatpush3.bf16.msra.mxu0 %v10978_v49 }
0x1c88   : > { %10129 = vmatprep.mubr.msk.bf16.mxu1 %vm11124_vm0, %v11123_v2  ;;  %10147 = vmatprep.mubr.msk.bf16.mxu0 %vm11124_vm0, %v11123_v2 }
0x1c89   : > { %10139 = vmatprep.subr.bf16.mxu1 %v11123_v2  ;;  %10157 = vmatprep.subr.bf16.mxu0 %v11123_v2 }
0x1c8e   : > { %10130 = vmatmul.mubr.msk.bf16.vlgmr.msra.gmra.mrb[128].mxu1 %vm2972_vm3, %v7460_v53  ;;  %10148 = vmatmul.mubr.msk.bf16.vlgmr.msra.gmra.mrb[132].mxu0 %vm2972_vm3, %v7622_v55 }
0x1c8f   : > { %10140 = vmatpush3.bf16.msra.mxu1 %v10979_v51  ;;  %10158 = vmatpush3.bf16.msra.mxu0 %v10980_v52 }
0x1c90   : > { %10141 = vmatprep.mubr.msk.bf16.mxu1 %vm11124_vm0, %v11123_v2  ;;  %10159 = vmatprep.mubr.msk.bf16.mxu0 %vm11124_vm0, %v11123_v2 }
0x1c91   : > { %10151 = vmatprep.subr.bf16.mxu1 %v11123_v2  ;;  %10169 = vmatprep.subr.bf16.mxu0 %v11123_v2 }
0x1c96   : > { %10142 = vmatmul.mubr.msk.bf16.vlgmr.msra.gmra.mrb[132].mxu1 %vm2972_vm3, %v7568_v60  ;;  %10160 = vmatmul.mubr.msk.bf16.vlgmr.msra.gmra.mrb[136].mxu0 %vm2972_vm3, %v7727_v59 }
0x1c97   : > { %10152 = vmatpush3.bf16.msra.mxu1 %v10981_v57  ;;  %10170 = vmatpush3.bf16.msra.mxu0 %v10982_v58 }
0x1c98   : > { %10153 = vmatprep.mubr.msk.bf16.mxu1 %vm11124_vm0, %v11123_v2  ;;  %10171 = vmatprep.mubr.msk.bf16.mxu0 %vm11124_vm0, %v11123_v2 }
0x1c99   : > { %10163 = vmatprep.subr.bf16.mxu1 %v11123_v2  ;;  %10181 = vmatprep.subr.bf16.mxu0 %v11123_v2 }
0x1c9e   : > { %10154 = vmatmul.mubr.msk.bf16.vlgmr.msra.gmra.mrb[136].mxu1 %vm2972_vm3, %v7676_v33  ;;  %10172 = vmatmul.mubr.msk.bf16.vlgmr.msra.gmra.mrb[140].mxu0 %vm2972_vm3, %v7840_v62 }
0x1c9f   : > { %10164 = vmatpush3.bf16.msra.mxu1 %v10983_v61  ;;  %10182 = vmatpush3.bf16.msra.mxu0 %v10984_v63 }
0x1ca0   : > { %10165 = vmatprep.mubr.msk.bf16.mxu1 %vm11124_vm0, %v11123_v2  ;;  %10183 = vmatprep.mubr.msk.bf16.mxu0 %vm11124_vm0, %v11123_v2 }
0x1ca1   : > { %10175 = vmatprep.subr.bf16.mxu1 %v11123_v2  ;;  %10193 = vmatprep.subr.bf16.mxu0 %v11123_v2 }
0x1ca6   : > { %10166 = vmatmul.mubr.msk.bf16.vlgmr.msra.gmra.mrb[140].mxu1 %vm2972_vm3, %v7784_v4  ;;  %10184 = vmatmul.mubr.msk.bf16.vlgmr.msra.gmra.mrb[144].mxu0 %vm2972_vm3, %v7948_v5 }
0x1ca7   : > { %10176 = vmatpush3.bf16.msra.mxu1 %v10985_v0  ;;  %10194 = vmatpush3.bf16.msra.mxu0 %v10986_v3 }
0x1ca8   : > { %10177 = vmatprep.mubr.msk.bf16.mxu1 %vm11124_vm0, %v11123_v2  ;;  %10195 = vmatprep.mubr.msk.bf16.mxu0 %vm11124_vm0, %v11123_v2 }
0x1ca9   : > { %10187 = vmatprep.subr.bf16.mxu1 %v11123_v2  ;;  %10205 = vmatprep.subr.bf16.mxu0 %v11123_v2 }
0x1cae   : > { %10178 = vmatmul.mubr.msk.bf16.vlgmr.msra.gmra.mrb[144].mxu1 %vm2972_vm3, %v7894_v10  ;;  %10196 = vmatmul.mubr.msk.bf16.vlgmr.msra.gmra.mrb[148].mxu0 %vm2972_vm3, %v8056_v11 }
0x1caf   : > { %10188 = vmatpush3.bf16.msra.mxu1 %v10987_v6  ;;  %10206 = vmatpush3.bf16.msra.mxu0 %v10988_v8 }
0x1cb0   : > { %10189 = vmatprep.mubr.msk.bf16.mxu1 %vm11124_vm0, %v11123_v2  ;;  %10207 = vmatprep.mubr.msk.bf16.mxu0 %vm11124_vm0, %v11123_v2 }
0x1cb1   : > { %10199 = vmatprep.subr.bf16.mxu1 %v11123_v2  ;;  %10217 = vmatprep.subr.bf16.mxu0 %v11123_v2 }
0x1cb6   : > { %10190 = vmatmul.mubr.msk.bf16.vlgmr.msra.gmra.mrb[148].mxu1 %vm2972_vm3, %v8002_v20  ;;  %10208 = vmatmul.mubr.msk.bf16.vlgmr.msra.gmra.mrb[152].mxu0 %vm2972_vm3, %v8161_v18 }
0x1cb7   : > { %10200 = vmatpush3.bf16.msra.mxu1 %v10989_v15  ;;  %10218 = vmatpush3.bf16.msra.mxu0 %v10990_v16 }
0x1cb8   : > { %10201 = vmatprep.mubr.msk.bf16.mxu1 %vm11124_vm0, %v11123_v2  ;;  %10219 = vmatprep.mubr.msk.bf16.mxu0 %vm11124_vm0, %v11123_v2 }
0x1cb9   : > { %10211 = vmatprep.subr.bf16.mxu1 %v11123_v2  ;;  %10229 = vmatprep.subr.bf16.mxu0 %v11123_v2 }
0x1cbe   : > { %10202 = vmatmul.mubr.msk.bf16.vlgmr.msra.gmra.mrb[152].mxu1 %vm2972_vm3, %v8110_v23  ;;  %10220 = vmatmul.mubr.msk.bf16.vlgmr.msra.gmra.mrb[156].mxu0 %vm2972_vm3, %v8274_v24 }
0x1cbf   : > { %10212 = vmatpush3.bf16.msra.mxu1 %v10991_v21  ;;  %10230 = vmatpush3.bf16.msra.mxu0 %v10992_v22 }
0x1cc0   : > { %10213 = vmatprep.mubr.msk.bf16.mxu1 %vm11124_vm0, %v11123_v2  ;;  %10231 = vmatprep.mubr.msk.bf16.mxu0 %vm11124_vm0, %v11123_v2 }
0x1cc1   : > { %10223 = vmatprep.subr.bf16.mxu1 %v11123_v2  ;;  %10241 = vmatprep.subr.bf16.mxu0 %v11123_v2 }
0x1cc6   : > { %10214 = vmatmul.mubr.msk.bf16.vlgmr.msra.gmra.mrb[156].mxu1 %vm2972_vm3, %v8218_v26  ;;  %10232 = vmatmul.mubr.msk.bf16.vlgmr.msra.gmra.mrb[160].mxu0 %vm2972_vm3, %v8382_v27 }
0x1cc7   : > { %10224 = vmatpush3.bf16.msra.mxu1 %v10993_v7  ;;  %10242 = vmatpush3.bf16.msra.mxu0 %v10994_v25 }
0x1cc8   : > { %10225 = vmatprep.mubr.msk.bf16.mxu1 %vm11124_vm0, %v11123_v2  ;;  %10243 = vmatprep.mubr.msk.bf16.mxu0 %vm11124_vm0, %v11123_v2 }
0x1cc9   : > { %10235 = vmatprep.subr.bf16.mxu1 %v11123_v2  ;;  %10253 = vmatprep.subr.bf16.mxu0 %v11123_v2 }
0x1cce   : > { %10226 = vmatmul.mubr.msk.bf16.vlgmr.msra.gmra.mrb[160].mxu1 %vm2972_vm3, %v8328_v28  ;;  %10244 = vmatmul.mubr.msk.bf16.vlgmr.msra.gmra.mrb[164].mxu0 %vm2972_vm3, %v8490_v38 }
0x1ccf   : > { %10236 = vmatpush3.bf16.msra.mxu1 %v10995_v9  ;;  %10237 = vmatprep.mubr.msk.bf16.mxu1 %vm11124_vm0, %v11123_v2 }
0x1cd0   : > { %10247 = vmatprep.subr.bf16.mxu1 %v11123_v2  ;;  %10261 = vmatprep.mubr.msk.bf16.mxu0 %vm11124_vm0, %v11123_v2 }
0x1cd1   : > { %10254 = vmatpush3.bf16.msra.mxu0 %v10997_v17 }
0x1cd2   : > { %10255 = vmatprep.subr.bf16.mxu0 %v11123_v2 }
0x1cd5   : > { %10256 = vmatpush3.bf16.msra.mxu0 %v10998_v31 }
0x1cd6   : > { %10238 = vmatmul.mubr.msk.bf16.vlgmr.msra.gmra.mrb[164].mxu1 %vm2972_vm3, %v8436_v30  ;;  %10257 = vmatprep.subr.bf16.mxu0 %v11123_v2 }
0x1cd7   : > { %10248 = vmatpush3.bf16.msra.mxu1 %v10996_v29  ;;  %10249 = vmatprep.mubr.msk.bf16.mxu1 %vm11124_vm0, %v11123_v2 }
0x1cd9   : > { %10258 = vmatpush3.bf16.msra.mxu0 %v10999_v19 }
0x1cda   : > { %10259 = vmatprep.subr.bf16.mxu0 %v11123_v2 }
0x1cdd   : > { %10260 = vmatpush3.bf16.msra.mxu0 %v8634_v34 }
0x1cde   : > { %10250 = vmatmul.mubr.msk.bf16.vlgmr.msra.gmra.mrb[168].mxu1 %vm2972_vm3, %v8544_v43 }
0x1d51   : > { %v7348_v12 = vpop.f32.mrb[120].mxu1  ;;  %v7450_v35 = vpop.f32.mrb[124].mxu0 }
0x1d52   : > { %v10113_v1 = vpop.f32.mrb[121].mxu1  ;;  %v10125_v56 = vpop.f32.mrb[125].mxu0 }
0x1d53   : > { %v7351_v36 = vpop.f32.mrb[122].mxu1  ;;  %v7453_v39 = vpop.f32.mrb[126].mxu0 }
0x1d54   : > { %v10114_v40 = vpop.f32.mrb[123].mxu1  ;;  %v10126_v37 = vpop.f32.mrb[127].mxu0 }
0x1d59   : > { %v7396_v41 = vpop.f32.mrb[124].mxu1  ;;  %v7558_v42 = vpop.f32.mrb[128].mxu0 }
0x1d5a   : > { %v7397_v14 = vadd.f32 %v7396_v41, %v7348_v12  ;;  %v10119_v44 = vpop.f32.mrb[125].mxu1  ;;  %v10137_v2 = vpop.f32.mrb[129].mxu0 }
0x1d5b   : > { %v7399_v45 = vpop.f32.mrb[126].mxu1  ;;  %v7561_v46 = vpop.f32.mrb[130].mxu0 }
0x1d5c   : > { %v10120_v47 = vpop.f32.mrb[127].mxu1  ;;  %v10138_v48 = vpop.f32.mrb[131].mxu0  ;;  %v7456_v49 = vadd.f32 %v7450_v35, %v7397_v14 }
0x1d61   : > { %v7504_v50 = vpop.f32.mrb[128].mxu1  ;;  %v7666_v51 = vpop.f32.mrb[132].mxu0 }
0x1d62   : > { %v7510_v52 = vadd.f32 %v7504_v50, %v7456_v49  ;;  %v10131_v53 = vpop.f32.mrb[129].mxu1  ;;  %v10149_v55 = vpop.f32.mrb[133].mxu0 }
0x1d63   : > { %v7507_v54 = vpop.f32.mrb[130].mxu1  ;;  %v7669_v57 = vpop.f32.mrb[134].mxu0 }
0x1d64   : > { %v10132_v58 = vpop.f32.mrb[131].mxu1  ;;  %v10150_v59 = vpop.f32.mrb[135].mxu0  ;;  %v7564_v60 = vadd.f32 %v7558_v42, %v7510_v52 }
0x1d69   : > { %v7612_v61 = vpop.f32.mrb[132].mxu1  ;;  %v7774_v63 = vpop.f32.mrb[136].mxu0 }
0x1d6a   : > { %v7618_v33 = vadd.f32 %v7612_v61, %v7564_v60  ;;  %v10143_v62 = vpop.f32.mrb[133].mxu1  ;;  %v10161_v0 = vpop.f32.mrb[137].mxu0 }
0x1d6b   : > { %v7615_v3 = vpop.f32.mrb[134].mxu1  ;;  %v7777_v4 = vpop.f32.mrb[138].mxu0 }
0x1d6c   : > { %v10144_v5 = vpop.f32.mrb[135].mxu1  ;;  %v10162_v6 = vpop.f32.mrb[139].mxu0  ;;  %v7672_v8 = vadd.f32 %v7666_v51, %v7618_v33 }
0x1d71   : > { %v7720_v10 = vpop.f32.mrb[136].mxu1  ;;  %v7884_v11 = vpop.f32.mrb[140].mxu0 }
0x1d72   : > { %v7726_v13 = vadd.f32 %v7720_v10, %v7672_v8  ;;  %v10155_v15 = vpop.f32.mrb[137].mxu1  ;;  %v10173_v16 = vpop.f32.mrb[141].mxu0 }
0x1d73   : > { %v7723_v18 = vpop.f32.mrb[138].mxu1  ;;  %v7887_v20 = vpop.f32.mrb[142].mxu0 }
0x1d74   : > { %v10156_v21 = vpop.f32.mrb[139].mxu1  ;;  %v10174_v22 = vpop.f32.mrb[143].mxu0  ;;  %v7780_v23 = vadd.f32 %v7774_v63, %v7726_v13 }
0x1d79   : > { %v7829_v24 = vpop.f32.mrb[140].mxu1  ;;  %v7992_v7 = vpop.f32.mrb[144].mxu0 }
0x1d7a   : > { %v7835_v25 = vadd.f32 %v7829_v24, %v7780_v23  ;;  %v10167_v26 = vpop.f32.mrb[141].mxu1  ;;  %v10185_v27 = vpop.f32.mrb[145].mxu0 }
0x1d7b   : > { %v7832_v9 = vpop.f32.mrb[142].mxu1  ;;  %v7995_v28 = vpop.f32.mrb[146].mxu0  ;;  %v8595_v26 = vld [vmem:[%s13660_s9] sm:$0x1] }
0x1d7c   : > { %v10168_v38 = vpop.f32.mrb[143].mxu1  ;;  %v10186_v29 = vpop.f32.mrb[147].mxu0  ;;  %v7890_v30 = vadd.f32 %v7884_v11, %v7835_v25 }
0x1d81   : > { %v7938_v43 = vpop.f32.mrb[144].mxu1  ;;  %v8100_v17 = vpop.f32.mrb[148].mxu0 }
0x1d82   : > { %v7944_v31 = vadd.f32 %v7938_v43, %v7890_v30  ;;  %v10179_v19 = vpop.f32.mrb[145].mxu1  ;;  %v10197_v32 = vpop.f32.mrb[149].mxu0 }
0x1d83   : > { %v7941_v34 = vpop.f32.mrb[146].mxu1  ;;  %v8103_v12 = vpop.f32.mrb[150].mxu0 }
0x1d84   : > { %v10180_v35 = vpop.f32.mrb[147].mxu1  ;;  %v10198_v1 = vpop.f32.mrb[151].mxu0  ;;  %v7998_v56 = vadd.f32 %v7992_v7, %v7944_v31 }
0x1d89   : > { %v8046_v36 = vpop.f32.mrb[148].mxu1  ;;  %v8208_v39 = vpop.f32.mrb[152].mxu0 }
0x1d8a   : > { %v8052_v40 = vadd.f32 %v8046_v36, %v7998_v56  ;;  %v10191_v37 = vpop.f32.mrb[149].mxu1  ;;  %v10209_v41 = vpop.f32.mrb[153].mxu0 }
0x1d8b   : > { %v8049_v42 = vpop.f32.mrb[150].mxu1  ;;  %v8211_v14 = vpop.f32.mrb[154].mxu0 }
0x1d8c   : > { %v10192_v44 = vpop.f32.mrb[151].mxu1  ;;  %v10210_v2 = vpop.f32.mrb[155].mxu0  ;;  %v8106_v45 = vadd.f32 %v8100_v17, %v8052_v40  ;;  %v8606_v17 = vld [vmem:[%s13662_s11] sm:$0x1] }
0x1d91   : > { %v8154_v46 = vpop.f32.mrb[152].mxu1  ;;  %v8318_v47 = vpop.f32.mrb[156].mxu0 }
0x1d92   : > { %v8160_v48 = vadd.f32 %v8154_v46, %v8106_v45  ;;  %v10203_v49 = vpop.f32.mrb[153].mxu1  ;;  %v10221_v50 = vpop.f32.mrb[157].mxu0 }
0x1d93   : > { %v8157_v51 = vpop.f32.mrb[154].mxu1  ;;  %v8321_v52 = vpop.f32.mrb[158].mxu0 }
0x1d94   : > { %v10204_v53 = vpop.f32.mrb[155].mxu1  ;;  %v10222_v55 = vpop.f32.mrb[159].mxu0  ;;  %v8214_v54 = vadd.f32 %v8208_v39, %v8160_v48 }
0x1d99   : > { %v8263_v57 = vpop.f32.mrb[156].mxu1  ;;  %v8426_v58 = vpop.f32.mrb[160].mxu0 }
0x1d9a   : > { %v8269_v59 = vadd.f32 %v8263_v57, %v8214_v54  ;;  %v10215_v60 = vpop.f32.mrb[157].mxu1  ;;  %v10233_v61 = vpop.f32.mrb[161].mxu0 }
0x1d9b   : > { %v8266_v63 = vpop.f32.mrb[158].mxu1  ;;  %v8429_v33 = vpop.f32.mrb[162].mxu0 }
0x1d9c   : > { %v10216_v62 = vpop.f32.mrb[159].mxu1  ;;  %v10234_v0 = vpop.f32.mrb[163].mxu0  ;;  %v8324_v3 = vadd.f32 %v8318_v47, %v8269_v59 }
0x1da1   : > { %v8372_v4 = vpop.f32.mrb[160].mxu1  ;;  %v8534_v5 = vpop.f32.mrb[164].mxu0 }
0x1da2   : > { %v8378_v6 = vadd.f32 %v8372_v4, %v8324_v3  ;;  %v10227_v8 = vpop.f32.mrb[161].mxu1  ;;  %v10245_v10 = vpop.f32.mrb[165].mxu0 }
0x1da3   : > { %v8375_v11 = vpop.f32.mrb[162].mxu1  ;;  %v8537_v13 = vpop.f32.mrb[166].mxu0 }
0x1da4   : > { %v10228_v15 = vpop.f32.mrb[163].mxu1  ;;  %v10246_v16 = vpop.f32.mrb[167].mxu0  ;;  %v8432_v18 = vadd.f32 %v8426_v58, %v8378_v6 }
0x1da9   : > { %v8480_v20 = vpop.f32.mrb[164].mxu1 }
0x1daa   : > { %v8486_v21 = vadd.f32 %v8480_v20, %v8432_v18  ;;  %v10239_v22 = vpop.f32.mrb[165].mxu1 }
0x1dab   : > { %v8483_v23 = vpop.f32.mrb[166].mxu1 }
0x1dac   : > { %v10240_v24 = vpop.f32.mrb[167].mxu1  ;;  %v8540_v7 = vadd.f32 %v8534_v5, %v8486_v21 }
0x1db1   : > { %v8588_v25 = vpop.f32.mrb[168].mxu1 }
0x1db2   : > { %v8594_v27 = vadd.f32 %v8588_v25, %v8540_v7  ;;  %v10251_v9 = vpop.f32.mrb[169].mxu1 }
0x1db3   : > { %v8591_v28 = vpop.f32.mrb[170].mxu1 }
0x1db4   : > { %v8596_v38 = vadd.f32 %v8595_v26, %v8594_v27  ;;  %v10252_v29 = vpop.f32.mrb[171].mxu1 }
0x1db6   : > { %v8597_v30 = vmax.f32 %v8596_v38, 0.0 }
0x1db8   : > { %v8598_v43 = vpack.c.bf16 %v8597_v30, %v8597_v30 }
0x1dba   : > { %10262 = vmatmul.mubr.msk.bf16.vlgmr.msra.gmra.mrb[168].mxu0 %vm8628_vm5, %v8598_v43 }
0x1e8d   : > { %v8670_v31 = vpop.f32.mrb[168].mxu0 }
0x1e8e   : > { %v8671_v19 = vadd.f32 %v8670_v31, %v8606_v17  ;;  %v10263_v32 = vpop.f32.mrb[169].mxu0 }
0x1e8f   : > { %v8673_v34 = vpop.f32.mrb[170].mxu0 }
0x1e90   : > { %v10264_v12 = vpop.f32.mrb[171].mxu0  ;;  %v8677_v35 = vsel %vm8676_vm6, %v8671_v19, -inf }
0x1e91   : > { %8678 = vmax.xlane.f32.xlu1 %v8677_v35 }
0x1f1e   : > { %v8679_v1 = vpop.xlane.xlu1 %8678 }
0x1f1f   : > { %v8680_v56 = vsub.f32 %v8671_v19, %v8679_v1 }
0x1f21   : > { %v8681_v36 = vmul.f32 1.442695, %v8680_v56 }
0x1f23   : > { %11001 = vpow2.f32 %v8681_v36 }
0x1f2d   : > { %v11002_v39 = vpop.eup %11001 }
0x1f2e   : > { %v8683_v40 = vsel %vm8676_vm6, %v11002_v39, 0.0 }
0x1f2f   : > { %8684 = vadd.xlane.f32.xlu0 %v8683_v40 }
0x1fbc   : > { %v8685_v37 = vpop.xlane.xlu0 %8684 }
0x1fbd   : > { %11003 = vrcp.f32 %v8685_v37 }
0x1fc7   : > { %v11004_v41 = vpop.eup %11003 }
0x1fc8   : > { %v8687_v42 = vmul.f32 %v11004_v41, %v11002_v39 }
0x1fca   : > { %8688 = vst.msk [vmem:[%s405_s0] sm:$0x1] %vm8676_vm6, %v8687_v42 }
0x1fcb   : > { %11071 = shalt.err (!%p11068_p3)
}
0x1fcc   : > { %s11072_s28 = scalar_lea.hbm %s13608_s18, 16  ;;  %s11076_s0 = scalar_lea.hbm %s13663_s12, 32 }
0x1fcd   : > { %p11073_p4 = scmp.ne.s32.totalorder %s13608_s18, %s11072_s28  ;;  %p11077_p9 = scmp.lt.u32.totalorder %s13608_s18, %s13663_s12 }
0x1fce   : > { %p11078_p10 = scmp.lt.u32.totalorder %s11076_s0, %s11072_s28  ;;  %p11080_p12 = scmp.lt.u32.totalorder %s11072_s28, %s13608_s18 }
0x1fcf   : > { %p11074_p7 = pnand %p11073_p4, %p11230_p5 }
0x1fd0   : > { %p11079_p11 = por %p11078_p10, %p11077_p9 }
0x1fd1   : > { %p11075_p8 = pneg %p11074_p7 }
0x1fd2   : > { %p11081_p13 = por %p11080_p12, %p11079_p11 }
0x1fd4   : > { %p11082_p0 = pnand %p11081_p13, %p11075_p8 }
0x1fd6   : > { %11085 = shalt.err (!%p11082_p0)
}
0x1fd7   : > { %10298 = dma.vmem_to_hbm [thread:$0]  (%p11230_p5), %s13610_s15, 16, %s13608_s18, %s8690_s19  }
0x1fd8 PF: > { %p10304_p1 = scmp.ge.s32.totalorder %s11120_s24, 2  ;;  %s8714_s20 = sand.u32 1, %s11108_s21  }
0x1fd9   : > { %s8715_s25 = scalar_lea.sflag [#allocation3], %s8714_s20 }
0x1fda   : > { %p10301_p2 = pnand %p10304_p1, %p11234_p6 }
0x1fdc   : > { %11103 = dma.done.wait (!%p10301_p2), %s8715_s25, 16  }
0x1fdd   : > { %11105 = vsyncadd (!%p10301_p2), %s8715_s25, 4294967280  ;;  %p22_p3 = scmp.ge.s32.totalorder %s11217_s27, 4   ;;  %s13675_s21 = smov %s11112_s22 }
0x1fde   : > { %s13676_s22 = smov %s11116_s23  ;;  %s13677_s23 = smov %s11228_s30 }
0x1fdf   : > { %s13678_s24 = smov %s11217_s27  ;;  %24 = sbr.rel (!%p22_p3) target bundleno = 7 (0x7), region = 156 }
0x1fe6   :  { %8719 = vsyncpa [#allocation3], 1 }
0x1fe7   :  { %8721 = vsyncpa [#allocation3 + $0x1], 1 }

</bundles_post_ra>
